<compile_context>
chip_gen: v5e
topology: v5e:2x2
jax: 0.10.0
libtpu: 0.0.40
codegen_flags: <defaults>
</compile_context>

<pallas_src>
import jax
import jax.numpy as jnp
import numpy as np
from jax.experimental import pallas as pl
from jax.experimental.pallas import tpu as pltpu

D_IN, D_HID, D_OUT = 1792, 512, 128
BN_EPS = 1e-3                      # nn.BatchNorm1d(512, eps=0.001)
Z_CACHE_MAX_BYTES = 24 * 1024 * 1024   # cap so fixed buffers + cache fit v7x VMEM


def _round_up(a, b):
    return (a + b - 1) // b * b


def _make_kernel(n_true, tn, use_cache, cache_dtype, ragged):
    """Build the head kernel with trace-time config baked in."""
    inv_n = np.float32(1.0 / n_true)
    groups = tn // 8

    def kernel(x_ref, w1_ref, gamma_ref, beta_ref, w2_ref, b2_ref,
               proj_ref, y_ref,
               sum8_ref, sumsq8_ref, scale_ref, shift_ref, *opt_scratch):
        zc_ref = opt_scratch[0] if use_cache else None
        p = pl.program_id(0)          # 0 = stats pass, 1 = normalize/output pass
        i = pl.program_id(1)          # batch-tile index
        nt = pl.num_programs(1)

        # ---------------- pass 0: z = x @ W1, accumulate batch stats ----------------
        @pl.when((p == 0) & (i == 0))
        def _init_stats():
            sum8_ref[...] = jnp.zeros_like(sum8_ref)
            sumsq8_ref[...] = jnp.zeros_like(sumsq8_ref)

        @pl.when(p == 0)
        def _stats_pass():
            # bf16 cast inside the kernel (hides under the MXU), f32 accumulation.
            xb = x_ref[...].astype(jnp.bfloat16)
            z = jnp.dot(xb, w1_ref[...], preferred_element_type=jnp.float32)  # [tn, 512]
            if use_cache:
                zc_ref[i] = z.astype(cache_dtype)          # cache for pass 1
            if ragged:
                rows = jax.lax.broadcasted_iota(jnp.int32, (tn, 1), 0)
                valid = (i * tn + rows) < n_true
                zs = jnp.where(valid, z, 0.0)              # mask garbage tail rows
            else:
                zs = z
            # Sublane-aligned partial sums; cross-sublane reduce deferred to finalize.
            zg = zs.reshape(groups, 8, D_HID)
            sum8_ref[...] += jnp.sum(zg, axis=0)
            sumsq8_ref[...] += jnp.sum(zg * zg, axis=0)

        @pl.when((p == 0) & (i == nt - 1))
        def _finalize_stats():
            s = jnp.sum(sum8_ref[...], axis=0, keepdims=True)       # [1, 512]
            ss = jnp.sum(sumsq8_ref[...], axis=0, keepdims=True)
            mean = s * inv_n
            var = jnp.maximum(ss * inv_n - mean * mean, 0.0)        # E[z^2]-E[z]^2
            scale = gamma_ref[...] * jax.lax.rsqrt(var + BN_EPS)    # fold BN affine
            scale_ref[...] = scale
            shift_ref[...] = beta_ref[...] - mean * scale

        # ---------------- pass 1: normalize + projection ----------------
        @pl.when(p == 1)
        def _output_pass():
            if use_cache:
                z = zc_ref[i].astype(jnp.float32)
            else:
                # Fallback for batches whose z cache would not fit VMEM.
                z = jnp.dot(x_ref[...].astype(jnp.bfloat16), w1_ref[...],
                            preferred_element_type=jnp.float32)
            y = z * scale_ref[...] + shift_ref[...]                 # f32 elementwise
            y_ref[...] = y.astype(y_ref.dtype)
            h = jnp.dot(y.astype(w2_ref.dtype), w2_ref[...],
                        preferred_element_type=jnp.float32) + b2_ref[...]
            proj_ref[...] = jnp.maximum(h, 0.0).astype(proj_ref.dtype)

    return kernel


def nvgnet_face_head(x, w1, gamma, beta, w2, b2, *, tile_n=512):
    """x: [N, 1792] float32 backbone (avgpool_1a) features.

    Returns (projection [N, 128] f32, summary vector y [N, 512] f32).
    """
    n = int(x.shape[0])
    assert x.shape[1] == D_IN
    tile_n = _round_up(max(tile_n, 8), 8)
    tn = min(tile_n, _round_up(n, 8))          # sublane-aligned tile
    n_tiles = -(-n // tn)
    ragged = (n % tn) != 0                     # last tile has garbage tail rows

    # z-cache sizing: f32 if it fits, else bf16, else recompute fallback.
    cache_rows = n_tiles * tn
    cache_dtype, cache_bytes = None, 0
    if cache_rows * D_HID * 4 <= Z_CACHE_MAX_BYTES:
        cache_dtype, cache_bytes = jnp.float32, cache_rows * D_HID * 4
    elif cache_rows * D_HID * 2 <= Z_CACHE_MAX_BYTES:
        cache_dtype, cache_bytes = jnp.bfloat16, cache_rows * D_HID * 2
    use_cache = cache_dtype is not None

    # Small weights are cast once (cheap); x stays f32 and is cast in-kernel.
    w1_b = w1.astype(jnp.bfloat16)
    w2_b = w2.astype(jnp.bfloat16)

    out_shapes = (
        jax.ShapeDtypeStruct((n, D_OUT), jnp.float32),   # proj
        jax.ShapeDtypeStruct((n, D_HID), jnp.float32),   # y (summary vector)
    )

    # x index map: stream tiles in pass 0; stay on the last tile in pass 1 when
    # the cache is used (no x DMAs during pass 1). Output blocks are resident
    # during pass 0 (index constant) and written back exactly once from pass 1.
    if use_cache:
        x_map = lambda p, i: (i * (1 - p) + (n_tiles - 1) * p, 0)
    else:
        x_map = lambda p, i: (i, 0)
    out_map = lambda p, i: (i * p, 0)

    scratch = [
        pltpu.VMEM((8, D_HID), jnp.float32),   # partial sum(z), sublane aligned
        pltpu.VMEM((8, D_HID), jnp.float32),   # partial sum(z*z)
        pltpu.VMEM((1, D_HID), jnp.float32),   # folded BN scale
        pltpu.VMEM((1, D_HID), jnp.float32),   # folded BN shift
    ]
    if use_cache:
        scratch.append(pltpu.VMEM((n_tiles, tn, D_HID), cache_dtype))

    grid_spec = pltpu.PrefetchScalarGridSpec(
        num_scalar_prefetch=0,
        grid=(2, n_tiles),                     # (pass, batch tile) — pass outermost
        in_specs=[
            pl.BlockSpec((tn, D_IN), x_map),                     # x: streamed (pass 0)
            pl.BlockSpec((D_IN, D_HID), lambda p, i: (0, 0)),    # W1: resident
            pl.BlockSpec((1, D_HID), lambda p, i: (0, 0)),       # gamma: resident
            pl.BlockSpec((1, D_HID), lambda p, i: (0, 0)),       # beta: resident
            pl.BlockSpec((D_HID, D_OUT), lambda p, i: (0, 0)),   # W2: resident
            pl.BlockSpec((1, D_OUT), lambda p, i: (0, 0)),       # b2: resident
        ],
        out_specs=(
            pl.BlockSpec((tn, D_OUT), out_map),
            pl.BlockSpec((tn, D_HID), out_map),
        ),
        scratch_shapes=scratch,
    )

    # Explicit VMEM budget (covers x double-buffer, resident weights, output
    # tiles, stats scratch and the z cache); capped below v7x's 64 MiB.
    fixed_bytes = (
        2 * tn * D_IN * 4            # x tile (f32, double-buffered)
        + 2 * D_IN * D_HID * 2       # W1 bf16 (double-buffered)
        + 2 * D_HID * D_OUT * 2      # W2 bf16
        + 2 * tn * D_HID * 4         # y output tile
        + 2 * tn * D_OUT * 4         # proj output tile
        + (2 * 8 + 2) * D_HID * 4    # stats / scale / shift scratch
        + 8 * (D_HID + D_OUT) * 4    # gamma/beta/b2 (+slack)
    )
    vmem_limit = min(56 << 20, max(32 << 20, fixed_bytes + cache_bytes + (8 << 20)))

    matmul1_flops = 2 * n * D_IN * D_HID
    flops = matmul1_flops + 2 * n * D_HID * D_OUT
    x_bytes = n * D_IN * 4
    if not use_cache:
        flops += matmul1_flops
        x_bytes *= 2
    bytes_accessed = (
        x_bytes
        + D_IN * D_HID * 2 + D_HID * D_OUT * 2
        + n * (D_HID + D_OUT) * 4
        + (2 * D_HID + D_OUT) * 4
    )
    cost = pl.CostEstimate(flops=int(flops), transcendentals=0,
                           bytes_accessed=int(bytes_accessed))

    proj, y = pl.pallas_call(
        _make_kernel(n, tn, use_cache, cache_dtype, ragged),
        out_shape=out_shapes,
        grid_spec=grid_spec,
        compiler_params=pltpu.CompilerParams(
            dimension_semantics=("arbitrary", "arbitrary"),
            vmem_limit_bytes=int(vmem_limit)),
        cost_estimate=cost,
    )(x, w1_b, gamma, beta, w2_b, b2)

    return proj, y


def init_params(key):
    k1, k2, k3 = jax.random.split(key, 3)
    # Linear(1792, 512, bias=False): stored pre-transposed as [1792, 512]
    w1 = jax.random.normal(k1, (D_IN, D_HID), jnp.float32) * (1.0 / np.sqrt(D_IN))
    # BatchNorm1d(512) affine params
    gamma = jnp.ones((1, D_HID), jnp.float32)
    beta = jnp.zeros((1, D_HID), jnp.float32)
    # Linear(512, 128) with bias
    w2 = jax.random.normal(k2, (D_HID, D_OUT), jnp.float32) * (1.0 / np.sqrt(D_HID))
    b2 = jax.random.normal(k3, (1, D_OUT), jnp.float32) * 0.01
    return w1, gamma, beta, w2, b2


def reference(x, w1, gamma, beta, w2, b2):
    z = x @ w1
    mean = z.mean(axis=0, keepdims=True)
    var = ((z - mean) ** 2).mean(axis=0, keepdims=True)
    y = gamma * (z - mean) / jnp.sqrt(var + BN_EPS) + beta
    proj = jnp.maximum(y @ w2 + b2, 0.0)
    return proj, y


def _check(n, key, tile_n=512):
    kx, kp = jax.random.split(key)
    x = jax.random.normal(kx, (n, D_IN), jnp.float32)
    w1, gamma, beta, w2, b2 = init_params(kp)

    proj, y = nvgnet_face_head(x, w1, gamma, beta, w2, b2, tile_n=tile_n)
    proj = jax.block_until_ready(proj)
    y = jax.block_until_ready(y)

    # Reference with the same bf16-rounded matmul operands (f32 math).
    xb = x.astype(jnp.bfloat16).astype(jnp.float32)
    w1b = w1.astype(jnp.bfloat16).astype(jnp.float32)
    w2b = w2.astype(jnp.bfloat16).astype(jnp.float32)
    proj_r, y_r = reference(xb, w1b, gamma, beta, w2b, b2)

    assert proj.shape == (n, D_OUT) and y.shape == (n, D_HID)
    assert np.isfinite(np.asarray(proj)).all() and np.isfinite(np.asarray(y)).all()
    np.testing.assert_allclose(np.asarray(y), np.asarray(y_r), rtol=3e-2, atol=3e-2)
    np.testing.assert_allclose(np.asarray(proj), np.asarray(proj_r), rtol=3e-2, atol=3e-2)


if __name__ == "__main__":
    key = jax.random.PRNGKey(0)
    k_small, k_tiled = jax.random.split(key)

    # Small batch of backbone (avgpool_1a) features: single-tile path.
    _check(8, k_small)
    # Multi-tile batch with a ragged last tile: exercises the in-kernel masking,
    # the dynamically indexed z cache, and the pass-gated output index map.
    _check(200, k_tiled, tile_n=64)

    print("KERNEL_OK")
</pallas_src>

<mosaic_0001>
module attributes {stable_mosaic.version = 11 : i64} {
  func.func @kernel(%arg0: i32, %arg1: i32, %arg2: memref<8x1792xf32, #tpu.memory_space<vmem>>, %arg3: memref<1792x512xbf16, #tpu.memory_space<vmem>>, %arg4: memref<1x512xf32, #tpu.memory_space<vmem>>, %arg5: memref<1x512xf32, #tpu.memory_space<vmem>>, %arg6: memref<512x128xbf16, #tpu.memory_space<vmem>>, %arg7: memref<1x128xf32, #tpu.memory_space<vmem>>, %arg8: memref<8x128xf32, #tpu.memory_space<vmem>>, %arg9: memref<8x512xf32, #tpu.memory_space<vmem>>, %arg10: memref<8x512xf32, #tpu.memory_space<vmem>>, %arg11: memref<8x512xf32, #tpu.memory_space<vmem>>, %arg12: memref<1x512xf32, #tpu.memory_space<vmem>>, %arg13: memref<1x512xf32, #tpu.memory_space<vmem>>, %arg14: memref<1x8x512xf32, #tpu.memory_space<vmem>>) attributes {dimension_semantics = [#tpu.dimension_semantics<arbitrary>, #tpu.dimension_semantics<arbitrary>], iteration_bounds = array<i64: 2, 1>, scalar_prefetch = 0 : i64, scratch_operands = 5 : i64, tpu.core_type = #tpu.core_type<tc>, window_params = [{transform_indices = @transform_0, window_bounds = array<i64: 8, 1792>}, {pipeline_mode = #tpu.pipeline_mode<synchronous>, transform_indices = @transform_1, window_bounds = array<i64: 1792, 512>}, {pipeline_mode = #tpu.pipeline_mode<synchronous>, transform_indices = @transform_2, window_bounds = array<i64: 1, 512>}, {pipeline_mode = #tpu.pipeline_mode<synchronous>, transform_indices = @transform_3, window_bounds = array<i64: 1, 512>}, {pipeline_mode = #tpu.pipeline_mode<synchronous>, transform_indices = @transform_4, window_bounds = array<i64: 512, 128>}, {pipeline_mode = #tpu.pipeline_mode<synchronous>, transform_indices = @transform_5, window_bounds = array<i64: 1, 128>}, {transform_indices = @transform_6, window_bounds = array<i64: 8, 128>}, {transform_indices = @transform_7, window_bounds = array<i64: 8, 512>}]} {
    %c0_i32 = arith.constant 0 : i32
    %0 = arith.cmpi eq, %arg0, %c0_i32 : i32
    %c0_i32_0 = arith.constant 0 : i32
    %1 = arith.cmpi eq, %arg1, %c0_i32_0 : i32
    %2 = arith.andi %0, %1 : i1
    %3 = arith.extui %2 : i1 to i32
    %c0_i32_1 = arith.constant 0 : i32
    %4 = arith.cmpi ne, %3, %c0_i32_1 : i32
    scf.if %4 {
      %cst = arith.constant 0.000000e+00 : f32
      %16 = vector.broadcast %cst : f32 to vector<8x512xf32>
      %c0 = arith.constant 0 : index
      %c0_8 = arith.constant 0 : index
      %17 = vector.load %arg10[%c0, %c0_8] : memref<8x512xf32, #tpu.memory_space<vmem>>, vector<8x512xf32>
      tpu.vector_store %arg10[%c0, %c0_8], %16 {strides = array<i32>} : memref<8x512xf32, #tpu.memory_space<vmem>>, vector<8x512xf32>,
      %cst_9 = arith.constant 0.000000e+00 : f32
      %18 = vector.broadcast %cst_9 : f32 to vector<8x512xf32>
      %c0_10 = arith.constant 0 : index
      %c0_11 = arith.constant 0 : index
      %19 = vector.load %arg11[%c0_10, %c0_11] : memref<8x512xf32, #tpu.memory_space<vmem>>, vector<8x512xf32>
      tpu.vector_store %arg11[%c0_10, %c0_11], %18 {strides = array<i32>} : memref<8x512xf32, #tpu.memory_space<vmem>>, vector<8x512xf32>,
    } else {
    }
    %c0_i32_2 = arith.constant 0 : i32
    %5 = arith.cmpi eq, %arg0, %c0_i32_2 : i32
    %6 = arith.extui %5 : i1 to i32
    %c0_i32_3 = arith.constant 0 : i32
    %7 = arith.cmpi ne, %6, %c0_i32_3 : i32
    scf.if %7 {
      %c0 = arith.constant 0 : index
      %c0_8 = arith.constant 0 : index
      %16 = vector.load %arg2[%c0, %c0_8] : memref<8x1792xf32, #tpu.memory_space<vmem>>, vector<8x1792xf32>
      %17 = arith.truncf %16 : vector<8x1792xf32> to vector<8x1792xbf16>
      %c0_9 = arith.constant 0 : index
      %c0_10 = arith.constant 0 : index
      %18 = vector.load %arg3[%c0_9, %c0_10] : memref<1792x512xbf16, #tpu.memory_space<vmem>>, vector<1792x512xbf16>
      %cst = arith.constant dense<0.000000e+00> : vector<8x512xf32>
      %19 = tpu.matmul %17, %18, %cst {dimension_numbers = #tpu.dot_dimension_numbers<[1], [0], [0], [1], [0, 0, 1, 1], [], []>} : vector<8x1792xbf16>, vector<1792x512xbf16>, vector<8x512xf32> -> vector<8x512xf32>
      %20 = arith.index_cast %arg1 : i32 to index
      %c0_11 = arith.constant 0 : index
      %c0_12 = arith.constant 0 : index
      %21 = vector.load %arg14[%20, %c0_11, %c0_12] : memref<1x8x512xf32, #tpu.memory_space<vmem>>, vector<1x8x512xf32>
      %22 = vector.shape_cast %21 : vector<1x8x512xf32> to vector<8x512xf32>
      %23 = vector.shape_cast %19 : vector<8x512xf32> to vector<1x8x512xf32>
      tpu.vector_store %arg14[%20, %c0_11, %c0_12], %23 {strides = array<i32>} : memref<1x8x512xf32, #tpu.memory_space<vmem>>, vector<1x8x512xf32>,
      %24 = vector.shape_cast %19 : vector<8x512xf32> to vector<1x8x512xf32>
      %c0_13 = arith.constant 0 : index
      %c0_14 = arith.constant 0 : index
      %25 = vector.load %arg10[%c0_13, %c0_14] : memref<8x512xf32, #tpu.memory_space<vmem>>, vector<8x512xf32>
      %cst_15 = arith.constant dense<0.000000e+00> : vector<8x512xf32>
      %26 = vector.multi_reduction <add>, %24, %cst_15 [0] : vector<1x8x512xf32> to vector<8x512xf32>
      %27 = arith.addf %25, %26 : vector<8x512xf32>
      %c0_16 = arith.constant 0 : index
      %c0_17 = arith.constant 0 : index
      %28 = vector.load %arg10[%c0_16, %c0_17] : memref<8x512xf32, #tpu.memory_space<vmem>>, vector<8x512xf32>
      tpu.vector_store %arg10[%c0_16, %c0_17], %27 {strides = array<i32>} : memref<8x512xf32, #tpu.memory_space<vmem>>, vector<8x512xf32>,
      %c0_18 = arith.constant 0 : index
      %c0_19 = arith.constant 0 : index
      %29 = vector.load %arg11[%c0_18, %c0_19] : memref<8x512xf32, #tpu.memory_space<vmem>>, vector<8x512xf32>
      %30 = arith.mulf %24, %24 : vector<1x8x512xf32>
      %cst_20 = arith.constant dense<0.000000e+00> : vector<8x512xf32>
      %31 = vector.multi_reduction <add>, %30, %cst_20 [0] : vector<1x8x512xf32> to vector<8x512xf32>
      %32 = arith.addf %29, %31 : vector<8x512xf32>
      %c0_21 = arith.constant 0 : index
      %c0_22 = arith.constant 0 : index
      %33 = vector.load %arg11[%c0_21, %c0_22] : memref<8x512xf32, #tpu.memory_space<vmem>>, vector<8x512xf32>
      tpu.vector_store %arg11[%c0_21, %c0_22], %32 {strides = array<i32>} : memref<8x512xf32, #tpu.memory_space<vmem>>, vector<8x512xf32>,
    } else {
    }
    %c0_i32_4 = arith.constant 0 : i32
    %8 = arith.cmpi eq, %arg0, %c0_i32_4 : i32
    %c0_i32_5 = arith.constant 0 : i32
    %9 = arith.cmpi eq, %arg1, %c0_i32_5 : i32
    %10 = arith.andi %8, %9 : i1
    %11 = arith.extui %10 : i1 to i32
    %c0_i32_6 = arith.constant 0 : i32
    %12 = arith.cmpi ne, %11, %c0_i32_6 : i32
    scf.if %12 {
      %c0 = arith.constant 0 : index
      %c0_8 = arith.constant 0 : index
      %16 = vector.load %arg10[%c0, %c0_8] : memref<8x512xf32, #tpu.memory_space<vmem>>, vector<8x512xf32>
      %cst = arith.constant dense<0.000000e+00> : vector<512xf32>
      %17 = vector.multi_reduction <add>, %16, %cst [0] : vector<8x512xf32> to vector<512xf32>
      %18 = vector.shape_cast %17 : vector<512xf32> to vector<1x512xf32>
      %c0_9 = arith.constant 0 : index
      %c0_10 = arith.constant 0 : index
      %19 = vector.load %arg11[%c0_9, %c0_10] : memref<8x512xf32, #tpu.memory_space<vmem>>, vector<8x512xf32>
      %cst_11 = arith.constant dense<0.000000e+00> : vector<512xf32>
      %20 = vector.multi_reduction <add>, %19, %cst_11 [0] : vector<8x512xf32> to vector<512xf32>
      %21 = vector.shape_cast %20 : vector<512xf32> to vector<1x512xf32>
      %cst_12 = arith.constant 1.250000e-01 : f32
      %22 = vector.broadcast %cst_12 : f32 to vector<1x512xf32>
      %23 = arith.mulf %18, %22 : vector<1x512xf32>
      %cst_13 = arith.constant 1.250000e-01 : f32
      %24 = vector.broadcast %cst_13 : f32 to vector<1x512xf32>
      %25 = arith.mulf %21, %24 : vector<1x512xf32>
      %26 = arith.mulf %23, %23 : vector<1x512xf32>
      %27 = arith.subf %25, %26 : vector<1x512xf32>
      %cst_14 = arith.constant 0.000000e+00 : f32
      %28 = vector.broadcast %cst_14 : f32 to vector<1x512xf32>
      %29 = arith.maximumf %27, %28 : vector<1x512xf32>
      %c0_15 = arith.constant 0 : index
      %c0_16 = arith.constant 0 : index
      %30 = vector.load %arg4[%c0_15, %c0_16] : memref<1x512xf32, #tpu.memory_space<vmem>>, vector<1x512xf32>
      %cst_17 = arith.constant 1.000000e-03 : f32
      %31 = vector.broadcast %cst_17 : f32 to vector<1x512xf32>
      %32 = arith.addf %29, %31 : vector<1x512xf32>
      %33 = math.rsqrt %32 : vector<1x512xf32>
      %34 = arith.mulf %30, %33 : vector<1x512xf32>
      %c0_18 = arith.constant 0 : index
      %c0_19 = arith.constant 0 : index
      %35 = vector.load %arg12[%c0_18, %c0_19] : memref<1x512xf32, #tpu.memory_space<vmem>>, vector<1x512xf32>
      tpu.vector_store %arg12[%c0_18, %c0_19], %34 {strides = array<i32>} : memref<1x512xf32, #tpu.memory_space<vmem>>, vector<1x512xf32>,
      %c0_20 = arith.constant 0 : index
      %c0_21 = arith.constant 0 : index
      %36 = vector.load %arg5[%c0_20, %c0_21] : memref<1x512xf32, #tpu.memory_space<vmem>>, vector<1x512xf32>
      %37 = arith.mulf %23, %34 : vector<1x512xf32>
      %38 = arith.subf %36, %37 : vector<1x512xf32>
      %c0_22 = arith.constant 0 : index
      %c0_23 = arith.constant 0 : index
      %39 = vector.load %arg13[%c0_22, %c0_23] : memref<1x512xf32, #tpu.memory_space<vmem>>, vector<1x512xf32>
      tpu.vector_store %arg13[%c0_22, %c0_23], %38 {strides = array<i32>} : memref<1x512xf32, #tpu.memory_space<vmem>>, vector<1x512xf32>,
    } else {
    }
    %c1_i32 = arith.constant 1 : i32
    %13 = arith.cmpi eq, %arg0, %c1_i32 : i32
    %14 = arith.extui %13 : i1 to i32
    %c0_i32_7 = arith.constant 0 : i32
    %15 = arith.cmpi ne, %14, %c0_i32_7 : i32
    scf.if %15 {
      %16 = arith.index_cast %arg1 : i32 to index
      %c0 = arith.constant 0 : index
      %c0_8 = arith.constant 0 : index
      %17 = vector.load %arg14[%16, %c0, %c0_8] : memref<1x8x512xf32, #tpu.memory_space<vmem>>, vector<1x8x512xf32>
      %18 = vector.shape_cast %17 : vector<1x8x512xf32> to vector<8x512xf32>
      %c0_9 = arith.constant 0 : index
      %c0_10 = arith.constant 0 : index
      %19 = vector.load %arg12[%c0_9, %c0_10] : memref<1x512xf32, #tpu.memory_space<vmem>>, vector<1x512xf32>
      %20 = vector.broadcast %19 : vector<1x512xf32> to vector<8x512xf32>
      %21 = arith.mulf %18, %20 : vector<8x512xf32>
      %c0_11 = arith.constant 0 : index
      %c0_12 = arith.constant 0 : index
      %22 = vector.load %arg13[%c0_11, %c0_12] : memref<1x512xf32, #tpu.memory_space<vmem>>, vector<1x512xf32>
      %23 = vector.broadcast %22 : vector<1x512xf32> to vector<8x512xf32>
      %24 = arith.addf %21, %23 : vector<8x512xf32>
      %c0_13 = arith.constant 0 : index
      %c0_14 = arith.constant 0 : index
      %25 = vector.load %arg9[%c0_13, %c0_14] : memref<8x512xf32, #tpu.memory_space<vmem>>, vector<8x512xf32>
      tpu.vector_store %arg9[%c0_13, %c0_14], %24 {strides = array<i32>} : memref<8x512xf32, #tpu.memory_space<vmem>>, vector<8x512xf32>,
      %26 = arith.truncf %24 : vector<8x512xf32> to vector<8x512xbf16>
      %c0_15 = arith.constant 0 : index
      %c0_16 = arith.constant 0 : index
      %27 = vector.load %arg6[%c0_15, %c0_16] : memref<512x128xbf16, #tpu.memory_space<vmem>>, vector<512x128xbf16>
      %cst = arith.constant dense<0.000000e+00> : vector<8x128xf32>
      %28 = tpu.matmul %26, %27, %cst {dimension_numbers = #tpu.dot_dimension_numbers<[1], [0], [0], [1], [0, 0, 1, 1], [], []>} : vector<8x512xbf16>, vector<512x128xbf16>, vector<8x128xf32> -> vector<8x128xf32>
      %c0_17 = arith.constant 0 : index
      %c0_18 = arith.constant 0 : index
      %29 = vector.load %arg7[%c0_17, %c0_18] : memref<1x128xf32, #tpu.memory_space<vmem>>, vector<1x128xf32>
      %30 = vector.broadcast %29 : vector<1x128xf32> to vector<8x128xf32>
      %31 = arith.addf %28, %30 : vector<8x128xf32>
      %cst_19 = arith.constant 0.000000e+00 : f32
      %32 = vector.broadcast %cst_19 : f32 to vector<8x128xf32>
      %33 = arith.maximumf %31, %32 : vector<8x128xf32>
      %c0_20 = arith.constant 0 : index
      %c0_21 = arith.constant 0 : index
      %34 = vector.load %arg8[%c0_20, %c0_21] : memref<8x128xf32, #tpu.memory_space<vmem>>, vector<8x128xf32>
      tpu.vector_store %arg8[%c0_20, %c0_21], %33 {strides = array<i32>} : memref<8x128xf32, #tpu.memory_space<vmem>>, vector<8x128xf32>,
    } else {
    }
    return
  }
  func.func @transform_0(%arg0: i32, %arg1: i32) -> (i32, i32) {
    %c1_i32 = arith.constant 1 : i32
    %0 = arith.subi %c1_i32, %arg0 : i32
    %1 = arith.muli %arg1, %0 : i32
    %c0_i32 = arith.constant 0 : i32
    %2 = arith.muli %c0_i32, %arg0 : i32
    %3 = arith.addi %1, %2 : i32
    %c0_i32_0 = arith.constant 0 : i32
    %c0_i32_1 = arith.constant 0 : i32
    return %3, %c0_i32_0 : i32, i32
  }
  func.func @transform_1(%arg0: i32, %arg1: i32) -> (i32, i32) {
    %c0_i32 = arith.constant 0 : i32
    %c0_i32_0 = arith.constant 0 : i32
    %c0_i32_1 = arith.constant 0 : i32
    return %c0_i32, %c0_i32_0 : i32, i32
  }
  func.func @transform_2(%arg0: i32, %arg1: i32) -> (i32, i32) {
    %c0_i32 = arith.constant 0 : i32
    %c0_i32_0 = arith.constant 0 : i32
    %c0_i32_1 = arith.constant 0 : i32
    return %c0_i32, %c0_i32_0 : i32, i32
  }
  func.func @transform_3(%arg0: i32, %arg1: i32) -> (i32, i32) {
    %c0_i32 = arith.constant 0 : i32
    %c0_i32_0 = arith.constant 0 : i32
    %c0_i32_1 = arith.constant 0 : i32
    return %c0_i32, %c0_i32_0 : i32, i32
  }
  func.func @transform_4(%arg0: i32, %arg1: i32) -> (i32, i32) {
    %c0_i32 = arith.constant 0 : i32
    %c0_i32_0 = arith.constant 0 : i32
    %c0_i32_1 = arith.constant 0 : i32
    return %c0_i32, %c0_i32_0 : i32, i32
  }
  func.func @transform_5(%arg0: i32, %arg1: i32) -> (i32, i32) {
    %c0_i32 = arith.constant 0 : i32
    %c0_i32_0 = arith.constant 0 : i32
    %c0_i32_1 = arith.constant 0 : i32
    return %c0_i32, %c0_i32_0 : i32, i32
  }
  func.func @transform_6(%arg0: i32, %arg1: i32) -> (i32, i32) {
    %0 = arith.muli %arg1, %arg0 : i32
    %c0_i32 = arith.constant 0 : i32
    %c0_i32_0 = arith.constant 0 : i32
    return %0, %c0_i32 : i32, i32
  }
  func.func @transform_7(%arg0: i32, %arg1: i32) -> (i32, i32) {
    %0 = arith.muli %arg1, %arg0 : i32
    %c0_i32 = arith.constant 0 : i32
    %c0_i32_0 = arith.constant 0 : i32
    return %0, %c0_i32 : i32, i32
  }
}

</mosaic_0001>

<bundles_post_ra>
// kernel: tpu_custom_call.1
= control target key start
LH: loop header
LB: loop body
LE: loop exit
PB: predicated region body
PF: predicated region fallthrough
CT: control target
= control target key end

     0   :  { %13 = vsyncpa [#allocation8], 0  ;;  %s7853_s0 = inlined_call_operand.hbm [shape: f32[8,1792], index: 0, kind: input, shape index: {}]   ;;  %s7854_s1 = inlined_call_operand.hbm [shape: bf16[1792,512], index: 1, kind: input, shape index: {}]   ;;  %s7855_s2 = inlined_call_operand.hbm [shape: f32[1,512], index: 2, kind: input, shape index: {}]   ;;  %s7856_s3 = inlined_call_operand.hbm [shape: f32[1,512], index: 3, kind: input, shape index: {}]   ;;  %s7857_s4 = inlined_call_operand.hbm [shape: bf16[512,128], index: 4, kind: input, shape index: {}]   ;;  %s7858_s5 = inlined_call_operand.hbm [shape: f32[1,128], index: 5, kind: input, shape index: {}]   ;;  %s7859_s6 = inlined_call_operand.hbm [shape: f32[8,128], index: 6, kind: output, shape index: {0}]   ;;  %s7860_s7 = inlined_call_operand.hbm [shape: f32[8,512], index: 7, kind: output, shape index: {1}]  }
   0x1   :  { %15 = vsyncpa [#allocation8 + $0x1], 0 }
   0x2   :  { %16 = vsyncpa [#allocation11], 0 }
   0x3   :  { %17 = vsyncpa [#allocation14], 0 }
   0x4   :  { %18 = vsyncpa [#allocation17], 0 }
   0x5   :  { %19 = vsyncpa [#allocation9], 0 }
   0x6   :  { %21 = vsyncpa [#allocation9 + $0x1], 0 }
   0x7   :  { %22 = vsyncpa [#allocation20], 0 }
   0x8   :  { %24 = vsyncpa [#allocation20 + $0x1], 0  ;;  %s7534_s24 = smov 0   ;;  %s7536_s25 = smov 0  }
   0x9   :  { %s7538_s26 = smov 0  }
   0xa LB: > { %s4647_s27 = sadd.s32 4294967295, %s7479_s26   ;;  %s42_s29 = sadd.s32 1, %s7475_s25  ;;  %s7479_s26 = sphi %s7538_s26, %s30_s26   ;;  %s7475_s25 = sphi %s7536_s25, %s7870_s25   ;;  %s7471_s24 = sphi %s7534_s24, %s7869_s24  }
   0xb   : > { %p4649_p0 = scmp.ge.s32.totalorder %s7479_s26, 1  ;;  %p44_p1 = scmp.ge.s32.totalorder %s42_s29, 2 }
   0xc   : > { %p238_p2 = scmp.lt.s32.totalorder %s7479_s26, 3  ;;  %p7556_p3 = scmp.eq.s32.totalorder %s4647_s27, 0 }
   0xd   : > { %s7872_s29 = smov (%p44_p1, %s42_s29), 0  ;;  %s249_s11 = sshll.u32 %s7854_s1, 4  ;;  %s250_s11 = int_to_ptr.hbm [resolvable:$true] %s249_s11 }
   0xe   : > { %p7562_p4 = pnand %p4649_p0, %p238_p2  ;;  %s7481_s12 = smov [#allocation10]  }
   0xf   : > { %s251_s13 = sshll.u32 %s7481_s12, 4  ;;  %p4655_p7 = scmp.ge.s32.totalorder %s7479_s26, 2  ;;  %s252_s13 = int_to_ptr.vmem [resolvable:$true] %s251_s13 }
  0x10   : > { %p7106_p5 = pneg %p7562_p4  ;;  %s276_s17 = sshll.u32 %s7856_s3, 4  ;;  %s277_s17 = int_to_ptr.hbm [resolvable:$true] %s276_s17 }
  0x11   : > { %s7482_s18 = smov 256   ;;  %s7483_s19 = smov 16  }
  0x12   : > { %p7573_p6 = pnand %p7556_p3, %p7106_p5  ;;  %s7484_s20 = smov [#allocation13]  }
  0x13   : > { %s278_s21 = sshll.u32 %s7484_s20, 4  ;;  %s264_s9 = sshll.u32 %s7855_s2, 4  ;;  %s279_s21 = int_to_ptr.vmem [resolvable:$true] %s278_s21  ;;  %s265_s9 = int_to_ptr.hbm [resolvable:$true] %s264_s9 }
  0x14   : > { %7109 = dma.hbm_to_vmem [thread:$0]  (!%p7573_p6), %s250_s11, 57344, %s252_s13, [#allocation11], %s7482_s18, %s7482_s18, %s7483_s19  }
  0x15   : > { %7115 = dma.hbm_to_vmem [thread:$0]  (!%p7573_p6), %s277_s17, 64, %s279_s21, [#allocation14]  }
  0x16   : > { %s287_s15 = sshll.u32 %s7857_s4, 4  ;;  %s7485_s16 = smov [#allocation12]   ;;  %s288_s15 = int_to_ptr.hbm [resolvable:$true] %s287_s15 }
  0x17   : > { %s266_s28 = sshll.u32 %s7485_s16, 4  ;;  %s7486_s11 = smov [#allocation15]   ;;  %s267_s28 = int_to_ptr.vmem [resolvable:$true] %s266_s28 }
  0x18   : > { %7112 = dma.hbm_to_vmem [thread:$0]  (!%p7573_p6), %s265_s9, 64, %s267_s28, [#allocation11]  }
  0x19   : > { %s289_s13 = sshll.u32 %s7486_s11, 4  ;;  %s7487_s18 = smov 64   ;;  %s290_s13 = int_to_ptr.vmem [resolvable:$true] %s289_s13 }
  0x1a   : > { %s7488_s19 = smov 4   ;;  %s302_s21 = sshll.u32 %s7858_s5, 4  ;;  %s303_s21 = int_to_ptr.hbm [resolvable:$true] %s302_s21 }
  0x1b   : > { %7118 = dma.hbm_to_vmem [thread:$0]  (!%p7573_p6), %s288_s15, 4096, %s290_s13, [#allocation14], %s7487_s18, %s7487_s18, %s7488_s19  }
  0x1c   : > { %s7489_s22 = smov [#allocation16]   ;;  %p7138_p8 = scmp.lt.s32.totalorder %s7479_s26, 2 }
  0x1d   : > { %s304_s23 = sshll.u32 %s7489_s22, 4  ;;  %p7139_p9 = scmp.eq.s32.totalorder %s7479_s26, 0  ;;  %s305_s23 = int_to_ptr.vmem [resolvable:$true] %s304_s23 }
  0x1e   : > { %7121 = dma.hbm_to_vmem [thread:$0]  (!%p7573_p6), %s303_s21, 16, %s305_s23, [#allocation17]  }
  0x1f   : > { %s328_s10 = sshll.u32 %s7853_s0, 4  ;;  %s7490_s12 = smov [#allocation7]   ;;  %s329_s10 = int_to_ptr.hbm [resolvable:$true] %s328_s10 }
  0x20   : > { %s330_s16 = sshll.u32 %s7490_s12, 4  ;;  %p7123_p10 = pnand %p7139_p9, %p7138_p8  ;;  %s331_s16 = int_to_ptr.vmem [resolvable:$true] %s330_s16 }
  0x21   : > { %339 = sbr.rel (%p7562_p4) target bundleno = 907 (0x38b), region = 44 }
  0x22   : > { %7125 = dma.hbm_to_vmem [thread:$0]  (!%p7123_p10), %s329_s10, 1792, %s331_s16, [#allocation8]  }
  0x26   : > { %7446 = dma.done.wait (%p7556_p3), [#allocation8], 1792  }
  0x27   : > { %7448 = vsyncadd (%p7556_p3), [#allocation8], 4294965504 }
  0x28   : > { %7450 = dma.done.wait (%p7556_p3), [#allocation11], 57408  }
  0x29   : > { %7452 = vsyncadd (%p7556_p3), [#allocation11], 4294909888 }
  0x2a   : > { %7454 = dma.done.wait (%p7556_p3), [#allocation14], 4160  }
  0x2b   : > { %7456 = vsyncadd (%p7556_p3), [#allocation14], 4294963136 }
  0x2c   : > { %7458 = dma.done.wait (%p7556_p3), [#allocation17], 16  }
  0x2d   : > { %7460 = vsyncadd (%p7556_p3), [#allocation17], 4294967280  ;;  %p411_p11 = scmp.eq.s32.totalorder %s7471_s24, 0 }
  0x2e   : > { %v7491_v0 = vmov (%p411_p11), 0.0  }
  0x2f   : > { %416 = sbr.rel (!%p411_p11) target bundleno = 55 (0x37), region = 72  ;;  %417 = vst [vmem:[#allocation2 + $0x10] sm:$0xff] (%p411_p11), %v7491_v0 }
  0x30   : > { %418 = vst [vmem:[#allocation2] sm:$0xff] (%p411_p11), %v7491_v0 }
  0x31   : > { %419 = vst [vmem:[#allocation2 + $0x18] sm:$0xff] (%p411_p11), %v7491_v0 }
  0x32   : > { %420 = vst [vmem:[#allocation2 + $0x8] sm:$0xff] (%p411_p11), %v7491_v0 }
  0x33   : > { %421 = vst [vmem:[#allocation3] sm:$0xff] (%p411_p11), %v7491_v0 }
  0x34   : > { %422 = vst [vmem:[#allocation3 + $0x18] sm:$0xff] %v7491_v0 }
  0x35   : > { %423 = vst [vmem:[#allocation3 + $0x8] sm:$0xff] %v7491_v0 }
  0x36   : > { %424 = vst [vmem:[#allocation3 + $0x10] sm:$0xff] %v7491_v0 }
  0x37 PF: > { %p4665_p12 = scmp.ne.s32.totalorder %s7471_s24, 0 }
  0x39   : > { %427 = sbr.rel (%p4665_p12) target bundleno = 657 (0x291), region = 76 }
  0x3e   : > { %v4780_v1 = vld [vmem:[#allocation10 + $0xe0] sm:$0xf]  ;;  %v6624_v2 = vld [vmem:[#allocation10 + $0xec] sm:$0xf0] }
  0x3f   : > { %v4908_v3 = vld [vmem:[#allocation10 + $0x1e0] sm:$0xf]  ;;  %v4781_v4 = vor.u32 %v6624_v2, %v4780_v1  ;;  %v6656_v5 = vld [vmem:[#allocation10 + $0x1ec] sm:$0xf0] }
  0x40   : > { %v5036_v6 = vld [vmem:[#allocation10 + $0x2e0] sm:$0xf]  ;;  %v6688_v7 = vld [vmem:[#allocation10 + $0x2ec] sm:$0xf0]  ;;  %v4909_v8 = vor.u32 %v6656_v5, %v4908_v3 }
  0x41   : > { %v5037_v9 = vor.u32 %v6688_v7, %v5036_v6  ;;  %v5164_v10 = vld [vmem:[#allocation10 + $0x3e0] sm:$0xf]  ;;  %v6720_v11 = vld [vmem:[#allocation10 + $0x3ec] sm:$0xf0]  ;;  %3144 = vmatpush.bf16.msra.mxu0 %v4781_v4 }
  0x42   : > { %v4764_v12 = vld [vmem:[#allocation10 + $0xc0] sm:$0xf]  ;;  %v5165_v13 = vor.u32 %v6720_v11, %v5164_v10  ;;  %v6620_v14 = vld [vmem:[#allocation10 + $0xcc] sm:$0xf0]  ;;  %3157 = vmatpush.bf16.msra.mxu1 %v4909_v8 }
  0x43   : > { %v4892_v15 = vld [vmem:[#allocation10 + $0x1c0] sm:$0xf]  ;;  %v6652_v16 = vld [vmem:[#allocation10 + $0x1cc] sm:$0xf0]  ;;  %3170 = vmatpush.bf16.msra.mxu2 %v5037_v9  ;;  %v4765_v17 = vor.u32 %v6620_v14, %v4764_v12 }
  0x44   : > { %v4893_v18 = vor.u32 %v6652_v16, %v4892_v15  ;;  %v5020_v19 = vld [vmem:[#allocation10 + $0x2c0] sm:$0xf]  ;;  %v6684_v20 = vld [vmem:[#allocation10 + $0x2cc] sm:$0xf0]  ;;  %3183 = vmatpush.bf16.msra.mxu3 %v5165_v13 }
  0x45   : > { %v5148_v21 = vld [vmem:[#allocation10 + $0x3c0] sm:$0xf]  ;;  %v5021_v22 = vor.u32 %v6684_v20, %v5020_v19  ;;  %v6716_v23 = vld [vmem:[#allocation10 + $0x3cc] sm:$0xf0]  ;;  %3145 = vmatpush.bf16.msra.mxu0 %v4765_v17 }
  0x46   : > { %v4748_v24 = vld [vmem:[#allocation10 + $0xa0] sm:$0xf]  ;;  %v6616_v25 = vld [vmem:[#allocation10 + $0xac] sm:$0xf0]  ;;  %v5149_v26 = vor.u32 %v6716_v23, %v5148_v21  ;;  %3158 = vmatpush.bf16.msra.mxu1 %v4893_v18 }
  0x47   : > { %v4876_v27 = vld [vmem:[#allocation10 + $0x1a0] sm:$0xf]  ;;  %v6648_v28 = vld [vmem:[#allocation10 + $0x1ac] sm:$0xf0]  ;;  %v4749_v30 = vor.u32 %v6616_v25, %v4748_v24  ;;  %3171 = vmatpush.bf16.msra.mxu2 %v5021_v22 }
  0x48   : > { %v5004_v29 = vld [vmem:[#allocation10 + $0x2a0] sm:$0xf]  ;;  %v6680_v31 = vld [vmem:[#allocation10 + $0x2ac] sm:$0xf0]  ;;  %v4877_v34 = vor.u32 %v6648_v28, %v4876_v27  ;;  %3184 = vmatpush.bf16.msra.mxu3 %v5149_v26 }
  0x49   : > { %v5132_v32 = vld [vmem:[#allocation10 + $0x3a0] sm:$0xf]  ;;  %v6712_v33 = vld [vmem:[#allocation10 + $0x3ac] sm:$0xf0]  ;;  %v5005_v35 = vor.u32 %v6680_v31, %v5004_v29  ;;  %3146 = vmatpush.bf16.msra.mxu0 %v4749_v30 }
  0x4a   : > { %v4732_v36 = vld [vmem:[#allocation10 + $0x80] sm:$0xf]  ;;  %v6612_v37 = vld [vmem:[#allocation10 + $0x8c] sm:$0xf0]  ;;  %v5133_v39 = vor.u32 %v6712_v33, %v5132_v32  ;;  %3159 = vmatpush.bf16.msra.mxu1 %v4877_v34 }
  0x4b   : > { %v4860_v38 = vld [vmem:[#allocation10 + $0x180] sm:$0xf]  ;;  %v6644_v40 = vld [vmem:[#allocation10 + $0x18c] sm:$0xf0]  ;;  %v4733_v45 = vor.u32 %v6612_v37, %v4732_v36  ;;  %3172 = vmatpush.bf16.msra.mxu2 %v5005_v35 }
  0x4c   : > { %v4988_v41 = vld [vmem:[#allocation10 + $0x280] sm:$0xf]  ;;  %v6676_v42 = vld [vmem:[#allocation10 + $0x28c] sm:$0xf0]  ;;  %v4861_v46 = vor.u32 %v6644_v40, %v4860_v38  ;;  %3185 = vmatpush.bf16.msra.mxu3 %v5133_v39 }
  0x4d   : > { %v5116_v43 = vld [vmem:[#allocation10 + $0x380] sm:$0xf]  ;;  %v6708_v44 = vld [vmem:[#allocation10 + $0x38c] sm:$0xf0]  ;;  %v4989_v47 = vor.u32 %v6676_v42, %v4988_v41  ;;  %3147 = vmatpush.bf16.msra.mxu0 %v4733_v45 }
  0x4e   : > { %v4716_v48 = vld [vmem:[#allocation10 + $0x60] sm:$0xf]  ;;  %v6608_v49 = vld [vmem:[#allocation10 + $0x6c] sm:$0xf0]  ;;  %v5117_v51 = vor.u32 %v6708_v44, %v5116_v43  ;;  %3160 = vmatpush.bf16.msra.mxu1 %v4861_v46 }
  0x4f   : > { %v4844_v50 = vld [vmem:[#allocation10 + $0x160] sm:$0xf]  ;;  %v6640_v52 = vld [vmem:[#allocation10 + $0x16c] sm:$0xf0]  ;;  %v4717_v57 = vor.u32 %v6608_v49, %v4716_v48  ;;  %3173 = vmatpush.bf16.msra.mxu2 %v4989_v47 }
  0x50   : > { %v4972_v53 = vld [vmem:[#allocation10 + $0x260] sm:$0xf]  ;;  %v6672_v54 = vld [vmem:[#allocation10 + $0x26c] sm:$0xf0]  ;;  %v4845_v58 = vor.u32 %v6640_v52, %v4844_v50  ;;  %3186 = vmatpush.bf16.msra.mxu3 %v5117_v51 }
  0x51   : > { %v5100_v55 = vld [vmem:[#allocation10 + $0x360] sm:$0xf]  ;;  %v6704_v56 = vld [vmem:[#allocation10 + $0x36c] sm:$0xf0]  ;;  %v4973_v59 = vor.u32 %v6672_v54, %v4972_v53  ;;  %3148 = vmatpush.bf16.msra.mxu0 %v4717_v57 }
  0x52   : > { %v4700_v60 = vld [vmem:[#allocation10 + $0x40] sm:$0xf]  ;;  %v6604_v61 = vld [vmem:[#allocation10 + $0x4c] sm:$0xf0]  ;;  %v5101_v63 = vor.u32 %v6704_v56, %v5100_v55  ;;  %3161 = vmatpush.bf16.msra.mxu1 %v4845_v58 }
  0x53   : > { %v4828_v62 = vld [vmem:[#allocation10 + $0x140] sm:$0xf]  ;;  %v6636_v0 = vld [vmem:[#allocation10 + $0x14c] sm:$0xf0]  ;;  %v4701_v5 = vor.u32 %v6604_v61, %v4700_v60  ;;  %3174 = vmatpush.bf16.msra.mxu2 %v4973_v59 }
  0x54   : > { %v4956_v1 = vld [vmem:[#allocation10 + $0x240] sm:$0xf]  ;;  %v6668_v2 = vld [vmem:[#allocation10 + $0x24c] sm:$0xf0]  ;;  %v4829_v6 = vor.u32 %v6636_v0, %v4828_v62  ;;  %3187 = vmatpush.bf16.msra.mxu3 %v5101_v63 }
  0x55   : > { %v5084_v3 = vld [vmem:[#allocation10 + $0x340] sm:$0xf]  ;;  %v6700_v4 = vld [vmem:[#allocation10 + $0x34c] sm:$0xf0]  ;;  %v4957_v7 = vor.u32 %v6668_v2, %v4956_v1  ;;  %3149 = vmatpush.bf16.msra.mxu0 %v4701_v5 }
  0x56   : > { %v4684_v8 = vld [vmem:[#allocation10 + $0x20] sm:$0xf]  ;;  %v6600_v9 = vld [vmem:[#allocation10 + $0x2c] sm:$0xf0]  ;;  %v5085_v11 = vor.u32 %v6700_v4, %v5084_v3  ;;  %3162 = vmatpush.bf16.msra.mxu1 %v4829_v6 }
  0x57   : > { %v4812_v10 = vld [vmem:[#allocation10 + $0x120] sm:$0xf]  ;;  %v6632_v12 = vld [vmem:[#allocation10 + $0x12c] sm:$0xf0]  ;;  %v4685_v17 = vor.u32 %v6600_v9, %v4684_v8  ;;  %3175 = vmatpush.bf16.msra.mxu2 %v4957_v7 }
  0x58   : > { %v4940_v13 = vld [vmem:[#allocation10 + $0x220] sm:$0xf]  ;;  %v6664_v14 = vld [vmem:[#allocation10 + $0x22c] sm:$0xf0]  ;;  %v4813_v20 = vor.u32 %v6632_v12, %v4812_v10  ;;  %3188 = vmatpush.bf16.msra.mxu3 %v5085_v11  ;;  %v431_v11 = vld [vmem:[#allocation7 + $0x18] sm:$0xff] }
  0x59   : > { %v5068_v15 = vld [vmem:[#allocation10 + $0x320] sm:$0xf]  ;;  %v6696_v16 = vld [vmem:[#allocation10 + $0x32c] sm:$0xf0]  ;;  %v4941_v21 = vor.u32 %v6664_v14, %v4940_v13  ;;  %3150 = vmatpush.bf16.msra.mxu0 %v4685_v17  ;;  %v429_v12 = vld [vmem:[#allocation7 + $0x8] sm:$0xff]  ;;  %v7632_v17 = vpack.c.bf16 %v431_v11, %v431_v11 }
  0x5a   : > { %v4668_v18 = vld [vmem:[#allocation10] sm:$0xf]  ;;  %v6596_v19 = vld [vmem:[#allocation10 + $0xc] sm:$0xf0]  ;;  %v5069_v25 = vor.u32 %v6696_v16, %v5068_v15  ;;  %3163 = vmatpush.bf16.msra.mxu1 %v4813_v20 }
  0x5b   : > { %v4796_v22 = vld [vmem:[#allocation10 + $0x100] sm:$0xf]  ;;  %v6628_v23 = vld [vmem:[#allocation10 + $0x10c] sm:$0xf0]  ;;  %v4669_v32 = vor.u32 %v6596_v19, %v4668_v18  ;;  %3176 = vmatpush.bf16.msra.mxu2 %v4941_v21  ;;  %v7634_v18 = vpack.c.bf16 %v429_v12, %v429_v12 }
  0x5c   : > { %v4924_v24 = vld [vmem:[#allocation10 + $0x200] sm:$0xf]  ;;  %v6660_v26 = vld [vmem:[#allocation10 + $0x20c] sm:$0xf0]  ;;  %v4797_v36 = vor.u32 %v6628_v23, %v4796_v22  ;;  %3189 = vmatpush.bf16.msra.mxu3 %v5069_v25 }
  0x5d   : > { %v5052_v27 = vld [vmem:[#allocation10 + $0x300] sm:$0xf]  ;;  %v6692_v28 = vld [vmem:[#allocation10 + $0x30c] sm:$0xf0]  ;;  %v4925_v37 = vor.u32 %v6660_v26, %v4924_v24  ;;  %3151 = vmatpush.bf16.msra.mxu0 %v4669_v32 }
  0x5e   : > { %v5292_v29 = vld [vmem:[#allocation10 + $0x4e0] sm:$0xf]  ;;  %v6752_v30 = vld [vmem:[#allocation10 + $0x4ec] sm:$0xf0]  ;;  %v5053_v40 = vor.u32 %v6692_v28, %v5052_v27  ;;  %3164 = vmatpush.bf16.msra.mxu1 %v4797_v36 }
  0x5f   : > { %v5420_v31 = vld [vmem:[#allocation10 + $0x5e0] sm:$0xf]  ;;  %v6784_v33 = vld [vmem:[#allocation10 + $0x5ec] sm:$0xf0]  ;;  %v5293_v41 = vor.u32 %v6752_v30, %v5292_v29  ;;  %3177 = vmatpush.bf16.msra.mxu2 %v4925_v37 }
  0x60   : > { %v5548_v34 = vld [vmem:[#allocation10 + $0x6e0] sm:$0xf]  ;;  %v6816_v35 = vld [vmem:[#allocation10 + $0x6ec] sm:$0xf0]  ;;  %v5421_v42 = vor.u32 %v6784_v33, %v5420_v31  ;;  %3190 = vmatpush.bf16.msra.mxu3 %v5053_v40 }
  0x61   : > { %v5676_v38 = vld [vmem:[#allocation10 + $0x7e0] sm:$0xf]  ;;  %v6848_v39 = vld [vmem:[#allocation10 + $0x7ec] sm:$0xf0]  ;;  %v5549_v43 = vor.u32 %v6816_v35, %v5548_v34  ;;  %3196 = vmatpush.bf16.msrb.mxu0 %v5293_v41  ;;  %3165 = vmatmul.bf16.vlgmr.msra.gmra.mxu1 %v7634_v18 }
  0x62   : > { %v5276_v44 = vld [vmem:[#allocation10 + $0x4c0] sm:$0xf]  ;;  %v6748_v45 = vld [vmem:[#allocation10 + $0x4cc] sm:$0xf0]  ;;  %v5677_v47 = vor.u32 %v6848_v39, %v5676_v38  ;;  %3209 = vmatpush.bf16.msrb.mxu1 %v5421_v42 }
  0x63   : > { %v5404_v46 = vld [vmem:[#allocation10 + $0x5c0] sm:$0xf]  ;;  %v6780_v48 = vld [vmem:[#allocation10 + $0x5cc] sm:$0xf0]  ;;  %v5277_v53 = vor.u32 %v6748_v45, %v5276_v44  ;;  %3222 = vmatpush.bf16.msrb.mxu2 %v5549_v43  ;;  %3191 = vmatmul.bf16.vlgmr.msra.gmra.mxu3 %v7632_v17 }
  0x64   : > { %v5532_v49 = vld [vmem:[#allocation10 + $0x6c0] sm:$0xf]  ;;  %v6812_v50 = vld [vmem:[#allocation10 + $0x6cc] sm:$0xf0]  ;;  %v5405_v55 = vor.u32 %v6780_v48, %v5404_v46  ;;  %3235 = vmatpush.bf16.msrb.mxu3 %v5677_v47 }
  0x65   : > { %v5660_v51 = vld [vmem:[#allocation10 + $0x7c0] sm:$0xf]  ;;  %v6844_v52 = vld [vmem:[#allocation10 + $0x7cc] sm:$0xf0]  ;;  %v5533_v56 = vor.u32 %v6812_v50, %v5532_v49  ;;  %3197 = vmatpush.bf16.msrb.mxu0 %v5277_v53 }
  0x66   : > { %v5260_v54 = vld [vmem:[#allocation10 + $0x4a0] sm:$0xf]  ;;  %v6744_v57 = vld [vmem:[#allocation10 + $0x4ac] sm:$0xf0]  ;;  %v5661_v60 = vor.u32 %v6844_v52, %v5660_v51  ;;  %3210 = vmatpush.bf16.msrb.mxu1 %v5405_v55 }
  0x67   : > { %v5388_v58 = vld [vmem:[#allocation10 + $0x5a0] sm:$0xf]  ;;  %v430_v59 = vld [vmem:[#allocation7 + $0x10] sm:$0xff]  ;;  %v5261_v3 = vor.u32 %v6744_v57, %v5260_v54  ;;  %3223 = vmatpush.bf16.msrb.mxu2 %v5533_v56 }
  0x68   : > { %v6776_v61 = vld [vmem:[#allocation10 + $0x5ac] sm:$0xf0]  ;;  %v5516_v62 = vld [vmem:[#allocation10 + $0x6a0] sm:$0xf]  ;;  %v7627_v0 = vpack.c.bf16 %v430_v59, %v430_v59  ;;  %3236 = vmatpush.bf16.msrb.mxu3 %v5661_v60 }
  0x69   : > { %v6808_v63 = vld [vmem:[#allocation10 + $0x6ac] sm:$0xf0]  ;;  %v5644_v1 = vld [vmem:[#allocation10 + $0x7a0] sm:$0xf]  ;;  %v5389_v7 = vor.u32 %v6776_v61, %v5388_v58  ;;  %3198 = vmatpush.bf16.msrb.mxu0 %v5261_v3 }
  0x6a   : > { %v6840_v2 = vld [vmem:[#allocation10 + $0x7ac] sm:$0xf0]  ;;  %v5244_v4 = vld [vmem:[#allocation10 + $0x480] sm:$0xf]  ;;  %3178 = vmatmul.bf16.vlgmr.msra.gmra.mxu2 %v7627_v0  ;;  %v5517_v8 = vor.u32 %v6808_v63, %v5516_v62 }
  0x6b   : > { %v6740_v5 = vld [vmem:[#allocation10 + $0x48c] sm:$0xf0]  ;;  %v428_v6 = vld [vmem:[#allocation7] sm:$0xff]  ;;  %v5645_v13 = vor.u32 %v6840_v2, %v5644_v1  ;;  %3211 = vmatpush.bf16.msrb.mxu1 %v5389_v7 }
  0x6c   : > { %v5372_v9 = vld [vmem:[#allocation10 + $0x580] sm:$0xf]  ;;  %v7630_v10 = vpack.c.bf16 %v428_v6, %v428_v6  ;;  %v6772_v14 = vld [vmem:[#allocation10 + $0x58c] sm:$0xf0]  ;;  %v5245_v21 = vor.u32 %v6740_v5, %v5244_v4  ;;  %3224 = vmatpush.bf16.msrb.mxu2 %v5517_v8 }
  0x6d   : > { %v5500_v15 = vld [vmem:[#allocation10 + $0x680] sm:$0xf]  ;;  %v6804_v16 = vld [vmem:[#allocation10 + $0x68c] sm:$0xf0]  ;;  %v5373_v22 = vor.u32 %v6772_v14, %v5372_v9  ;;  %3237 = vmatpush.bf16.msrb.mxu3 %v5645_v13 }
  0x6e   : > { %v5628_v19 = vld [vmem:[#allocation10 + $0x780] sm:$0xf]  ;;  %v6836_v20 = vld [vmem:[#allocation10 + $0x78c] sm:$0xf0]  ;;  %3152 = vmatmul.bf16.vlgmr.msra.gmra.mxu0 %v7630_v10  ;;  %v5501_v23 = vor.u32 %v6804_v16, %v5500_v15 }
  0x6f   : > { %v5228_v24 = vld [vmem:[#allocation10 + $0x460] sm:$0xf]  ;;  %v6736_v25 = vld [vmem:[#allocation10 + $0x46c] sm:$0xf0]  ;;  %v5629_v27 = vor.u32 %v6836_v20, %v5628_v19  ;;  %3199 = vmatpush.bf16.msrb.mxu0 %v5245_v21  ;;  %3212 = vmatpush.bf16.msrb.mxu1 %v5373_v22 }
  0x70   : > { %v5356_v26 = vld [vmem:[#allocation10 + $0x560] sm:$0xf]  ;;  %v6768_v28 = vld [vmem:[#allocation10 + $0x56c] sm:$0xf0]  ;;  %v5229_v33 = vor.u32 %v6736_v25, %v5228_v24  ;;  %3225 = vmatpush.bf16.msrb.mxu2 %v5501_v23  ;;  %v435_v25 = vld [vmem:[#allocation7 + $0x38] sm:$0xff] }
  0x71   : > { %v5484_v29 = vld [vmem:[#allocation10 + $0x660] sm:$0xf]  ;;  %v6800_v30 = vld [vmem:[#allocation10 + $0x66c] sm:$0xf0]  ;;  %v5357_v34 = vor.u32 %v6768_v28, %v5356_v26  ;;  %3238 = vmatpush.bf16.msrb.mxu3 %v5629_v27 }
  0x72   : > { %v5612_v31 = vld [vmem:[#allocation10 + $0x760] sm:$0xf]  ;;  %v6832_v32 = vld [vmem:[#allocation10 + $0x76c] sm:$0xf0]  ;;  %v5485_v35 = vor.u32 %v6800_v30, %v5484_v29  ;;  %v433_v30 = vld [vmem:[#allocation7 + $0x28] sm:$0xff] }
  0x73   : > { %v5212_v36 = vld [vmem:[#allocation10 + $0x440] sm:$0xf]  ;;  %v6732_v37 = vld [vmem:[#allocation10 + $0x44c] sm:$0xf0]  ;;  %v5613_v39 = vor.u32 %v6832_v32, %v5612_v31  ;;  %3200 = vmatpush.bf16.msrb.mxu0 %v5229_v33  ;;  %3213 = vmatpush.bf16.msrb.mxu1 %v5357_v34 }
  0x74   : > { %v5340_v38 = vld [vmem:[#allocation10 + $0x540] sm:$0xf]  ;;  %v6764_v40 = vld [vmem:[#allocation10 + $0x54c] sm:$0xf0]  ;;  %v5213_v45 = vor.u32 %v6732_v37, %v5212_v36  ;;  %3226 = vmatpush.bf16.msrb.mxu2 %v5485_v35 }
  0x75   : > { %v5468_v41 = vld [vmem:[#allocation10 + $0x640] sm:$0xf]  ;;  %v6796_v42 = vld [vmem:[#allocation10 + $0x64c] sm:$0xf0]  ;;  %v5341_v46 = vor.u32 %v6764_v40, %v5340_v38  ;;  %3239 = vmatpush.bf16.msrb.mxu3 %v5613_v39  ;;  %v7643_v39 = vpack.c.bf16 %v435_v25, %v435_v25 }
  0x76   : > { %v5596_v43 = vld [vmem:[#allocation10 + $0x740] sm:$0xf]  ;;  %v6828_v44 = vld [vmem:[#allocation10 + $0x74c] sm:$0xf0]  ;;  %v5469_v47 = vor.u32 %v6796_v42, %v5468_v41  ;;  %v7645_v41 = vpack.c.bf16 %v433_v30, %v433_v30 }
  0x77   : > { %v5196_v48 = vld [vmem:[#allocation10 + $0x420] sm:$0xf]  ;;  %v6728_v49 = vld [vmem:[#allocation10 + $0x42c] sm:$0xf0]  ;;  %v5597_v51 = vor.u32 %v6828_v44, %v5596_v43  ;;  %3201 = vmatpush.bf16.msrb.mxu0 %v5213_v45  ;;  %3214 = vmatpush.bf16.msrb.mxu1 %v5341_v46 }
  0x78   : > { %v5324_v50 = vld [vmem:[#allocation10 + $0x520] sm:$0xf]  ;;  %v6760_v52 = vld [vmem:[#allocation10 + $0x52c] sm:$0xf0]  ;;  %v5197_v57 = vor.u32 %v6728_v49, %v5196_v48  ;;  %3227 = vmatpush.bf16.msrb.mxu2 %v5469_v47 }
  0x79   : > { %v5452_v53 = vld [vmem:[#allocation10 + $0x620] sm:$0xf]  ;;  %v6792_v54 = vld [vmem:[#allocation10 + $0x62c] sm:$0xf0]  ;;  %v5325_v60 = vor.u32 %v6760_v52, %v5324_v50  ;;  %3240 = vmatpush.bf16.msrb.mxu3 %v5597_v51 }
  0x7a   : > { %v5580_v55 = vld [vmem:[#allocation10 + $0x720] sm:$0xf]  ;;  %v6824_v56 = vld [vmem:[#allocation10 + $0x72c] sm:$0xf0]  ;;  %v5453_v61 = vor.u32 %v6792_v54, %v5452_v53 }
  0x7b   : > { %v5180_v58 = vld [vmem:[#allocation10 + $0x400] sm:$0xf]  ;;  %v6724_v59 = vld [vmem:[#allocation10 + $0x40c] sm:$0xf0]  ;;  %v5581_v2 = vor.u32 %v6824_v56, %v5580_v55  ;;  %3202 = vmatpush.bf16.msrb.mxu0 %v5197_v57  ;;  %3215 = vmatpush.bf16.msrb.mxu1 %v5325_v60 }
  0x7c   : > { %v5308_v62 = vld [vmem:[#allocation10 + $0x500] sm:$0xf]  ;;  %v6756_v63 = vld [vmem:[#allocation10 + $0x50c] sm:$0xf0]  ;;  %v5181_v9 = vor.u32 %v6724_v59, %v5180_v58  ;;  %3228 = vmatpush.bf16.msrb.mxu2 %v5453_v61 }
  0x7d   : > { %v5436_v1 = vld [vmem:[#allocation10 + $0x600] sm:$0xf]  ;;  %v6788_v3 = vld [vmem:[#allocation10 + $0x60c] sm:$0xf0]  ;;  %v5309_v14 = vor.u32 %v6756_v63, %v5308_v62  ;;  %3241 = vmatpush.bf16.msrb.mxu3 %v5581_v2 }
  0x7e   : > { %v5564_v4 = vld [vmem:[#allocation10 + $0x700] sm:$0xf]  ;;  %v6820_v5 = vld [vmem:[#allocation10 + $0x70c] sm:$0xf0]  ;;  %v5437_v15 = vor.u32 %v6788_v3, %v5436_v1 }
  0x7f   : > { %v5804_v6 = vld [vmem:[#allocation10 + $0x8e0] sm:$0xf]  ;;  %v6880_v7 = vld [vmem:[#allocation10 + $0x8ec] sm:$0xf0]  ;;  %v5565_v21 = vor.u32 %v6820_v5, %v5564_v4  ;;  %3203 = vmatpush.bf16.msrb.mxu0 %v5181_v9  ;;  %3216 = vmatpush.bf16.msrb.mxu1 %v5309_v14 }
  0x80   : > { %v5932_v8 = vld [vmem:[#allocation10 + $0x9e0] sm:$0xf]  ;;  %v6912_v11 = vld [vmem:[#allocation10 + $0x9ec] sm:$0xf0]  ;;  %v5805_v22 = vor.u32 %v6880_v7, %v5804_v6  ;;  %3229 = vmatpush.bf16.msrb.mxu2 %v5437_v15 }
  0x81   : > { %v6060_v12 = vld [vmem:[#allocation10 + $0xae0] sm:$0xf]  ;;  %v6944_v13 = vld [vmem:[#allocation10 + $0xaec] sm:$0xf0]  ;;  %v5933_v26 = vor.u32 %v6912_v11, %v5932_v8  ;;  %3242 = vmatpush.bf16.msrb.mxu3 %v5565_v21 }
  0x82   : > { %v6188_v16 = vld [vmem:[#allocation10 + $0xbe0] sm:$0xf]  ;;  %v6976_v19 = vld [vmem:[#allocation10 + $0xbec] sm:$0xf0]  ;;  %v6061_v27 = vor.u32 %v6944_v13, %v6060_v12  ;;  %3217 = vmatmul.bf16.vlgmr.msrb.gmra.mxu1 %v7645_v41 }
  0x83   : > { %v434_v20 = vld [vmem:[#allocation7 + $0x30] sm:$0xff]  ;;  %v5788_v23 = vld [vmem:[#allocation10 + $0x8c0] sm:$0xf]  ;;  %v6189_v31 = vor.u32 %v6976_v19, %v6188_v16  ;;  %3248 = vmatpush.bf16.msra.mxu0 %v5805_v22  ;;  %3261 = vmatpush.bf16.msra.mxu1 %v5933_v26 }
  0x84   : > { %v432_v24 = vld [vmem:[#allocation7 + $0x20] sm:$0xff]  ;;  %v6876_v28 = vld [vmem:[#allocation10 + $0x8cc] sm:$0xf0]  ;;  %v7639_v35 = vpack.c.bf16 %v434_v20, %v434_v20  ;;  %3274 = vmatpush.bf16.msra.mxu2 %v6061_v27  ;;  %3243 = vmatmul.bf16.vlgmr.msrb.gmra.mxu3 %v7643_v39 }
  0x85   : > { %v5916_v29 = vld [vmem:[#allocation10 + $0x9c0] sm:$0xf]  ;;  %v6908_v32 = vld [vmem:[#allocation10 + $0x9cc] sm:$0xf0]  ;;  %v7641_v38 = vpack.c.bf16 %v432_v24, %v432_v24  ;;  %v5789_v40 = vor.u32 %v6876_v28, %v5788_v23  ;;  %3287 = vmatpush.bf16.msra.mxu3 %v6189_v31 }
  0x86   : > { %v6044_v33 = vld [vmem:[#allocation10 + $0xac0] sm:$0xf]  ;;  %v6940_v34 = vld [vmem:[#allocation10 + $0xacc] sm:$0xf0]  ;;  %v5917_v42 = vor.u32 %v6908_v32, %v5916_v29  ;;  %3230 = vmatmul.bf16.vlgmr.msrb.gmra.mxu2 %v7639_v35 }
  0x87   : > { %v6172_v36 = vld [vmem:[#allocation10 + $0xbc0] sm:$0xf]  ;;  %v6972_v37 = vld [vmem:[#allocation10 + $0xbcc] sm:$0xf0]  ;;  %v6045_v43 = vor.u32 %v6940_v34, %v6044_v33  ;;  %3204 = vmatmul.bf16.vlgmr.msrb.gmra.mxu0 %v7641_v38 }
  0x88   : > { %v5772_v44 = vld [vmem:[#allocation10 + $0x8a0] sm:$0xf]  ;;  %v6872_v45 = vld [vmem:[#allocation10 + $0x8ac] sm:$0xf0]  ;;  %v6173_v47 = vor.u32 %v6972_v37, %v6172_v36  ;;  %3249 = vmatpush.bf16.msra.mxu0 %v5789_v40  ;;  %3262 = vmatpush.bf16.msra.mxu1 %v5917_v42 }
  0x89   : > { %v5900_v46 = vld [vmem:[#allocation10 + $0x9a0] sm:$0xf]  ;;  %v6904_v48 = vld [vmem:[#allocation10 + $0x9ac] sm:$0xf0]  ;;  %v5773_v53 = vor.u32 %v6872_v45, %v5772_v44  ;;  %3275 = vmatpush.bf16.msra.mxu2 %v6045_v43 }
  0x8a   : > { %v6028_v49 = vld [vmem:[#allocation10 + $0xaa0] sm:$0xf]  ;;  %v6936_v50 = vld [vmem:[#allocation10 + $0xaac] sm:$0xf0]  ;;  %v5901_v54 = vor.u32 %v6904_v48, %v5900_v46  ;;  %3288 = vmatpush.bf16.msra.mxu3 %v6173_v47 }
  0x8b   : > { %v6156_v51 = vld [vmem:[#allocation10 + $0xba0] sm:$0xf]  ;;  %v6968_v52 = vld [vmem:[#allocation10 + $0xbac] sm:$0xf0]  ;;  %v6029_v55 = vor.u32 %v6936_v50, %v6028_v49 }
  0x8c   : > { %v5756_v56 = vld [vmem:[#allocation10 + $0x880] sm:$0xf]  ;;  %v6868_v57 = vld [vmem:[#allocation10 + $0x88c] sm:$0xf0]  ;;  %v6157_v59 = vor.u32 %v6968_v52, %v6156_v51  ;;  %3250 = vmatpush.bf16.msra.mxu0 %v5773_v53  ;;  %3263 = vmatpush.bf16.msra.mxu1 %v5901_v54 }
  0x8d   : > { %v5884_v58 = vld [vmem:[#allocation10 + $0x980] sm:$0xf]  ;;  %v6900_v60 = vld [vmem:[#allocation10 + $0x98c] sm:$0xf0]  ;;  %v5757_v2 = vor.u32 %v6868_v57, %v5756_v56  ;;  %3276 = vmatpush.bf16.msra.mxu2 %v6029_v55 }
  0x8e   : > { %v6012_v61 = vld [vmem:[#allocation10 + $0xa80] sm:$0xf]  ;;  %v6932_v62 = vld [vmem:[#allocation10 + $0xa8c] sm:$0xf0]  ;;  %v5885_v3 = vor.u32 %v6900_v60, %v5884_v58  ;;  %3289 = vmatpush.bf16.msra.mxu3 %v6157_v59 }
  0x8f   : > { %v6140_v63 = vld [vmem:[#allocation10 + $0xb80] sm:$0xf]  ;;  %v6964_v1 = vld [vmem:[#allocation10 + $0xb8c] sm:$0xf0]  ;;  %v6013_v4 = vor.u32 %v6932_v62, %v6012_v61  ;;  %v6622_v62 = vld [vmem:[#allocation10 + $0xe4] sm:$0xf] }
  0x90   : > { %v5740_v5 = vld [vmem:[#allocation10 + $0x860] sm:$0xf]  ;;  %v6864_v6 = vld [vmem:[#allocation10 + $0x86c] sm:$0xf0]  ;;  %v6141_v8 = vor.u32 %v6964_v1, %v6140_v63  ;;  %3251 = vmatpush.bf16.msra.mxu0 %v5757_v2  ;;  %3264 = vmatpush.bf16.msra.mxu1 %v5885_v3  ;;  %v4782_v63 = vld [vmem:[#allocation10 + $0xf0] sm:$0xf0] }
  0x91   : > { %v5868_v7 = vld [vmem:[#allocation10 + $0x960] sm:$0xf]  ;;  %v6896_v9 = vld [vmem:[#allocation10 + $0x96c] sm:$0xf0]  ;;  %v5741_v15 = vor.u32 %v6864_v6, %v5740_v5  ;;  %3277 = vmatpush.bf16.msra.mxu2 %v6013_v4  ;;  %v6654_v3 = vld [vmem:[#allocation10 + $0x1e4] sm:$0xf] }
  0x92   : > { %v5996_v11 = vld [vmem:[#allocation10 + $0xa60] sm:$0xf]  ;;  %v6928_v12 = vld [vmem:[#allocation10 + $0xa6c] sm:$0xf0]  ;;  %v5869_v16 = vor.u32 %v6896_v9, %v5868_v7  ;;  %3290 = vmatpush.bf16.msra.mxu3 %v6141_v8  ;;  %v4910_v4 = vld [vmem:[#allocation10 + $0x1f0] sm:$0xf0] }
  0x93   : > { %v6124_v13 = vld [vmem:[#allocation10 + $0xb60] sm:$0xf]  ;;  %v6960_v14 = vld [vmem:[#allocation10 + $0xb6c] sm:$0xf0]  ;;  %v5997_v19 = vor.u32 %v6928_v12, %v5996_v11  ;;  %v437_v9 = vld [vmem:[#allocation7 + $0x48] sm:$0xff] }
  0x94   : > { %v5724_v20 = vld [vmem:[#allocation10 + $0x840] sm:$0xf]  ;;  %v6860_v21 = vld [vmem:[#allocation10 + $0x84c] sm:$0xf0]  ;;  %v6125_v23 = vor.u32 %v6960_v14, %v6124_v13  ;;  %3252 = vmatpush.bf16.msra.mxu0 %v5741_v15  ;;  %3265 = vmatpush.bf16.msra.mxu1 %v5869_v16  ;;  %v439_v11 = vld [vmem:[#allocation7 + $0x58] sm:$0xff]  ;;  %v4785_v13 = vor.u32 %v6622_v62, %v4782_v63 }
  0x95   : > { %v5852_v22 = vld [vmem:[#allocation10 + $0x940] sm:$0xf]  ;;  %v6892_v24 = vld [vmem:[#allocation10 + $0x94c] sm:$0xf0]  ;;  %v5725_v29 = vor.u32 %v6860_v21, %v5724_v20  ;;  %3278 = vmatpush.bf16.msra.mxu2 %v5997_v19  ;;  %v4913_v19 = vor.u32 %v6654_v3, %v4910_v4  ;;  %v4718_v3 = vld [vmem:[#allocation10 + $0x70] sm:$0xf0] }
  0x96   : > { %v5980_v25 = vld [vmem:[#allocation10 + $0xa40] sm:$0xf]  ;;  %v6924_v26 = vld [vmem:[#allocation10 + $0xa4c] sm:$0xf0]  ;;  %v5853_v30 = vor.u32 %v6892_v24, %v5852_v22  ;;  %3291 = vmatpush.bf16.msra.mxu3 %v6125_v23  ;;  %v6618_v22 = vld [vmem:[#allocation10 + $0xc4] sm:$0xf] }
  0x97   : > { %v6108_v27 = vld [vmem:[#allocation10 + $0xb40] sm:$0xf]  ;;  %v6956_v28 = vld [vmem:[#allocation10 + $0xb4c] sm:$0xf0]  ;;  %v5981_v31 = vor.u32 %v6924_v26, %v5980_v25  ;;  %v4766_v23 = vld [vmem:[#allocation10 + $0xd0] sm:$0xf0]  ;;  %v7655_v25 = vpack.c.bf16 %v437_v9, %v437_v9 }
  0x98   : > { %v5708_v32 = vld [vmem:[#allocation10 + $0x820] sm:$0xf]  ;;  %v6856_v33 = vld [vmem:[#allocation10 + $0x82c] sm:$0xf0]  ;;  %v6109_v36 = vor.u32 %v6956_v28, %v6108_v27  ;;  %3253 = vmatpush.bf16.msra.mxu0 %v5725_v29  ;;  %3266 = vmatpush.bf16.msra.mxu1 %v5853_v30  ;;  %v6650_v26 = vld [vmem:[#allocation10 + $0x1c4] sm:$0xf]  ;;  %v7657_v28 = vpack.c.bf16 %v439_v11, %v439_v11 }
  0x99   : > { %v5836_v34 = vld [vmem:[#allocation10 + $0x920] sm:$0xf]  ;;  %v6888_v37 = vld [vmem:[#allocation10 + $0x92c] sm:$0xf0]  ;;  %v5709_v45 = vor.u32 %v6856_v33, %v5708_v32  ;;  %3279 = vmatpush.bf16.msra.mxu2 %v5981_v31  ;;  %v4894_v27 = vld [vmem:[#allocation10 + $0x1d0] sm:$0xf0]  ;;  %v4769_v31 = vor.u32 %v6618_v22, %v4766_v23 }
  0x9a   : > { %v5964_v40 = vld [vmem:[#allocation10 + $0xa20] sm:$0xf]  ;;  %v6920_v42 = vld [vmem:[#allocation10 + $0xa2c] sm:$0xf0]  ;;  %v5837_v48 = vor.u32 %v6888_v37, %v5836_v34  ;;  %3292 = vmatpush.bf16.msra.mxu3 %v6109_v36  ;;  %v4897_v36 = vor.u32 %v6650_v26, %v4894_v27  ;;  %v6638_v4 = vld [vmem:[#allocation10 + $0x164] sm:$0xf] }
  0x9b   : > { %v6092_v43 = vld [vmem:[#allocation10 + $0xb20] sm:$0xf]  ;;  %v6952_v44 = vld [vmem:[#allocation10 + $0xb2c] sm:$0xf0]  ;;  %v5965_v49 = vor.u32 %v6920_v42, %v5964_v40  ;;  %v6614_v40 = vld [vmem:[#allocation10 + $0xa4] sm:$0xf] }
  0x9c   : > { %v5692_v46 = vld [vmem:[#allocation10 + $0x800] sm:$0xf]  ;;  %v6852_v47 = vld [vmem:[#allocation10 + $0x80c] sm:$0xf0]  ;;  %v6093_v53 = vor.u32 %v6952_v44, %v6092_v43  ;;  %3254 = vmatpush.bf16.msra.mxu0 %v5709_v45  ;;  %3267 = vmatpush.bf16.msra.mxu1 %v5837_v48  ;;  %v4750_v42 = vld [vmem:[#allocation10 + $0xb0] sm:$0xf0] }
  0x9d   : > { %v5820_v50 = vld [vmem:[#allocation10 + $0x900] sm:$0xf]  ;;  %v6884_v51 = vld [vmem:[#allocation10 + $0x90c] sm:$0xf0]  ;;  %v5693_v60 = vor.u32 %v6852_v47, %v5692_v46  ;;  %3280 = vmatpush.bf16.msra.mxu2 %v5965_v49  ;;  %v6646_v43 = vld [vmem:[#allocation10 + $0x1a4] sm:$0xf]  ;;  %v4753_v47 = vor.u32 %v6614_v40, %v4750_v42 }
  0x9e   : > { %v5948_v52 = vld [vmem:[#allocation10 + $0xa00] sm:$0xf]  ;;  %v6916_v54 = vld [vmem:[#allocation10 + $0xa0c] sm:$0xf0]  ;;  %v5821_v1 = vor.u32 %v6884_v51, %v5820_v50  ;;  %3293 = vmatpush.bf16.msra.mxu3 %v6093_v53  ;;  %v4878_v44 = vld [vmem:[#allocation10 + $0x1b0] sm:$0xf0] }
  0x9f   : > { %v6076_v55 = vld [vmem:[#allocation10 + $0xb00] sm:$0xf]  ;;  %v6948_v56 = vld [vmem:[#allocation10 + $0xb0c] sm:$0xf0]  ;;  %v5949_v2 = vor.u32 %v6916_v54, %v5948_v52  ;;  %v4881_v51 = vor.u32 %v6646_v43, %v4878_v44  ;;  %v6610_v53 = vld [vmem:[#allocation10 + $0x84] sm:$0xf] }
  0xa0   : > { %v6316_v57 = vld [vmem:[#allocation10 + $0xce0] sm:$0xf]  ;;  %v7008_v58 = vld [vmem:[#allocation10 + $0xcec] sm:$0xf0]  ;;  %v6077_v6 = vor.u32 %v6948_v56, %v6076_v55  ;;  %3255 = vmatpush.bf16.msra.mxu0 %v5693_v60  ;;  %3268 = vmatpush.bf16.msra.mxu1 %v5821_v1  ;;  %v4734_v54 = vld [vmem:[#allocation10 + $0x90] sm:$0xf0] }
  0xa1   : > { %v6444_v59 = vld [vmem:[#allocation10 + $0xde0] sm:$0xf]  ;;  %v7040_v61 = vld [vmem:[#allocation10 + $0xdec] sm:$0xf0]  ;;  %v6317_v7 = vor.u32 %v7008_v58, %v6316_v57  ;;  %3281 = vmatpush.bf16.msra.mxu2 %v5949_v2  ;;  %v6642_v55 = vld [vmem:[#allocation10 + $0x184] sm:$0xf] }
  0xa2   : > { %v436_v5 = vld [vmem:[#allocation7 + $0x40] sm:$0xff]  ;;  %v438_v8 = vld [vmem:[#allocation7 + $0x50] sm:$0xff]  ;;  %v6445_v12 = vor.u32 %v7040_v61, %v6444_v59  ;;  %3294 = vmatpush.bf16.msra.mxu3 %v6077_v6  ;;  %v4737_v59 = vor.u32 %v6610_v53, %v4734_v54 }
  0xa3   : > { %v6300_v14 = vld [vmem:[#allocation10 + $0xcc0] sm:$0xf]  ;;  %v7004_v15 = vld [vmem:[#allocation10 + $0xccc] sm:$0xf0]  ;;  %v7651_v20 = vpack.c.bf16 %v436_v5, %v436_v5  ;;  %v7653_v24 = vpack.c.bf16 %v438_v8, %v438_v8  ;;  %3269 = vmatmul.bf16.vlgmr.msra.gmra.mxu1 %v7655_v25  ;;  %v4862_v56 = vld [vmem:[#allocation10 + $0x190] sm:$0xf0] }
  0xa4   : > { %v6428_v16 = vld [vmem:[#allocation10 + $0xdc0] sm:$0xf]  ;;  %v7036_v21 = vld [vmem:[#allocation10 + $0xdcc] sm:$0xf0]  ;;  %3300 = vmatpush.bf16.msrb.mxu0 %v6317_v7  ;;  %v6301_v29 = vor.u32 %v7004_v15, %v6300_v14  ;;  %3313 = vmatpush.bf16.msrb.mxu1 %v6445_v12  ;;  %v4865_v63 = vor.u32 %v6642_v55, %v4862_v56  ;;  %v6606_v2 = vld [vmem:[#allocation10 + $0x64] sm:$0xf] }
  0xa5   : > { %3326 = vmatpush.bf16.msrb.mxu2 %v4785_v13  ;;  %v6429_v30 = vor.u32 %v7036_v21, %v6428_v16  ;;  %v6284_v32 = vld [vmem:[#allocation10 + $0xca0] sm:$0xf]  ;;  %v7000_v33 = vld [vmem:[#allocation10 + $0xcac] sm:$0xf0]  ;;  %3256 = vmatmul.bf16.vlgmr.msra.gmra.mxu0 %v7651_v20  ;;  %v4846_v5 = vld [vmem:[#allocation10 + $0x170] sm:$0xf0]  ;;  %v4721_v8 = vor.u32 %v6606_v2, %v4718_v3 }
  0xa6   : > { %v6412_v34 = vld [vmem:[#allocation10 + $0xda0] sm:$0xf]  ;;  %3339 = vmatpush.bf16.msrb.mxu3 %v4913_v19  ;;  %v7032_v37 = vld [vmem:[#allocation10 + $0xdac] sm:$0xf0]  ;;  %3282 = vmatmul.bf16.vlgmr.msra.gmra.mxu2 %v7653_v24  ;;  %v6285_v45 = vor.u32 %v7000_v33, %v6284_v32  ;;  %v4849_v13 = vor.u32 %v6638_v4, %v4846_v5  ;;  %v6602_v15 = vld [vmem:[#allocation10 + $0x44] sm:$0xf] }
  0xa7   : > { %3295 = vmatmul.bf16.vlgmr.msra.gmra.mxu3 %v7657_v28  ;;  %v6413_v46 = vor.u32 %v7032_v37, %v6412_v34  ;;  %v6268_v48 = vld [vmem:[#allocation10 + $0xc80] sm:$0xf]  ;;  %v6996_v49 = vld [vmem:[#allocation10 + $0xc8c] sm:$0xf0]  ;;  %v4702_v16 = vld [vmem:[#allocation10 + $0x50] sm:$0xf0] }
  0xa8   : > { %3301 = vmatpush.bf16.msrb.mxu0 %v6301_v29  ;;  %3314 = vmatpush.bf16.msrb.mxu1 %v6429_v30  ;;  %v6396_v50 = vld [vmem:[#allocation10 + $0xd80] sm:$0xf]  ;;  %v7028_v52 = vld [vmem:[#allocation10 + $0xd8c] sm:$0xf0]  ;;  %v6269_v57 = vor.u32 %v6996_v49, %v6268_v48  ;;  %v6634_v19 = vld [vmem:[#allocation10 + $0x144] sm:$0xf]  ;;  %v4705_v26 = vor.u32 %v6602_v15, %v4702_v16 }
  0xa9   : > { %3327 = vmatpush.bf16.msrb.mxu2 %v4769_v31  ;;  %v6397_v58 = vor.u32 %v7028_v52, %v6396_v50  ;;  %v6252_v60 = vld [vmem:[#allocation10 + $0xc60] sm:$0xf]  ;;  %v6992_v61 = vld [vmem:[#allocation10 + $0xc6c] sm:$0xf0]  ;;  %v4830_v21 = vld [vmem:[#allocation10 + $0x150] sm:$0xf0] }
  0xaa   : > { %3340 = vmatpush.bf16.msrb.mxu3 %v4897_v36  ;;  %v6380_v62 = vld [vmem:[#allocation10 + $0xd60] sm:$0xf]  ;;  %v7024_v1 = vld [vmem:[#allocation10 + $0xd6c] sm:$0xf0]  ;;  %v6253_v6 = vor.u32 %v6992_v61, %v6252_v60  ;;  %v4833_v31 = vor.u32 %v6634_v19, %v4830_v21  ;;  %v6598_v33 = vld [vmem:[#allocation10 + $0x24] sm:$0xf] }
  0xab   : > { %v6381_v7 = vor.u32 %v7024_v1, %v6380_v62  ;;  %v6236_v9 = vld [vmem:[#allocation10 + $0xc40] sm:$0xf]  ;;  %v6988_v11 = vld [vmem:[#allocation10 + $0xc4c] sm:$0xf0]  ;;  %v4686_v34 = vld [vmem:[#allocation10 + $0x30] sm:$0xf0] }
  0xac   : > { %3302 = vmatpush.bf16.msrb.mxu0 %v6285_v45  ;;  %3315 = vmatpush.bf16.msrb.mxu1 %v6413_v46  ;;  %v6364_v12 = vld [vmem:[#allocation10 + $0xd40] sm:$0xf]  ;;  %v7020_v14 = vld [vmem:[#allocation10 + $0xd4c] sm:$0xf0]  ;;  %v6237_v22 = vor.u32 %v6988_v11, %v6236_v9  ;;  %v6630_v36 = vld [vmem:[#allocation10 + $0x124] sm:$0xf]  ;;  %v4689_v45 = vor.u32 %v6598_v33, %v4686_v34 }
  0xad   : > { %3328 = vmatpush.bf16.msrb.mxu2 %v4753_v47  ;;  %v6365_v23 = vor.u32 %v7020_v14, %v6364_v12  ;;  %v6220_v27 = vld [vmem:[#allocation10 + $0xc20] sm:$0xf]  ;;  %v6984_v29 = vld [vmem:[#allocation10 + $0xc2c] sm:$0xf0]  ;;  %v4814_v37 = vld [vmem:[#allocation10 + $0x130] sm:$0xf0] }
  0xae   : > { %3341 = vmatpush.bf16.msrb.mxu3 %v4881_v51  ;;  %v6348_v30 = vld [vmem:[#allocation10 + $0xd20] sm:$0xf]  ;;  %v7016_v32 = vld [vmem:[#allocation10 + $0xd2c] sm:$0xf0]  ;;  %v6221_v40 = vor.u32 %v6984_v29, %v6220_v27  ;;  %v6594_v48 = vld [vmem:[#allocation10 + $0x4] sm:$0xf]  ;;  %v4817_v49 = vor.u32 %v6630_v36, %v4814_v37 }
  0xaf   : > { %v6204_v42 = vld [vmem:[#allocation10 + $0xc00] sm:$0xf]  ;;  %v6980_v43 = vld [vmem:[#allocation10 + $0xc0c] sm:$0xf0]  ;;  %v6349_v44 = vor.u32 %v7016_v32, %v6348_v30  ;;  %v4670_v50 = vld [vmem:[#allocation10 + $0x10] sm:$0xf0] }
  0xb0   : > { %3303 = vmatpush.bf16.msrb.mxu0 %v6269_v57  ;;  %3316 = vmatpush.bf16.msrb.mxu1 %v6397_v58  ;;  %v6332_v46 = vld [vmem:[#allocation10 + $0xd00] sm:$0xf]  ;;  %v7012_v47 = vld [vmem:[#allocation10 + $0xd0c] sm:$0xf0]  ;;  %v6626_v51 = vld [vmem:[#allocation10 + $0x104] sm:$0xf]  ;;  %v6205_v56 = vor.u32 %v6980_v43, %v6204_v42  ;;  %v4673_v61 = vor.u32 %v6594_v48, %v4670_v50 }
  0xb1   : > { %3329 = vmatpush.bf16.msrb.mxu2 %v4737_v59  ;;  %v4798_v52 = vld [vmem:[#allocation10 + $0x110] sm:$0xf0]  ;;  %v6686_v53 = vld [vmem:[#allocation10 + $0x2e4] sm:$0xf]  ;;  %v6333_v60 = vor.u32 %v7012_v47, %v6332_v46  ;;  %v441_v4 = vld [vmem:[#allocation7 + $0x68] sm:$0xff] }
  0xb2   : > { %3342 = vmatpush.bf16.msrb.mxu3 %v4865_v63  ;;  %v5038_v54 = vld [vmem:[#allocation10 + $0x2f0] sm:$0xf0]  ;;  %v6718_v55 = vld [vmem:[#allocation10 + $0x3e4] sm:$0xf]  ;;  %v4801_v2 = vor.u32 %v6626_v51, %v4798_v52  ;;  %v7665_v16 = vpack.c.bf16 %v441_v4, %v441_v4 }
  0xb3   : > { %v5166_v57 = vld [vmem:[#allocation10 + $0x3f0] sm:$0xf0]  ;;  %v6750_v58 = vld [vmem:[#allocation10 + $0x4e4] sm:$0xf]  ;;  %v5041_v3 = vor.u32 %v6686_v53, %v5038_v54 }
  0xb4   : > { %3304 = vmatpush.bf16.msrb.mxu0 %v6253_v6  ;;  %3317 = vmatpush.bf16.msrb.mxu1 %v6381_v7  ;;  %v5294_v59 = vld [vmem:[#allocation10 + $0x4f0] sm:$0xf0]  ;;  %v6782_v62 = vld [vmem:[#allocation10 + $0x5e4] sm:$0xf]  ;;  %v5169_v5 = vor.u32 %v6718_v55, %v5166_v57 }
  0xb5   : > { %3330 = vmatpush.bf16.msrb.mxu2 %v4721_v8  ;;  %v5422_v63 = vld [vmem:[#allocation10 + $0x5f0] sm:$0xf0]  ;;  %v440_v1 = vld [vmem:[#allocation7 + $0x60] sm:$0xff]  ;;  %v5297_v6 = vor.u32 %v6750_v58, %v5294_v59 }
  0xb6   : > { %3343 = vmatpush.bf16.msrb.mxu3 %v4849_v13  ;;  %v6682_v7 = vld [vmem:[#allocation10 + $0x2c4] sm:$0xf]  ;;  %v5022_v8 = vld [vmem:[#allocation10 + $0x2d0] sm:$0xf0]  ;;  %v5425_v11 = vor.u32 %v6782_v62, %v5422_v63  ;;  %v7663_v12 = vpack.c.bf16 %v440_v1, %v440_v1 }
  0xb7   : > { %v6714_v9 = vld [vmem:[#allocation10 + $0x3c4] sm:$0xf]  ;;  %v5150_v13 = vld [vmem:[#allocation10 + $0x3d0] sm:$0xf0] }
  0xb8   : > { %3305 = vmatpush.bf16.msrb.mxu0 %v6237_v22  ;;  %3318 = vmatpush.bf16.msrb.mxu1 %v6365_v23  ;;  %v6746_v14 = vld [vmem:[#allocation10 + $0x4c4] sm:$0xf]  ;;  %v5278_v15 = vld [vmem:[#allocation10 + $0x4d0] sm:$0xf0]  ;;  %v5025_v22 = vor.u32 %v6682_v7, %v5022_v8  ;;  %v5153_v23 = vor.u32 %v6714_v9, %v5150_v13 }
  0xb9   : > { %3331 = vmatpush.bf16.msrb.mxu2 %v4705_v26  ;;  %v6778_v19 = vld [vmem:[#allocation10 + $0x5c4] sm:$0xf]  ;;  %v5406_v21 = vld [vmem:[#allocation10 + $0x5d0] sm:$0xf0]  ;;  %v5281_v26 = vor.u32 %v6746_v14, %v5278_v15 }
  0xba   : > { %3344 = vmatpush.bf16.msrb.mxu3 %v4833_v31  ;;  %v6678_v27 = vld [vmem:[#allocation10 + $0x2a4] sm:$0xf]  ;;  %v5006_v29 = vld [vmem:[#allocation10 + $0x2b0] sm:$0xf0]  ;;  %v5409_v31 = vor.u32 %v6778_v19, %v5406_v21 }
  0xbb   : > { %v6710_v30 = vld [vmem:[#allocation10 + $0x3a4] sm:$0xf]  ;;  %v5134_v32 = vld [vmem:[#allocation10 + $0x3b0] sm:$0xf0] }
  0xbc   : > { %3306 = vmatpush.bf16.msrb.mxu0 %v6221_v40  ;;  %3319 = vmatpush.bf16.msrb.mxu1 %v6349_v44  ;;  %v6742_v33 = vld [vmem:[#allocation10 + $0x4a4] sm:$0xf]  ;;  %v5262_v34 = vld [vmem:[#allocation10 + $0x4b0] sm:$0xf0]  ;;  %v5009_v40 = vor.u32 %v6678_v27, %v5006_v29  ;;  %v5137_v42 = vor.u32 %v6710_v30, %v5134_v32 }
  0xbd   : > { %3332 = vmatpush.bf16.msrb.mxu2 %v4689_v45  ;;  %v6774_v36 = vld [vmem:[#allocation10 + $0x5a4] sm:$0xf]  ;;  %v5390_v37 = vld [vmem:[#allocation10 + $0x5b0] sm:$0xf0]  ;;  %v5265_v43 = vor.u32 %v6742_v33, %v5262_v34 }
  0xbe   : > { %3345 = vmatpush.bf16.msrb.mxu3 %v4817_v49  ;;  %v6674_v44 = vld [vmem:[#allocation10 + $0x284] sm:$0xf]  ;;  %v4990_v45 = vld [vmem:[#allocation10 + $0x290] sm:$0xf0]  ;;  %v5393_v47 = vor.u32 %v6774_v36, %v5390_v37 }
  0xbf   : > { %v6706_v46 = vld [vmem:[#allocation10 + $0x384] sm:$0xf]  ;;  %v5118_v48 = vld [vmem:[#allocation10 + $0x390] sm:$0xf0]  ;;  %v4993_v53 = vor.u32 %v6674_v44, %v4990_v45 }
  0xc0   : > { %3307 = vmatpush.bf16.msrb.mxu0 %v6205_v56  ;;  %3320 = vmatpush.bf16.msrb.mxu1 %v6333_v60  ;;  %v6738_v49 = vld [vmem:[#allocation10 + $0x484] sm:$0xf]  ;;  %v5246_v50 = vld [vmem:[#allocation10 + $0x490] sm:$0xf0]  ;;  %v5121_v54 = vor.u32 %v6706_v46, %v5118_v48 }
  0xc1   : > { %3333 = vmatpush.bf16.msrb.mxu2 %v4673_v61  ;;  %v6770_v51 = vld [vmem:[#allocation10 + $0x584] sm:$0xf]  ;;  %v5374_v52 = vld [vmem:[#allocation10 + $0x590] sm:$0xf0]  ;;  %v5249_v55 = vor.u32 %v6738_v49, %v5246_v50 }
  0xc2   : > { %3346 = vmatpush.bf16.msrb.mxu3 %v4801_v2  ;;  %v6670_v56 = vld [vmem:[#allocation10 + $0x264] sm:$0xf]  ;;  %v4974_v57 = vld [vmem:[#allocation10 + $0x270] sm:$0xf0]  ;;  %v5377_v59 = vor.u32 %v6770_v51, %v5374_v52 }
  0xc3   : > { %3308 = vmatmul.bf16.vlgmr.msrb.gmra.mxu0 %v7663_v12  ;;  %3321 = vmatmul.bf16.vlgmr.msrb.gmra.mxu1 %v7665_v16  ;;  %v6702_v58 = vld [vmem:[#allocation10 + $0x364] sm:$0xf]  ;;  %v5102_v60 = vld [vmem:[#allocation10 + $0x370] sm:$0xf0]  ;;  %v4977_v2 = vor.u32 %v6670_v56, %v4974_v57 }
  0xc4   : > { %3352 = vmatpush.bf16.msra.mxu0 %v5041_v3  ;;  %3365 = vmatpush.bf16.msra.mxu1 %v5169_v5  ;;  %v6734_v61 = vld [vmem:[#allocation10 + $0x464] sm:$0xf]  ;;  %v5230_v62 = vld [vmem:[#allocation10 + $0x470] sm:$0xf0]  ;;  %v5105_v3 = vor.u32 %v6702_v58, %v5102_v60 }
  0xc5   : > { %3378 = vmatpush.bf16.msra.mxu2 %v5297_v6  ;;  %3347 = vmatmul.bf16.vlgmr.msrb.gmra.mxu3 %v7634_v18  ;;  %v6766_v63 = vld [vmem:[#allocation10 + $0x564] sm:$0xf]  ;;  %v5358_v1 = vld [vmem:[#allocation10 + $0x570] sm:$0xf0]  ;;  %v5233_v4 = vor.u32 %v6734_v61, %v5230_v62 }
  0xc6   : > { %3391 = vmatpush.bf16.msra.mxu3 %v5425_v11  ;;  %3334 = vmatmul.bf16.vlgmr.msrb.gmra.mxu2 %v7630_v10  ;;  %v6666_v5 = vld [vmem:[#allocation10 + $0x244] sm:$0xf]  ;;  %v4958_v6 = vld [vmem:[#allocation10 + $0x250] sm:$0xf0]  ;;  %v5361_v8 = vor.u32 %v6766_v63, %v5358_v1 }
  0xc7   : > { %v6698_v7 = vld [vmem:[#allocation10 + $0x344] sm:$0xf]  ;;  %v5086_v9 = vld [vmem:[#allocation10 + $0x350] sm:$0xf0]  ;;  %v4961_v19 = vor.u32 %v6666_v5, %v4958_v6 }
  0xc8   : > { %3353 = vmatpush.bf16.msra.mxu0 %v5025_v22  ;;  %3366 = vmatpush.bf16.msra.mxu1 %v5153_v23  ;;  %v6730_v11 = vld [vmem:[#allocation10 + $0x444] sm:$0xf]  ;;  %v5214_v13 = vld [vmem:[#allocation10 + $0x450] sm:$0xf0]  ;;  %v5089_v21 = vor.u32 %v6698_v7, %v5086_v9 }
  0xc9   : > { %3379 = vmatpush.bf16.msra.mxu2 %v5281_v26  ;;  %v6762_v14 = vld [vmem:[#allocation10 + $0x544] sm:$0xf]  ;;  %v5342_v15 = vld [vmem:[#allocation10 + $0x550] sm:$0xf0]  ;;  %v5217_v22 = vor.u32 %v6730_v11, %v5214_v13 }
  0xca   : > { %3392 = vmatpush.bf16.msra.mxu3 %v5409_v31  ;;  %v6662_v23 = vld [vmem:[#allocation10 + $0x224] sm:$0xf]  ;;  %v4942_v26 = vld [vmem:[#allocation10 + $0x230] sm:$0xf0]  ;;  %v5345_v29 = vor.u32 %v6762_v14, %v5342_v15 }
  0xcb   : > { %v6694_v27 = vld [vmem:[#allocation10 + $0x324] sm:$0xf]  ;;  %v5070_v30 = vld [vmem:[#allocation10 + $0x330] sm:$0xf0]  ;;  %v4945_v36 = vor.u32 %v6662_v23, %v4942_v26 }
  0xcc   : > { %3354 = vmatpush.bf16.msra.mxu0 %v5009_v40  ;;  %3367 = vmatpush.bf16.msra.mxu1 %v5137_v42  ;;  %v6726_v31 = vld [vmem:[#allocation10 + $0x424] sm:$0xf]  ;;  %v5198_v32 = vld [vmem:[#allocation10 + $0x430] sm:$0xf0]  ;;  %v5073_v42 = vor.u32 %v6694_v27, %v5070_v30 }
  0xcd   : > { %3380 = vmatpush.bf16.msra.mxu2 %v5265_v43  ;;  %v6758_v33 = vld [vmem:[#allocation10 + $0x524] sm:$0xf]  ;;  %v5326_v34 = vld [vmem:[#allocation10 + $0x530] sm:$0xf0]  ;;  %v5201_v43 = vor.u32 %v6726_v31, %v5198_v32 }
  0xce   : > { %3393 = vmatpush.bf16.msra.mxu3 %v5393_v47  ;;  %v6658_v37 = vld [vmem:[#allocation10 + $0x204] sm:$0xf]  ;;  %v4926_v40 = vld [vmem:[#allocation10 + $0x210] sm:$0xf0]  ;;  %v5329_v47 = vor.u32 %v6758_v33, %v5326_v34 }
  0xcf   : > { %v6690_v44 = vld [vmem:[#allocation10 + $0x304] sm:$0xf]  ;;  %v5054_v45 = vld [vmem:[#allocation10 + $0x310] sm:$0xf0] }
  0xd0   : > { %3355 = vmatpush.bf16.msra.mxu0 %v4993_v53  ;;  %3368 = vmatpush.bf16.msra.mxu1 %v5121_v54  ;;  %v6722_v46 = vld [vmem:[#allocation10 + $0x404] sm:$0xf]  ;;  %v5182_v48 = vld [vmem:[#allocation10 + $0x410] sm:$0xf0]  ;;  %v4929_v54 = vor.u32 %v6658_v37, %v4926_v40  ;;  %v5057_v58 = vor.u32 %v6690_v44, %v5054_v45 }
  0xd1   : > { %3381 = vmatpush.bf16.msra.mxu2 %v5249_v55  ;;  %v6754_v49 = vld [vmem:[#allocation10 + $0x504] sm:$0xf]  ;;  %v5310_v50 = vld [vmem:[#allocation10 + $0x510] sm:$0xf0] }
  0xd2   : > { %3394 = vmatpush.bf16.msra.mxu3 %v5377_v59  ;;  %v6814_v51 = vld [vmem:[#allocation10 + $0x6e4] sm:$0xf]  ;;  %v5550_v52 = vld [vmem:[#allocation10 + $0x6f0] sm:$0xf0]  ;;  %v5185_v59 = vor.u32 %v6722_v46, %v5182_v48  ;;  %v5313_v62 = vor.u32 %v6754_v49, %v5310_v50 }
  0xd3   : > { %v6846_v53 = vld [vmem:[#allocation10 + $0x7e4] sm:$0xf]  ;;  %v5678_v55 = vld [vmem:[#allocation10 + $0x7f0] sm:$0xf0]  ;;  %v5553_v63 = vor.u32 %v6814_v51, %v5550_v52 }
  0xd4   : > { %3356 = vmatpush.bf16.msra.mxu0 %v4977_v2  ;;  %3369 = vmatpush.bf16.msra.mxu1 %v5105_v3  ;;  %v6878_v56 = vld [vmem:[#allocation10 + $0x8e4] sm:$0xf]  ;;  %v5806_v57 = vld [vmem:[#allocation10 + $0x8f0] sm:$0xf0]  ;;  %v5681_v1 = vor.u32 %v6846_v53, %v5678_v55 }
  0xd5   : > { %3382 = vmatpush.bf16.msra.mxu2 %v5233_v4  ;;  %v6910_v60 = vld [vmem:[#allocation10 + $0x9e4] sm:$0xf]  ;;  %v5934_v61 = vld [vmem:[#allocation10 + $0x9f0] sm:$0xf0]  ;;  %v5809_v2 = vor.u32 %v6878_v56, %v5806_v57 }
  0xd6   : > { %3395 = vmatpush.bf16.msra.mxu3 %v5361_v8  ;;  %v6810_v3 = vld [vmem:[#allocation10 + $0x6c4] sm:$0xf]  ;;  %v5534_v4 = vld [vmem:[#allocation10 + $0x6d0] sm:$0xf0]  ;;  %v5937_v6 = vor.u32 %v6910_v60, %v5934_v61 }
  0xd7   : > { %v6842_v5 = vld [vmem:[#allocation10 + $0x7c4] sm:$0xf]  ;;  %v5662_v7 = vld [vmem:[#allocation10 + $0x7d0] sm:$0xf0]  ;;  %v5537_v14 = vor.u32 %v6810_v3, %v5534_v4 }
  0xd8   : > { %3357 = vmatpush.bf16.msra.mxu0 %v4961_v19  ;;  %3370 = vmatpush.bf16.msra.mxu1 %v5089_v21  ;;  %v6874_v8 = vld [vmem:[#allocation10 + $0x8c4] sm:$0xf]  ;;  %v5790_v9 = vld [vmem:[#allocation10 + $0x8d0] sm:$0xf0]  ;;  %v5665_v15 = vor.u32 %v6842_v5, %v5662_v7 }
  0xd9   : > { %3383 = vmatpush.bf16.msra.mxu2 %v5217_v22  ;;  %v6906_v11 = vld [vmem:[#allocation10 + $0x9c4] sm:$0xf]  ;;  %v5918_v13 = vld [vmem:[#allocation10 + $0x9d0] sm:$0xf0]  ;;  %v5793_v19 = vor.u32 %v6874_v8, %v5790_v9 }
  0xda   : > { %3396 = vmatpush.bf16.msra.mxu3 %v5345_v29  ;;  %v6806_v21 = vld [vmem:[#allocation10 + $0x6a4] sm:$0xf]  ;;  %v5518_v22 = vld [vmem:[#allocation10 + $0x6b0] sm:$0xf0]  ;;  %v5921_v26 = vor.u32 %v6906_v11, %v5918_v13 }
  0xdb   : > { %v6838_v23 = vld [vmem:[#allocation10 + $0x7a4] sm:$0xf]  ;;  %v5646_v27 = vld [vmem:[#allocation10 + $0x7b0] sm:$0xf0]  ;;  %v5521_v33 = vor.u32 %v6806_v21, %v5518_v22 }
  0xdc   : > { %3358 = vmatpush.bf16.msra.mxu0 %v4945_v36  ;;  %3371 = vmatpush.bf16.msra.mxu1 %v5073_v42  ;;  %v6870_v29 = vld [vmem:[#allocation10 + $0x8a4] sm:$0xf]  ;;  %v5774_v30 = vld [vmem:[#allocation10 + $0x8b0] sm:$0xf0]  ;;  %v5649_v34 = vor.u32 %v6838_v23, %v5646_v27 }
  0xdd   : > { %3384 = vmatpush.bf16.msra.mxu2 %v5201_v43  ;;  %v6902_v31 = vld [vmem:[#allocation10 + $0x9a4] sm:$0xf]  ;;  %v5902_v32 = vld [vmem:[#allocation10 + $0x9b0] sm:$0xf0]  ;;  %v5777_v36 = vor.u32 %v6870_v29, %v5774_v30 }
  0xde   : > { %3397 = vmatpush.bf16.msra.mxu3 %v5329_v47  ;;  %v6802_v37 = vld [vmem:[#allocation10 + $0x684] sm:$0xf]  ;;  %v5502_v40 = vld [vmem:[#allocation10 + $0x690] sm:$0xf0]  ;;  %v5905_v43 = vor.u32 %v6902_v31, %v5902_v32  ;;  %v7677_v13 = vpop.f32.mrf.mxu1 }
  0xdf   : > { %v6834_v42 = vld [vmem:[#allocation10 + $0x784] sm:$0xf]  ;;  %v5630_v44 = vld [vmem:[#allocation10 + $0x790] sm:$0xf0]  ;;  %v5505_v49 = vor.u32 %v6802_v37, %v5502_v40 }
  0xe0   : > { %3359 = vmatpush.bf16.msra.mxu0 %v4929_v54  ;;  %3372 = vmatpush.bf16.msra.mxu1 %v5057_v58  ;;  %v6866_v45 = vld [vmem:[#allocation10 + $0x884] sm:$0xf]  ;;  %v5758_v46 = vld [vmem:[#allocation10 + $0x890] sm:$0xf0]  ;;  %v5633_v50 = vor.u32 %v6834_v42, %v5630_v44 }
  0xe1   : > { %3385 = vmatpush.bf16.msra.mxu2 %v5185_v59  ;;  %v6898_v47 = vld [vmem:[#allocation10 + $0x984] sm:$0xf]  ;;  %v5886_v48 = vld [vmem:[#allocation10 + $0x990] sm:$0xf0]  ;;  %v5761_v51 = vor.u32 %v6866_v45, %v5758_v46 }
  0xe2   : > { %3398 = vmatpush.bf16.msra.mxu3 %v5313_v62  ;;  %v6798_v52 = vld [vmem:[#allocation10 + $0x664] sm:$0xf]  ;;  %v5486_v53 = vld [vmem:[#allocation10 + $0x670] sm:$0xf0]  ;;  %v5889_v55 = vor.u32 %v6898_v47, %v5886_v48 }
  0xe3   : > { %3360 = vmatmul.bf16.vlgmr.msra.gmra.mxu0 %v7627_v0  ;;  %3373 = vmatmul.bf16.vlgmr.msra.gmra.mxu1 %v7632_v17  ;;  %v6830_v54 = vld [vmem:[#allocation10 + $0x764] sm:$0xf]  ;;  %v5614_v56 = vld [vmem:[#allocation10 + $0x770] sm:$0xf0]  ;;  %v5489_v61 = vor.u32 %v6798_v52, %v5486_v53 }
  0xe4   : > { %3404 = vmatpush.bf16.msrb.mxu0 %v5553_v63  ;;  %3417 = vmatpush.bf16.msrb.mxu1 %v5681_v1  ;;  %v6862_v57 = vld [vmem:[#allocation10 + $0x864] sm:$0xf]  ;;  %v5742_v58 = vld [vmem:[#allocation10 + $0x870] sm:$0xf0]  ;;  %v5617_v63 = vor.u32 %v6830_v54, %v5614_v56 }
  0xe5   : > { %3430 = vmatpush.bf16.msrb.mxu2 %v5809_v2  ;;  %3399 = vmatmul.bf16.vlgmr.msra.gmra.mxu3 %v7645_v41  ;;  %v6894_v59 = vld [vmem:[#allocation10 + $0x964] sm:$0xf]  ;;  %v5870_v60 = vld [vmem:[#allocation10 + $0x970] sm:$0xf0]  ;;  %v5745_v1 = vor.u32 %v6862_v57, %v5742_v58 }
  0xe6   : > { %3443 = vmatpush.bf16.msrb.mxu3 %v5937_v6  ;;  %3386 = vmatmul.bf16.vlgmr.msra.gmra.mxu2 %v7641_v38  ;;  %v6794_v2 = vld [vmem:[#allocation10 + $0x644] sm:$0xf]  ;;  %v5470_v3 = vld [vmem:[#allocation10 + $0x650] sm:$0xf0]  ;;  %v5873_v5 = vor.u32 %v6894_v59, %v5870_v60 }
  0xe7   : > { %v6826_v4 = vld [vmem:[#allocation10 + $0x744] sm:$0xf]  ;;  %v5598_v6 = vld [vmem:[#allocation10 + $0x750] sm:$0xf0] }
  0xe8   : > { %3405 = vmatpush.bf16.msrb.mxu0 %v5537_v14  ;;  %3418 = vmatpush.bf16.msrb.mxu1 %v5665_v15  ;;  %v6858_v7 = vld [vmem:[#allocation10 + $0x844] sm:$0xf]  ;;  %v5726_v8 = vld [vmem:[#allocation10 + $0x850] sm:$0xf0]  ;;  %v5473_v15 = vor.u32 %v6794_v2, %v5470_v3 }
  0xe9   : > { %3431 = vmatpush.bf16.msrb.mxu2 %v5793_v19  ;;  %v6890_v9 = vld [vmem:[#allocation10 + $0x944] sm:$0xf]  ;;  %v5854_v11 = vld [vmem:[#allocation10 + $0x950] sm:$0xf0]  ;;  %v5601_v19 = vor.u32 %v6826_v4, %v5598_v6  ;;  %v5729_v21 = vor.u32 %v6858_v7, %v5726_v8 }
  0xea   : > { %3444 = vmatpush.bf16.msrb.mxu3 %v5921_v26  ;;  %v6790_v22 = vld [vmem:[#allocation10 + $0x624] sm:$0xf]  ;;  %v5454_v23 = vld [vmem:[#allocation10 + $0x630] sm:$0xf0]  ;;  %v5857_v27 = vor.u32 %v6890_v9, %v5854_v11 }
  0xeb   : > { %v7675_v62 = vpop.f32.mrf.mxu0  ;;  %v6822_v26 = vld [vmem:[#allocation10 + $0x724] sm:$0xf]  ;;  %v5582_v29 = vld [vmem:[#allocation10 + $0x730] sm:$0xf0] }
  0xec   : > { %3406 = vmatpush.bf16.msrb.mxu0 %v5521_v33  ;;  %3419 = vmatpush.bf16.msrb.mxu1 %v5649_v34  ;;  %v6854_v30 = vld [vmem:[#allocation10 + $0x824] sm:$0xf]  ;;  %v5710_v31 = vld [vmem:[#allocation10 + $0x830] sm:$0xf0]  ;;  %v7681_v34 = vpop.f32.mrf.mxu3 }
  0xed   : > { %3432 = vmatpush.bf16.msrb.mxu2 %v5777_v36  ;;  %v7679_v14 = vpop.f32.mrf.mxu2  ;;  %v6886_v32 = vld [vmem:[#allocation10 + $0x924] sm:$0xf]  ;;  %v5838_v33 = vld [vmem:[#allocation10 + $0x930] sm:$0xf0]  ;;  %v5457_v36 = vor.u32 %v6790_v22, %v5454_v23  ;;  %v5713_v44 = vor.u32 %v6854_v30, %v5710_v31 }
  0xee   : > { %3445 = vmatpush.bf16.msrb.mxu3 %v5905_v43  ;;  %v6786_v37 = vld [vmem:[#allocation10 + $0x604] sm:$0xf]  ;;  %v5438_v40 = vld [vmem:[#allocation10 + $0x610] sm:$0xf0]  ;;  %v5585_v43 = vor.u32 %v6822_v26, %v5582_v29  ;;  %v5841_v48 = vor.u32 %v6886_v32, %v5838_v33 }
  0xef   : > { %v6818_v45 = vld [vmem:[#allocation10 + $0x704] sm:$0xf]  ;;  %v5566_v46 = vld [vmem:[#allocation10 + $0x710] sm:$0xf0]  ;;  %v5441_v57 = vor.u32 %v6786_v37, %v5438_v40 }
  0xf0   : > { %3407 = vmatpush.bf16.msrb.mxu0 %v5505_v49  ;;  %3420 = vmatpush.bf16.msrb.mxu1 %v5633_v50  ;;  %v6850_v47 = vld [vmem:[#allocation10 + $0x804] sm:$0xf]  ;;  %v5694_v49 = vld [vmem:[#allocation10 + $0x810] sm:$0xf0] }
  0xf1   : > { %3433 = vmatpush.bf16.msrb.mxu2 %v5761_v51  ;;  %v6882_v50 = vld [vmem:[#allocation10 + $0x904] sm:$0xf]  ;;  %v5822_v51 = vld [vmem:[#allocation10 + $0x910] sm:$0xf0] }
  0xf2   : > { %3446 = vmatpush.bf16.msrb.mxu3 %v5889_v55  ;;  %v6942_v52 = vld [vmem:[#allocation10 + $0xae4] sm:$0xf]  ;;  %v6062_v53 = vld [vmem:[#allocation10 + $0xaf0] sm:$0xf0]  ;;  %v3168_v55 = vpop.f32.mrf.mxu1  ;;  %v5825_v3 = vor.u32 %v6882_v50, %v5822_v51 }
  0xf3   : > { %v3155_v42 = vpop.f32.mrf.mxu0  ;;  %v6974_v54 = vld [vmem:[#allocation10 + $0xbe4] sm:$0xf]  ;;  %v6190_v58 = vld [vmem:[#allocation10 + $0xbf0] sm:$0xf0]  ;;  %v6065_v4 = vor.u32 %v6942_v52, %v6062_v53 }
  0xf4   : > { %3408 = vmatpush.bf16.msrb.mxu0 %v5489_v61  ;;  %3421 = vmatpush.bf16.msrb.mxu1 %v5617_v63  ;;  %v7006_v59 = vld [vmem:[#allocation10 + $0xce4] sm:$0xf]  ;;  %v6318_v60 = vld [vmem:[#allocation10 + $0xcf0] sm:$0xf0]  ;;  %v5569_v61 = vor.u32 %v6818_v45, %v5566_v46  ;;  %v5697_v63 = vor.u32 %v6850_v47, %v5694_v49  ;;  %v3194_v11 = vpop.f32.mrf.mxu3 }
  0xf5   : > { %3434 = vmatpush.bf16.msrb.mxu2 %v5745_v1  ;;  %v3181_v56 = vpop.f32.mrf.mxu2  ;;  %v7038_v1 = vld [vmem:[#allocation10 + $0xde4] sm:$0xf]  ;;  %v6446_v2 = vld [vmem:[#allocation10 + $0xdf0] sm:$0xf0]  ;;  %v6321_v6 = vor.u32 %v7006_v59, %v6318_v60 }
  0xf6   : > { %3447 = vmatpush.bf16.msrb.mxu3 %v5873_v5  ;;  %v6193_v5 = vor.u32 %v6974_v54, %v6190_v58  ;;  %v6938_v7 = vld [vmem:[#allocation10 + $0xac4] sm:$0xf]  ;;  %v6046_v8 = vld [vmem:[#allocation10 + $0xad0] sm:$0xf0] }
  0xf7   : > { %v6970_v9 = vld [vmem:[#allocation10 + $0xbc4] sm:$0xf]  ;;  %v6302_v22 = vld [vmem:[#allocation10 + $0xcd0] sm:$0xf0] }
  0xf8   : > { %3409 = vmatpush.bf16.msrb.mxu0 %v5473_v15  ;;  %3422 = vmatpush.bf16.msrb.mxu1 %v5601_v19  ;;  %v6449_v15 = vor.u32 %v7038_v1, %v6446_v2  ;;  %v6174_v19 = vld [vmem:[#allocation10 + $0xbd0] sm:$0xf0]  ;;  %v7034_v23 = vld [vmem:[#allocation10 + $0xdc4] sm:$0xf] }
  0xf9   : > { %3435 = vmatpush.bf16.msrb.mxu2 %v5729_v21  ;;  %v7002_v21 = vld [vmem:[#allocation10 + $0xcc4] sm:$0xf]  ;;  %v6430_v26 = vld [vmem:[#allocation10 + $0xdd0] sm:$0xf0]  ;;  %v6177_v29 = vor.u32 %v6970_v9, %v6174_v19 }
  0xfa   : > { %3448 = vmatpush.bf16.msrb.mxu3 %v5857_v27  ;;  %v6049_v27 = vor.u32 %v6938_v7, %v6046_v8  ;;  %v6305_v30 = vor.u32 %v7002_v21, %v6302_v22  ;;  %v6934_v31 = vld [vmem:[#allocation10 + $0xaa4] sm:$0xf]  ;;  %v6030_v32 = vld [vmem:[#allocation10 + $0xab0] sm:$0xf0] }
  0xfb   : > { %v6966_v33 = vld [vmem:[#allocation10 + $0xba4] sm:$0xf]  ;;  %v6158_v37 = vld [vmem:[#allocation10 + $0xbb0] sm:$0xf0]  ;;  %v6033_v45 = vor.u32 %v6934_v31, %v6030_v32 }
  0xfc   : > { %3410 = vmatpush.bf16.msrb.mxu0 %v5457_v36  ;;  %3423 = vmatpush.bf16.msrb.mxu1 %v5585_v43  ;;  %v6433_v36 = vor.u32 %v7034_v23, %v6430_v26  ;;  %v6998_v40 = vld [vmem:[#allocation10 + $0xca4] sm:$0xf]  ;;  %v6286_v42 = vld [vmem:[#allocation10 + $0xcb0] sm:$0xf0]  ;;  %v6161_v46 = vor.u32 %v6966_v33, %v6158_v37 }
  0xfd   : > { %3436 = vmatpush.bf16.msrb.mxu2 %v5713_v44  ;;  %v7030_v43 = vld [vmem:[#allocation10 + $0xda4] sm:$0xf]  ;;  %v6414_v44 = vld [vmem:[#allocation10 + $0xdb0] sm:$0xf0]  ;;  %v6289_v47 = vor.u32 %v6998_v40, %v6286_v42 }
  0xfe   : > { %3449 = vmatpush.bf16.msrb.mxu3 %v5841_v48  ;;  %v6930_v48 = vld [vmem:[#allocation10 + $0xa84] sm:$0xf]  ;;  %v6014_v49 = vld [vmem:[#allocation10 + $0xa90] sm:$0xf0]  ;;  %v6417_v51 = vor.u32 %v7030_v43, %v6414_v44 }
  0xff   : > { %v6962_v50 = vld [vmem:[#allocation10 + $0xb84] sm:$0xf]  ;;  %v6142_v52 = vld [vmem:[#allocation10 + $0xb90] sm:$0xf0]  ;;  %v7689_v2 = vpop.f32.mrf.mxu1 }
 0x100   : > { %3411 = vmatpush.bf16.msrb.mxu0 %v5441_v57  ;;  %3424 = vmatpush.bf16.msrb.mxu1 %v5569_v61  ;;  %v6994_v53 = vld [vmem:[#allocation10 + $0xc84] sm:$0xf]  ;;  %v6270_v54 = vld [vmem:[#allocation10 + $0xc90] sm:$0xf0]  ;;  %v6017_v57 = vor.u32 %v6930_v48, %v6014_v49  ;;  %v6145_v59 = vor.u32 %v6962_v50, %v6142_v52 }
 0x101   : > { %3437 = vmatpush.bf16.msrb.mxu2 %v5697_v63  ;;  %v7026_v55 = vld [vmem:[#allocation10 + $0xd84] sm:$0xf]  ;;  %v6398_v56 = vld [vmem:[#allocation10 + $0xd90] sm:$0xf0]  ;;  %v6273_v60 = vor.u32 %v6994_v53, %v6270_v54 }
 0x102   : > { %3450 = vmatpush.bf16.msrb.mxu3 %v5825_v3  ;;  %v6926_v61 = vld [vmem:[#allocation10 + $0xa64] sm:$0xf]  ;;  %v5998_v63 = vld [vmem:[#allocation10 + $0xa70] sm:$0xf0]  ;;  %v6401_v3 = vor.u32 %v7026_v55, %v6398_v56 }
 0x103   : > { %3412 = vmatmul.bf16.vlgmr.msrb.gmra.mxu0 %v7639_v35  ;;  %3425 = vmatmul.bf16.vlgmr.msrb.gmra.mxu1 %v7643_v39  ;;  %v6958_v1 = vld [vmem:[#allocation10 + $0xb64] sm:$0xf]  ;;  %v6382_v8 = vld [vmem:[#allocation10 + $0xd70] sm:$0xf0]  ;;  %v6001_v9 = vor.u32 %v6926_v61, %v5998_v63 }
 0x104   : > { %3456 = vmatpush.bf16.msra.mxu0 %v6065_v4  ;;  %3469 = vmatpush.bf16.msra.mxu1 %v6193_v5  ;;  %v7687_v58 = vpop.f32.mrf.mxu0  ;;  %v6126_v4 = vld [vmem:[#allocation10 + $0xb70] sm:$0xf0]  ;;  %v6990_v5 = vld [vmem:[#allocation10 + $0xc64] sm:$0xf] }
 0x105   : > { %3482 = vmatpush.bf16.msra.mxu2 %v6321_v6  ;;  %3451 = vmatmul.bf16.vlgmr.msrb.gmra.mxu3 %v7655_v25  ;;  %v6254_v6 = vld [vmem:[#allocation10 + $0xc70] sm:$0xf0]  ;;  %v7022_v7 = vld [vmem:[#allocation10 + $0xd64] sm:$0xf]  ;;  %v6129_v11 = vor.u32 %v6958_v1, %v6126_v4 }
 0x106   : > { %3495 = vmatpush.bf16.msra.mxu3 %v6449_v15  ;;  %3438 = vmatmul.bf16.vlgmr.msrb.gmra.mxu2 %v7651_v20  ;;  %v6257_v15 = vor.u32 %v6990_v5, %v6254_v6  ;;  %v6922_v19 = vld [vmem:[#allocation10 + $0xa44] sm:$0xf]  ;;  %v5982_v21 = vld [vmem:[#allocation10 + $0xa50] sm:$0xf0]  ;;  %v6385_v26 = vor.u32 %v7022_v7, %v6382_v8  ;;  %v4788_v7 = vld [vmem:[#allocation10 + $0xe8] sm:$0xf] }
 0x107   : > { %v6954_v22 = vld [vmem:[#allocation10 + $0xb44] sm:$0xf]  ;;  %v7693_v31 = vpop.f32.mrf.mxu3  ;;  %v6366_v33 = vld [vmem:[#allocation10 + $0xd50] sm:$0xf0]  ;;  %v6625_v8 = vld [vmem:[#allocation10 + $0xf4] sm:$0xf0] }
 0x108   : > { %3457 = vmatpush.bf16.msra.mxu0 %v6049_v27  ;;  %3470 = vmatpush.bf16.msra.mxu1 %v6177_v29  ;;  %v6110_v27 = vld [vmem:[#allocation10 + $0xb50] sm:$0xf0]  ;;  %v6986_v29 = vld [vmem:[#allocation10 + $0xc44] sm:$0xf] }
 0x109   : > { %3483 = vmatpush.bf16.msra.mxu2 %v6305_v30  ;;  %v7691_v23 = vpop.f32.mrf.mxu2  ;;  %v6238_v30 = vld [vmem:[#allocation10 + $0xc50] sm:$0xf0]  ;;  %v7018_v32 = vld [vmem:[#allocation10 + $0xd44] sm:$0xf]  ;;  %v6113_v40 = vor.u32 %v6954_v22, %v6110_v27  ;;  %v5172_v27 = vld [vmem:[#allocation10 + $0x3e8] sm:$0xf] }
 0x10a   : > { %3496 = vmatpush.bf16.msra.mxu3 %v6433_v36  ;;  %v5985_v36 = vor.u32 %v6922_v19, %v5982_v21  ;;  %v6241_v42 = vor.u32 %v6986_v29, %v6238_v30  ;;  %v6918_v43 = vld [vmem:[#allocation10 + $0xa24] sm:$0xf]  ;;  %v5966_v44 = vld [vmem:[#allocation10 + $0xa30] sm:$0xf0]  ;;  %v5044_v19 = vld [vmem:[#allocation10 + $0x2e8] sm:$0xf] }
 0x10b   : > { %v6094_v48 = vld [vmem:[#allocation10 + $0xb30] sm:$0xf0]  ;;  %v6982_v49 = vld [vmem:[#allocation10 + $0xc24] sm:$0xf]  ;;  %v5969_v53 = vor.u32 %v6918_v43, %v5966_v44  ;;  %v6689_v21 = vld [vmem:[#allocation10 + $0x2f4] sm:$0xf0] }
 0x10c   : > { %3458 = vmatpush.bf16.msra.mxu0 %v6033_v45  ;;  %3471 = vmatpush.bf16.msra.mxu1 %v6161_v46  ;;  %v3207_v37 = vpop.f32.mrf.mxu0  ;;  %v6950_v45 = vld [vmem:[#allocation10 + $0xb24] sm:$0xf]  ;;  %v3220_v46 = vpop.f32.mrf.mxu1  ;;  %v6222_v50 = vld [vmem:[#allocation10 + $0xc30] sm:$0xf0]  ;;  %v6721_v29 = vld [vmem:[#allocation10 + $0x3f4] sm:$0xf0] }
 0x10d   : > { %3484 = vmatpush.bf16.msra.mxu2 %v6289_v47  ;;  %v6369_v47 = vor.u32 %v7018_v32, %v6366_v33  ;;  %v6350_v52 = vld [vmem:[#allocation10 + $0xd30] sm:$0xf0]  ;;  %v6914_v54 = vld [vmem:[#allocation10 + $0xa04] sm:$0xf]  ;;  %v6097_v56 = vor.u32 %v6950_v45, %v6094_v48  ;;  %v4789_v32 = vor.u32 %v6625_v8, %v4788_v7  ;;  %v4772_v37 = vld [vmem:[#allocation10 + $0xc8] sm:$0xf]  ;;  %v5173_v43 = vor.u32 %v6721_v29, %v5172_v27 }
 0x10e   : > { %3497 = vmatpush.bf16.msra.mxu3 %v6417_v51  ;;  %v7014_v51 = vld [vmem:[#allocation10 + $0xd24] sm:$0xf]  ;;  %v5950_v55 = vld [vmem:[#allocation10 + $0xa10] sm:$0xf0]  ;;  %v6653_v44 = vld [vmem:[#allocation10 + $0x1d4] sm:$0xf0] }
 0x10f   : > { %v6978_v61 = vld [vmem:[#allocation10 + $0xc04] sm:$0xf]  ;;  %v6353_v1 = vor.u32 %v7014_v51, %v6350_v52  ;;  %v6334_v5 = vld [vmem:[#allocation10 + $0xd10] sm:$0xf0]  ;;  %v3246_v6 = vpop.f32.mrf.mxu3  ;;  %v5028_v45 = vld [vmem:[#allocation10 + $0x2c8] sm:$0xf] }
 0x110   : > { %3459 = vmatpush.bf16.msra.mxu0 %v6017_v57  ;;  %3472 = vmatpush.bf16.msra.mxu1 %v6145_v59  ;;  %v6225_v57 = vor.u32 %v6982_v49, %v6222_v50  ;;  %v6946_v59 = vld [vmem:[#allocation10 + $0xb04] sm:$0xf]  ;;  %v6685_v46 = vld [vmem:[#allocation10 + $0x2d4] sm:$0xf0]  ;;  %v3167_v49 = vadd.f32 %v7677_v13, %v7675_v62  ;;  %v5140_v62 = vld [vmem:[#allocation10 + $0x3a8] sm:$0xf] }
 0x111   : > { %3485 = vmatpush.bf16.msra.mxu2 %v6273_v60  ;;  %v6078_v60 = vld [vmem:[#allocation10 + $0xb10] sm:$0xf0]  ;;  %v3233_v63 = vpop.f32.mrf.mxu2  ;;  %v7010_v4 = vld [vmem:[#allocation10 + $0xd04] sm:$0xf]  ;;  %v6717_v48 = vld [vmem:[#allocation10 + $0x3d4] sm:$0xf0]  ;;  %v5029_v52 = vor.u32 %v6685_v46, %v5028_v45 }
 0x112   : > { %3498 = vmatpush.bf16.msra.mxu3 %v6401_v3  ;;  %v6206_v3 = vld [vmem:[#allocation10 + $0xc10] sm:$0xf0]  ;;  %v6081_v22 = vor.u32 %v6946_v59, %v6078_v60  ;;  %v6337_v30 = vor.u32 %v7010_v4, %v6334_v5  ;;  %v5012_v59 = vld [vmem:[#allocation10 + $0x2a8] sm:$0xf]  ;;  %v6681_v60 = vld [vmem:[#allocation10 + $0x2b4] sm:$0xf0] }
 0x113   : > { %v6713_v13 = vld [vmem:[#allocation10 + $0x3b4] sm:$0xf0]  ;;  %v4740_v4 = vld [vmem:[#allocation10 + $0x88] sm:$0xf] }
 0x114   : > { %3460 = vmatpush.bf16.msra.mxu0 %v6001_v9  ;;  %3473 = vmatpush.bf16.msra.mxu1 %v6129_v11  ;;  %v4916_v9 = vld [vmem:[#allocation10 + $0x1e8] sm:$0xf]  ;;  %v5953_v11 = vor.u32 %v6914_v54, %v5950_v55  ;;  %v6617_v54 = vld [vmem:[#allocation10 + $0xb4] sm:$0xf0]  ;;  %v5141_v7 = vor.u32 %v6713_v13, %v5140_v62 }
 0x115   : > { %3486 = vmatpush.bf16.msra.mxu2 %v6257_v15  ;;  %v6657_v15 = vld [vmem:[#allocation10 + $0x1f4] sm:$0xf0]  ;;  %v4884_v55 = vld [vmem:[#allocation10 + $0x1a8] sm:$0xf] }
 0x116   : > { %3499 = vmatpush.bf16.msra.mxu3 %v6385_v26  ;;  %v6209_v26 = vor.u32 %v6978_v61, %v6206_v3  ;;  %v4917_v33 = vor.u32 %v6657_v15, %v4916_v9  ;;  %v3180_v61 = vadd.f32 %v7679_v14, %v3167_v49  ;;  %v5013_v3 = vor.u32 %v6681_v60, %v5012_v59  ;;  %v6613_v5 = vld [vmem:[#allocation10 + $0x94] sm:$0xf0]  ;;  %v4868_v6 = vld [vmem:[#allocation10 + $0x188] sm:$0xf] }
 0x117   : > { %v6645_v8 = vld [vmem:[#allocation10 + $0x194] sm:$0xf0]  ;;  %v4996_v9 = vld [vmem:[#allocation10 + $0x288] sm:$0xf] }
 0x118   : > { %3461 = vmatpush.bf16.msra.mxu0 %v5985_v36  ;;  %3474 = vmatpush.bf16.msra.mxu1 %v6113_v40  ;;  %v5045_v36 = vor.u32 %v6689_v21, %v5044_v19  ;;  %v6621_v40 = vld [vmem:[#allocation10 + $0xd4] sm:$0xf0]  ;;  %v5124_v19 = vld [vmem:[#allocation10 + $0x388] sm:$0xf]  ;;  %v3193_v21 = vadd.f32 %v7681_v34, %v3180_v61  ;;  %v4869_v27 = vor.u32 %v6645_v8, %v4868_v6 }
 0x119   : > { %3487 = vmatpush.bf16.msra.mxu2 %v6241_v42  ;;  %v4900_v42 = vld [vmem:[#allocation10 + $0x1c8] sm:$0xf]  ;;  %v4773_v50 = vor.u32 %v6621_v40, %v4772_v37  ;;  %v6709_v14 = vld [vmem:[#allocation10 + $0x394] sm:$0xf0] }
 0x11a   : > { %3500 = vmatpush.bf16.msra.mxu3 %v6369_v47  ;;  %v5156_v47 = vld [vmem:[#allocation10 + $0x3c8] sm:$0xf]  ;;  %v4901_v51 = vor.u32 %v6653_v44, %v4900_v42  ;;  %v6641_v37 = vld [vmem:[#allocation10 + $0x174] sm:$0xf0]  ;;  %v3206_v34 = vadd.f32 %v7687_v58, %v3193_v21 }
 0x11b   : > { %v4980_v40 = vld [vmem:[#allocation10 + $0x268] sm:$0xf]  ;;  %v6673_v42 = vld [vmem:[#allocation10 + $0x274] sm:$0xf0] }
 0x11c   : > { %3462 = vmatpush.bf16.msra.mxu0 %v5969_v53  ;;  %3475 = vmatpush.bf16.msra.mxu1 %v6097_v56  ;;  %v4756_v53 = vld [vmem:[#allocation10 + $0xa8] sm:$0xf]  ;;  %v5157_v56 = vor.u32 %v6717_v48, %v5156_v47  ;;  %v6705_v44 = vld [vmem:[#allocation10 + $0x374] sm:$0xf0]  ;;  %v4981_v47 = vor.u32 %v6673_v42, %v4980_v40  ;;  %v3219_v60 = vadd.f32 %v7689_v2, %v3206_v34 }
 0x11d   : > { %3488 = vmatpush.bf16.msra.mxu2 %v6225_v57  ;;  %v6649_v57 = vld [vmem:[#allocation10 + $0x1b4] sm:$0xf0]  ;;  %v4757_v63 = vor.u32 %v6617_v54, %v4756_v53  ;;  %v4708_v48 = vld [vmem:[#allocation10 + $0x48] sm:$0xf] }
 0x11e   : > { %3501 = vmatpush.bf16.msra.mxu3 %v6353_v1  ;;  %v4885_v1 = vor.u32 %v6649_v57, %v4884_v55  ;;  %v6605_v49 = vld [vmem:[#allocation10 + $0x54] sm:$0xf0]  ;;  %v4964_v54 = vld [vmem:[#allocation10 + $0x248] sm:$0xf] }
 0x11f   : > { %v6637_v53 = vld [vmem:[#allocation10 + $0x154] sm:$0xf0]  ;;  %v5092_v57 = vld [vmem:[#allocation10 + $0x348] sm:$0xf]  ;;  %v4709_v62 = vor.u32 %v6605_v49, %v4708_v48 }
 0x120   : > { %3463 = vmatpush.bf16.msra.mxu0 %v5953_v11  ;;  %3476 = vmatpush.bf16.msra.mxu1 %v6081_v22  ;;  %v6677_v11 = vld [vmem:[#allocation10 + $0x294] sm:$0xf0]  ;;  %v4741_v22 = vor.u32 %v6613_v5, %v4740_v4  ;;  %v4820_v4 = vld [vmem:[#allocation10 + $0x128] sm:$0xf] }
 0x121   : > { %3489 = vmatpush.bf16.msra.mxu2 %v6209_v26  ;;  %v7705_v26 = vpop.f32.mrf.mxu1  ;;  %v4997_v29 = vor.u32 %v6677_v11, %v4996_v9  ;;  %v6669_v55 = vld [vmem:[#allocation10 + $0x254] sm:$0xf0]  ;;  %v5076_v9 = vld [vmem:[#allocation10 + $0x328] sm:$0xf] }
 0x122   : > { %3502 = vmatpush.bf16.msra.mxu3 %v6337_v30  ;;  %v7702_v15 = vpop.f32.mrf.mxu0  ;;  %v4724_v30 = vld [vmem:[#allocation10 + $0x68] sm:$0xf]  ;;  %v6701_v58 = vld [vmem:[#allocation10 + $0x354] sm:$0xf0] }
 0x123   : > { %3464 = vmatmul.bf16.vlgmr.msra.gmra.mxu0 %v7653_v24  ;;  %3477 = vmatmul.bf16.vlgmr.msra.gmra.mxu1 %v7657_v28  ;;  %v5093_v5 = vor.u32 %v6701_v58, %v5092_v57  ;;  %v6633_v6 = vld [vmem:[#allocation10 + $0x134] sm:$0xf0]  ;;  %v5556_v48 = vld [vmem:[#allocation10 + $0x6e8] sm:$0xf] }
 0x124   : > { %3508 = vmatpush.bf16.msrb.mxu0 %v4789_v32  ;;  %3521 = vmatpush.bf16.msrb.mxu1 %v4917_v33  ;;  %v6609_v32 = vld [vmem:[#allocation10 + $0x74] sm:$0xf0]  ;;  %v4852_v33 = vld [vmem:[#allocation10 + $0x168] sm:$0xf] }
 0x125   : > { %3534 = vmatpush.bf16.msrb.mxu2 %v5045_v36  ;;  %3503 = vmatmul.bf16.vlgmr.msra.gmra.mxu3 %v7665_v16  ;;  %v5125_v36 = vor.u32 %v6709_v14, %v5124_v19  ;;  %v4725_v45 = vor.u32 %v6609_v32, %v4724_v30  ;;  %v4853_v46 = vor.u32 %v6641_v37, %v4852_v33  ;;  %v6665_v8 = vld [vmem:[#allocation10 + $0x234] sm:$0xf0]  ;;  %v4676_v14 = vld [vmem:[#allocation10 + $0x8] sm:$0xf] }
 0x126   : > { %3547 = vmatpush.bf16.msrb.mxu3 %v5173_v43  ;;  %3490 = vmatmul.bf16.vlgmr.msra.gmra.mxu2 %v7663_v12  ;;  %v5108_v43 = vld [vmem:[#allocation10 + $0x368] sm:$0xf]  ;;  %v6697_v11 = vld [vmem:[#allocation10 + $0x334] sm:$0xf0]  ;;  %v3232_v19 = vadd.f32 %v7691_v23, %v3219_v60 }
 0x127   : > { %v6597_v21 = vld [vmem:[#allocation10 + $0x14] sm:$0xf0]  ;;  %v4932_v32 = vld [vmem:[#allocation10 + $0x208] sm:$0xf]  ;;  %v5077_v33 = vor.u32 %v6697_v11, %v5076_v9 }
 0x128   : > { %3509 = vmatpush.bf16.msrb.mxu0 %v4773_v50  ;;  %3522 = vmatpush.bf16.msrb.mxu1 %v4901_v51  ;;  %v4836_v50 = vld [vmem:[#allocation10 + $0x148] sm:$0xf]  ;;  %v5109_v51 = vor.u32 %v6705_v44, %v5108_v43  ;;  %v6629_v30 = vld [vmem:[#allocation10 + $0x114] sm:$0xf0] }
 0x129   : > { %3535 = vmatpush.bf16.msrb.mxu2 %v5029_v52  ;;  %v7708_v52 = vpop.f32.mrf.mxu2  ;;  %v3272_v13 = vpop.f32.mrf.mxu1  ;;  %v4837_v61 = vor.u32 %v6637_v53, %v4836_v50  ;;  %v5060_v37 = vld [vmem:[#allocation10 + $0x308] sm:$0xf]  ;;  %v6693_v40 = vld [vmem:[#allocation10 + $0x314] sm:$0xf0] }
 0x12a   : > { %3548 = vmatpush.bf16.msrb.mxu3 %v5157_v56  ;;  %v7710_v56 = vpop.f32.mrf.mxu3  ;;  %v3259_v59 = vpop.f32.mrf.mxu0  ;;  %v5300_v43 = vld [vmem:[#allocation10 + $0x4e8] sm:$0xf]  ;;  %v6753_v44 = vld [vmem:[#allocation10 + $0x4f4] sm:$0xf0]  ;;  %v5061_v57 = vor.u32 %v6693_v40, %v5060_v37 }
 0x12b   : > { %v5428_v23 = vld [vmem:[#allocation10 + $0x5e8] sm:$0xf]  ;;  %v6817_v49 = vld [vmem:[#allocation10 + $0x6f4] sm:$0xf0]  ;;  %v5301_v58 = vor.u32 %v6753_v44, %v5300_v43 }
 0x12c   : > { %3510 = vmatpush.bf16.msrb.mxu0 %v4757_v63  ;;  %3523 = vmatpush.bf16.msrb.mxu1 %v4885_v1  ;;  %v4965_v63 = vor.u32 %v6669_v55, %v4964_v54  ;;  %v4692_v1 = vld [vmem:[#allocation10 + $0x28] sm:$0xf]  ;;  %v6849_v54 = vld [vmem:[#allocation10 + $0x7f4] sm:$0xf0]  ;;  %v5557_v60 = vor.u32 %v6817_v49, %v5556_v48 }
 0x12d   : > { %3536 = vmatpush.bf16.msrb.mxu2 %v5013_v3  ;;  %v6601_v3 = vld [vmem:[#allocation10 + $0x34] sm:$0xf0]  ;;  %v5684_v53 = vld [vmem:[#allocation10 + $0x7e8] sm:$0xf] }
 0x12e   : > { %3549 = vmatpush.bf16.msrb.mxu3 %v5141_v7  ;;  %v4948_v7 = vld [vmem:[#allocation10 + $0x228] sm:$0xf]  ;;  %v4693_v2 = vor.u32 %v6601_v3, %v4692_v1  ;;  %v6813_v3 = vld [vmem:[#allocation10 + $0x6d4] sm:$0xf0] }
 0x12f   : > { %v5412_v13 = vld [vmem:[#allocation10 + $0x5c8] sm:$0xf]  ;;  %v6745_v11 = vld [vmem:[#allocation10 + $0x4b4] sm:$0xf0] }
 0x130   : > { %3511 = vmatpush.bf16.msrb.mxu0 %v4741_v22  ;;  %3524 = vmatpush.bf16.msrb.mxu1 %v4869_v27  ;;  %v4821_v22 = vor.u32 %v6633_v6, %v4820_v4  ;;  %v4949_v27 = vor.u32 %v6665_v8, %v4948_v7  ;;  %v5540_v1 = vld [vmem:[#allocation10 + $0x6c8] sm:$0xf]  ;;  %v6773_v43 = vld [vmem:[#allocation10 + $0x594] sm:$0xf0] }
 0x131   : > { %3537 = vmatpush.bf16.msrb.mxu2 %v4997_v29  ;;  %v4804_v29 = vld [vmem:[#allocation10 + $0x108] sm:$0xf]  ;;  %v3285_v42 = vpop.f32.mrf.mxu2  ;;  %v5541_v8 = vor.u32 %v6813_v3, %v5540_v1 }
 0x132   : > { %3550 = vmatpush.bf16.msrb.mxu3 %v5125_v36  ;;  %v6661_v36 = vld [vmem:[#allocation10 + $0x214] sm:$0xf0]  ;;  %v3298_v34 = vpop.f32.mrf.mxu3  ;;  %v4805_v50 = vor.u32 %v6629_v30, %v4804_v29  ;;  %v5668_v4 = vld [vmem:[#allocation10 + $0x7c8] sm:$0xf] }
 0x133   : > { %v5268_v9 = vld [vmem:[#allocation10 + $0x4a8] sm:$0xf]  ;;  %v6841_v29 = vld [vmem:[#allocation10 + $0x7b4] sm:$0xf0] }
 0x134   : > { %3512 = vmatpush.bf16.msrb.mxu0 %v4725_v45  ;;  %3525 = vmatpush.bf16.msrb.mxu1 %v4853_v46  ;;  %v3245_v45 = vadd.f32 %v7693_v31, %v3232_v19  ;;  %v4677_v46 = vor.u32 %v6597_v21, %v4676_v14  ;;  %v6749_v31 = vld [vmem:[#allocation10 + $0x4d4] sm:$0xf0]  ;;  %v5396_v19 = vld [vmem:[#allocation10 + $0x5a8] sm:$0xf]  ;;  %v5269_v30 = vor.u32 %v6745_v11, %v5268_v9 }
 0x135   : > { %3538 = vmatpush.bf16.msrb.mxu2 %v4981_v47  ;;  %v6785_v47 = vld [vmem:[#allocation10 + $0x5f4] sm:$0xf0]  ;;  %v5380_v37 = vld [vmem:[#allocation10 + $0x588] sm:$0xf] }
 0x136   : > { %3551 = vmatpush.bf16.msrb.mxu3 %v5109_v51  ;;  %v4933_v51 = vor.u32 %v6661_v36, %v4932_v32  ;;  %v3258_v55 = vadd.f32 %v7702_v15, %v3245_v45  ;;  %v5429_v59 = vor.u32 %v6785_v47, %v5428_v23  ;;  %v6777_v21 = vld [vmem:[#allocation10 + $0x5b4] sm:$0xf0]  ;;  %v5508_v44 = vld [vmem:[#allocation10 + $0x688] sm:$0xf] }
 0x137   : > { %v6741_v36 = vld [vmem:[#allocation10 + $0x494] sm:$0xf0]  ;;  %v5636_v45 = vld [vmem:[#allocation10 + $0x788] sm:$0xf] }
 0x138   : > { %3513 = vmatpush.bf16.msrb.mxu0 %v4709_v62  ;;  %3526 = vmatpush.bf16.msrb.mxu1 %v4837_v61  ;;  %v5284_v62 = vld [vmem:[#allocation10 + $0x4c8] sm:$0xf]  ;;  %v5685_v61 = vor.u32 %v6849_v54, %v5684_v53  ;;  %v3271_v6 = vadd.f32 %v7705_v26, %v3258_v55  ;;  %v6805_v23 = vld [vmem:[#allocation10 + $0x694] sm:$0xf0] }
 0x139   : > { %3539 = vmatpush.bf16.msrb.mxu2 %v4965_v63  ;;  %v6781_v63 = vld [vmem:[#allocation10 + $0x5d4] sm:$0xf0]  ;;  %v5285_v15 = vor.u32 %v6749_v31, %v5284_v62  ;;  %v5652_v26 = vld [vmem:[#allocation10 + $0x7a8] sm:$0xf]  ;;  %v5509_v53 = vor.u32 %v6805_v23, %v5508_v44 }
 0x13a   : > { %3552 = vmatpush.bf16.msrb.mxu3 %v5093_v5  ;;  %v6845_v5 = vld [vmem:[#allocation10 + $0x7d4] sm:$0xf0]  ;;  %v5413_v7 = vor.u32 %v6781_v63, %v5412_v13  ;;  %v5653_v42 = vor.u32 %v6841_v29, %v5652_v26  ;;  %v5236_v54 = vld [vmem:[#allocation10 + $0x468] sm:$0xf] }
 0x13b   : > { %v5669_v14 = vor.u32 %v6845_v5, %v5668_v4  ;;  %v6737_v55 = vld [vmem:[#allocation10 + $0x474] sm:$0xf0]  ;;  %v5620_v13 = vld [vmem:[#allocation10 + $0x768] sm:$0xf] }
 0x13c   : > { %3514 = vmatpush.bf16.msrb.mxu0 %v4693_v2  ;;  %3527 = vmatpush.bf16.msrb.mxu1 %v4821_v22  ;;  %v3284_v2 = vadd.f32 %v7708_v52, %v3271_v6  ;;  %v5524_v22 = vld [vmem:[#allocation10 + $0x6a8] sm:$0xf]  ;;  %v5397_v52 = vor.u32 %v6777_v21, %v5396_v19  ;;  %v6801_v62 = vld [vmem:[#allocation10 + $0x674] sm:$0xf0]  ;;  %v5237_v3 = vor.u32 %v6737_v55, %v5236_v54 }
 0x13d   : > { %3540 = vmatpush.bf16.msrb.mxu2 %v4949_v27  ;;  %v6809_v27 = vld [vmem:[#allocation10 + $0x6b4] sm:$0xf0]  ;;  %v5220_v4 = vld [vmem:[#allocation10 + $0x448] sm:$0xf] }
 0x13e   : > { %3553 = vmatpush.bf16.msrb.mxu3 %v5077_v33  ;;  %v5525_v32 = vor.u32 %v6809_v27, %v5524_v22  ;;  %v5252_v33 = vld [vmem:[#allocation10 + $0x488] sm:$0xf]  ;;  %v3297_v40 = vadd.f32 %v7710_v56, %v3284_v2  ;;  %v3895_v31 = vld [vmem:[#allocation3] sm:$0xff] }
 0x13f   : > { %v5253_v48 = vor.u32 %v6741_v36, %v5252_v33  ;;  %v5364_v56 = vld [vmem:[#allocation10 + $0x568] sm:$0xf]  ;;  %v6797_v2 = vld [vmem:[#allocation10 + $0x654] sm:$0xf0] }
 0x140   : > { %3515 = vmatpush.bf16.msrb.mxu0 %v4677_v46  ;;  %3528 = vmatpush.bf16.msrb.mxu1 %v4805_v50  ;;  %v3309_v34 = vpop.f32.mrf.mxu0  ;;  %v6837_v46 = vld [vmem:[#allocation10 + $0x794] sm:$0xf0]  ;;  %v3322_v49 = vpop.f32.mrf.mxu1  ;;  %v3879_v50 = vld [vmem:[#allocation2 + $0x10] sm:$0xff] }
 0x141   : > { %3541 = vmatpush.bf16.msrb.mxu2 %v4933_v51  ;;  %v3310_v47 = vadd.f32 %v3309_v34, %v3297_v40  ;;  %v5381_v51 = vor.u32 %v6773_v43, %v5380_v37  ;;  %v5476_v19 = vld [vmem:[#allocation10 + $0x648] sm:$0xf]  ;;  %v6829_v22 = vld [vmem:[#allocation10 + $0x754] sm:$0xf0] }
 0x142   : > { %3554 = vmatpush.bf16.msrb.mxu3 %v5061_v57  ;;  %v5637_v57 = vor.u32 %v6837_v46, %v5636_v45  ;;  %v5604_v21 = vld [vmem:[#allocation10 + $0x748] sm:$0xf]  ;;  %v5477_v33 = vor.u32 %v6797_v2, %v5476_v19  ;;  %v6729_v37 = vld [vmem:[#allocation10 + $0x434] sm:$0xf0] }
 0x143   : > { %3516 = vmatmul.bf16.vlgmr.msrb.gmra.mxu0 %v7630_v10  ;;  %3529 = vmatmul.bf16.vlgmr.msrb.gmra.mxu1 %v7634_v18  ;;  %v5204_v36 = vld [vmem:[#allocation10 + $0x428] sm:$0xf]  ;;  %v6761_v43 = vld [vmem:[#allocation10 + $0x534] sm:$0xf0] }
 0x144   : > { %3560 = vmatpush.bf16.msra.mxu0 %v5301_v58  ;;  %3573 = vmatpush.bf16.msra.mxu1 %v5429_v59  ;;  %v3323_v58 = vadd.f32 %v3322_v49, %v3310_v47  ;;  %v6769_v59 = vld [vmem:[#allocation10 + $0x574] sm:$0xf0]  ;;  %v5332_v40 = vld [vmem:[#allocation10 + $0x528] sm:$0xf]  ;;  %v5205_v46 = vor.u32 %v6729_v37, %v5204_v36 }
 0x145   : > { %3586 = vmatpush.bf16.msra.mxu2 %v5557_v60  ;;  %3555 = vmatmul.bf16.vlgmr.msrb.gmra.mxu3 %v7632_v17  ;;  %v5492_v60 = vld [vmem:[#allocation10 + $0x668] sm:$0xf]  ;;  %v5365_v5 = vor.u32 %v6769_v59, %v5364_v56  ;;  %v6793_v23 = vld [vmem:[#allocation10 + $0x634] sm:$0xf0]  ;;  %v5333_v49 = vor.u32 %v6761_v43, %v5332_v40 }
 0x146   : > { %3599 = vmatpush.bf16.msra.mxu3 %v5685_v61  ;;  %3542 = vmatmul.bf16.vlgmr.msrb.gmra.mxu2 %v7627_v0  ;;  %v6833_v61 = vld [vmem:[#allocation10 + $0x774] sm:$0xf0]  ;;  %3875 = vst [vmem:[#allocation6] sm:$0xff] %v3323_v58  ;;  %v3887_v63 = vadd.f32 %v3879_v50, %v3323_v58  ;;  %v3899_v1 = vmul.f32 %v3323_v58, %v3323_v58  ;;  %v5460_v44 = vld [vmem:[#allocation10 + $0x628] sm:$0xf] }
 0x147   : > { %v5493_v6 = vor.u32 %v6801_v62, %v5492_v60  ;;  %v5621_v11 = vor.u32 %v6833_v61, %v5620_v13  ;;  %v5588_v34 = vld [vmem:[#allocation10 + $0x728] sm:$0xf]  ;;  %v6825_v45 = vld [vmem:[#allocation10 + $0x734] sm:$0xf0]  ;;  %v5461_v50 = vor.u32 %v6793_v23, %v5460_v44 }
 0x148   : > { %3561 = vmatpush.bf16.msra.mxu0 %v5285_v15  ;;  %3574 = vmatpush.bf16.msra.mxu1 %v5413_v7  ;;  %v6733_v15 = vld [vmem:[#allocation10 + $0x454] sm:$0xf0]  ;;  %v5348_v7 = vld [vmem:[#allocation10 + $0x548] sm:$0xf]  ;;  %3891 = vst [vmem:[#allocation2 + $0x10] sm:$0xff] %v3887_v63  ;;  %v3907_v9 = vadd.f32 %v3899_v1, %v3895_v31  ;;  %v3348_v27 = vpop.f32.mrf.mxu3  ;;  %v3311_v26 = vpop.f32.mrf.mxu0  ;;  %v5589_v55 = vor.u32 %v6825_v45, %v5588_v34 }
 0x149   : > { %3587 = vmatpush.bf16.msra.mxu2 %v5541_v8  ;;  %v6765_v8 = vld [vmem:[#allocation10 + $0x554] sm:$0xf0]  ;;  %v5221_v29 = vor.u32 %v6733_v15, %v5220_v4  ;;  %v5188_v47 = vld [vmem:[#allocation10 + $0x408] sm:$0xf] }
 0x14a   : > { %3600 = vmatpush.bf16.msra.mxu3 %v5669_v14  ;;  %v3335_v14 = vpop.f32.mrf.mxu2  ;;  %3911 = vst [vmem:[#allocation3] sm:$0xff] %v3907_v9  ;;  %v5444_v54 = vld [vmem:[#allocation10 + $0x608] sm:$0xf]  ;;  %v6789_v56 = vld [vmem:[#allocation10 + $0x614] sm:$0xf0] }
 0x14b   : > { %v6821_v58 = vld [vmem:[#allocation10 + $0x714] sm:$0xf0]  ;;  %v5812_v60 = vld [vmem:[#allocation10 + $0x8e8] sm:$0xf] }
 0x14c   : > { %3562 = vmatpush.bf16.msra.mxu0 %v5269_v30  ;;  %3575 = vmatpush.bf16.msra.mxu1 %v5397_v52  ;;  %v7723_v30 = vadd.f32 %v3348_v27, %v3335_v14  ;;  %v3324_v52 = vpop.f32.mrf.mxu1  ;;  %v6881_v62 = vld [vmem:[#allocation10 + $0x8f4] sm:$0xf0]  ;;  %v5940_v31 = vld [vmem:[#allocation10 + $0x9e8] sm:$0xf] }
 0x14d   : > { %3588 = vmatpush.bf16.msra.mxu2 %v5525_v32  ;;  %v5349_v32 = vor.u32 %v6765_v8, %v5348_v7  ;;  %v6913_v63 = vld [vmem:[#allocation10 + $0x9f4] sm:$0xf0]  ;;  %v6068_v1 = vld [vmem:[#allocation10 + $0xae8] sm:$0xf]  ;;  %v5813_v8 = vor.u32 %v6881_v62, %v5812_v60 }
 0x14e   : > { %3601 = vmatpush.bf16.msra.mxu3 %v5653_v42  ;;  %v5605_v42 = vor.u32 %v6829_v22, %v5604_v21  ;;  %v6977_v15 = vld [vmem:[#allocation10 + $0xbf4] sm:$0xf0]  ;;  %v5941_v9 = vor.u32 %v6913_v63, %v5940_v31  ;;  %v5796_v19 = vld [vmem:[#allocation10 + $0x8c8] sm:$0xf] }
 0x14f   : > { %v6877_v2 = vld [vmem:[#allocation10 + $0x8d4] sm:$0xf0]  ;;  %v5924_v14 = vld [vmem:[#allocation10 + $0x9c8] sm:$0xf] }
 0x150   : > { %3563 = vmatpush.bf16.msra.mxu0 %v5253_v48  ;;  %3576 = vmatpush.bf16.msra.mxu1 %v5381_v51  ;;  %v6725_v48 = vld [vmem:[#allocation10 + $0x414] sm:$0xf0]  ;;  %v5316_v51 = vld [vmem:[#allocation10 + $0x508] sm:$0xf]  ;;  %v3350_v13 = vpop.f32.mrf.mxu3 }
 0x151   : > { %3589 = vmatpush.bf16.msra.mxu2 %v5509_v53  ;;  %v6757_v53 = vld [vmem:[#allocation10 + $0x514] sm:$0xf0]  ;;  %v5189_v61 = vor.u32 %v6725_v48, %v5188_v47  ;;  %v6052_v27 = vld [vmem:[#allocation10 + $0xac8] sm:$0xf] }
 0x152   : > { %3602 = vmatpush.bf16.msra.mxu3 %v5637_v57  ;;  %v5572_v57 = vld [vmem:[#allocation10 + $0x708] sm:$0xf]  ;;  %v3337_v59 = vpop.f32.mrf.mxu2  ;;  %v5317_v4 = vor.u32 %v6757_v53, %v5316_v51  ;;  %v6909_v22 = vld [vmem:[#allocation10 + $0x9d4] sm:$0xf0] }
 0x153   : > { %v5573_v7 = vor.u32 %v6821_v58, %v5572_v57  ;;  %v6941_v26 = vld [vmem:[#allocation10 + $0xad4] sm:$0xf0]  ;;  %v5780_v37 = vld [vmem:[#allocation10 + $0x8a8] sm:$0xf] }
 0x154   : > { %3564 = vmatpush.bf16.msra.mxu0 %v5237_v3  ;;  %3577 = vmatpush.bf16.msra.mxu1 %v5365_v5  ;;  %v6945_v3 = vld [vmem:[#allocation10 + $0xaf4] sm:$0xf0]  ;;  %v5445_v5 = vor.u32 %v6789_v56, %v5444_v54  ;;  %v6053_v36 = vor.u32 %v6941_v26, %v6052_v27  ;;  %v6036_v23 = vld [vmem:[#allocation10 + $0xaa8] sm:$0xf] }
 0x155   : > { %3590 = vmatpush.bf16.msra.mxu2 %v5493_v6  ;;  %v6196_v6 = vld [vmem:[#allocation10 + $0xbe8] sm:$0xf]  ;;  %v6973_v52 = vld [vmem:[#allocation10 + $0xbd4] sm:$0xf0] }
 0x156   : > { %3603 = vmatpush.bf16.msra.mxu3 %v5621_v11  ;;  %v6069_v11 = vor.u32 %v6945_v3, %v6068_v1  ;;  %v6197_v21 = vor.u32 %v6977_v15, %v6196_v6  ;;  %v6873_v40 = vld [vmem:[#allocation10 + $0x8b4] sm:$0xf0]  ;;  %v6164_v45 = vld [vmem:[#allocation10 + $0xba8] sm:$0xf] }
 0x157   : > { %v6905_v44 = vld [vmem:[#allocation10 + $0x9b4] sm:$0xf0]  ;;  %v5781_v47 = vor.u32 %v6873_v40, %v5780_v37  ;;  %v5892_v53 = vld [vmem:[#allocation10 + $0x988] sm:$0xf] }
 0x158   : > { %3565 = vmatpush.bf16.msra.mxu0 %v5221_v29  ;;  %3578 = vmatpush.bf16.msra.mxu1 %v5349_v32  ;;  %v6180_v29 = vld [vmem:[#allocation10 + $0xbc8] sm:$0xf]  ;;  %v5797_v32 = vor.u32 %v6877_v2, %v5796_v19  ;;  %v6937_v34 = vld [vmem:[#allocation10 + $0xab4] sm:$0xf0] }
 0x159   : > { %3591 = vmatpush.bf16.msra.mxu2 %v5477_v33  ;;  %v5925_v33 = vor.u32 %v6909_v22, %v5924_v14  ;;  %v6181_v43 = vor.u32 %v6973_v52, %v6180_v29  ;;  %v6869_v51 = vld [vmem:[#allocation10 + $0x894] sm:$0xf0]  ;;  %v6020_v56 = vld [vmem:[#allocation10 + $0xa88] sm:$0xf] }
 0x15a   : > { %3604 = vmatpush.bf16.msra.mxu3 %v5605_v42  ;;  %v5908_v42 = vld [vmem:[#allocation10 + $0x9a8] sm:$0xf]  ;;  %v6933_v57 = vld [vmem:[#allocation10 + $0xa94] sm:$0xf0] }
 0x15b   : > { %v5909_v48 = vor.u32 %v6905_v44, %v5908_v42  ;;  %v6148_v58 = vld [vmem:[#allocation10 + $0xb88] sm:$0xf]  ;;  %v6965_v59 = vld [vmem:[#allocation10 + $0xb94] sm:$0xf0]  ;;  %v6021_v13 = vor.u32 %v6933_v57, %v6020_v56 }
 0x15c   : > { %3566 = vmatpush.bf16.msra.mxu0 %v5205_v46  ;;  %3579 = vmatpush.bf16.msra.mxu1 %v5333_v49  ;;  %v6969_v46 = vld [vmem:[#allocation10 + $0xbb4] sm:$0xf0]  ;;  %v6037_v49 = vor.u32 %v6937_v34, %v6036_v23  ;;  %v5876_v1 = vld [vmem:[#allocation10 + $0x968] sm:$0xf] }
 0x15d   : > { %3592 = vmatpush.bf16.msra.mxu2 %v5461_v50  ;;  %v5764_v50 = vld [vmem:[#allocation10 + $0x888] sm:$0xf]  ;;  %v6165_v54 = vor.u32 %v6969_v46, %v6164_v45  ;;  %v6865_v63 = vld [vmem:[#allocation10 + $0x874] sm:$0xf0] }
 0x15e   : > { %3605 = vmatpush.bf16.msra.mxu3 %v5589_v55  ;;  %v6901_v55 = vld [vmem:[#allocation10 + $0x994] sm:$0xf0]  ;;  %v5765_v60 = vor.u32 %v6869_v51, %v5764_v50  ;;  %v6004_v6 = vld [vmem:[#allocation10 + $0xa68] sm:$0xf] }
 0x15f   : > { %v5893_v31 = vor.u32 %v6901_v55, %v5892_v53  ;;  %v6929_v15 = vld [vmem:[#allocation10 + $0xa74] sm:$0xf0]  ;;  %v5732_v2 = vld [vmem:[#allocation10 + $0x848] sm:$0xf] }
 0x160   : > { %3567 = vmatpush.bf16.msra.mxu0 %v5189_v61  ;;  %3580 = vmatpush.bf16.msra.mxu1 %v5317_v4  ;;  %v7729_v62 = vpop.f32.mrf.mxu0  ;;  %v5748_v61 = vld [vmem:[#allocation10 + $0x868] sm:$0xf]  ;;  %v7731_v3 = vpop.f32.mrf.mxu1  ;;  %v6149_v4 = vor.u32 %v6965_v59, %v6148_v58  ;;  %v6005_v19 = vor.u32 %v6929_v15, %v6004_v6  ;;  %v6861_v14 = vld [vmem:[#allocation10 + $0x854] sm:$0xf0] }
 0x161   : > { %3593 = vmatpush.bf16.msra.mxu2 %v5445_v5  ;;  %v6897_v5 = vld [vmem:[#allocation10 + $0x974] sm:$0xf0]  ;;  %v5988_v29 = vld [vmem:[#allocation10 + $0xa48] sm:$0xf]  ;;  %v5733_v37 = vor.u32 %v6861_v14, %v5732_v2  ;;  %v6655_v14 = vld [vmem:[#allocation10 + $0x1ec] sm:$0xf] }
 0x162   : > { %3606 = vmatpush.bf16.msra.mxu3 %v5573_v7  ;;  %v6132_v7 = vld [vmem:[#allocation10 + $0xb68] sm:$0xf]  ;;  %v6893_v26 = vld [vmem:[#allocation10 + $0x954] sm:$0xf0] }
 0x163   : > { %3568 = vmatmul.bf16.vlgmr.msra.gmra.mxu0 %v7641_v38  ;;  %3581 = vmatmul.bf16.vlgmr.msra.gmra.mxu1 %v7645_v41  ;;  %v6925_v52 = vld [vmem:[#allocation10 + $0xa54] sm:$0xf0]  ;;  %v5716_v44 = vld [vmem:[#allocation10 + $0x828] sm:$0xf] }
 0x164   : > { %3612 = vmatpush.bf16.msrb.mxu0 %v5813_v8  ;;  %3625 = vmatpush.bf16.msrb.mxu1 %v5941_v9  ;;  %v6961_v8 = vld [vmem:[#allocation10 + $0xb74] sm:$0xf0]  ;;  %v5749_v9 = vor.u32 %v6865_v63, %v5748_v61  ;;  %v5844_v34 = vld [vmem:[#allocation10 + $0x928] sm:$0xf] }
 0x165   : > { %3638 = vmatpush.bf16.msrb.mxu2 %v6069_v11  ;;  %3607 = vmatmul.bf16.vlgmr.msra.gmra.mxu3 %v7643_v39  ;;  %v5877_v11 = vor.u32 %v6897_v5, %v5876_v1  ;;  %v6133_v27 = vor.u32 %v6961_v8, %v6132_v7  ;;  %v6857_v23 = vld [vmem:[#allocation10 + $0x834] sm:$0xf0]  ;;  %v6100_v50 = vld [vmem:[#allocation10 + $0xb28] sm:$0xf] }
 0x166   : > { %3651 = vmatpush.bf16.msrb.mxu3 %v6197_v21  ;;  %3594 = vmatmul.bf16.vlgmr.msra.gmra.mxu2 %v7639_v35  ;;  %v5860_v21 = vld [vmem:[#allocation10 + $0x948] sm:$0xf]  ;;  %v6953_v51 = vld [vmem:[#allocation10 + $0xb34] sm:$0xf0]  ;;  %v5717_v53 = vor.u32 %v6857_v23, %v5716_v44  ;;  %v4774_v44 = vld [vmem:[#allocation10 + $0xd8] sm:$0xf0] }
 0x167   : > { %v5861_v42 = vor.u32 %v6893_v26, %v5860_v21  ;;  %v6853_v55 = vld [vmem:[#allocation10 + $0x814] sm:$0xf0]  ;;  %v5828_v58 = vld [vmem:[#allocation10 + $0x908] sm:$0xf]  ;;  %v4918_v21 = vld [vmem:[#allocation10 + $0x1f8] sm:$0xf0] }
 0x168   : > { %3613 = vmatpush.bf16.msrb.mxu0 %v5797_v32  ;;  %3626 = vmatpush.bf16.msrb.mxu1 %v5925_v33  ;;  %v7735_v32 = vpop.f32.mrf.mxu3  ;;  %v6116_v33 = vld [vmem:[#allocation10 + $0xb48] sm:$0xf]  ;;  %v3363_v40 = vpop.f32.mrf.mxu0  ;;  %v6885_v59 = vld [vmem:[#allocation10 + $0x914] sm:$0xf0]  ;;  %v6651_v23 = vld [vmem:[#allocation10 + $0x1cc] sm:$0xf] }
 0x169   : > { %3639 = vmatpush.bf16.msrb.mxu2 %v6053_v36  ;;  %v7733_v22 = vpop.f32.mrf.mxu2  ;;  %v6957_v36 = vld [vmem:[#allocation10 + $0xb54] sm:$0xf0]  ;;  %v3376_v45 = vpop.f32.mrf.mxu1  ;;  %v6084_v63 = vld [vmem:[#allocation10 + $0xb08] sm:$0xf]  ;;  %v4921_v40 = vor.u32 %v6655_v14, %v4918_v21 }
 0x16a   : > { %3652 = vmatpush.bf16.msrb.mxu3 %v6181_v43  ;;  %v5989_v43 = vor.u32 %v6925_v52, %v5988_v29  ;;  %v6117_v46 = vor.u32 %v6957_v36, %v6116_v33  ;;  %v6917_v61 = vld [vmem:[#allocation10 + $0xa14] sm:$0xf0]  ;;  %v6324_v5 = vld [vmem:[#allocation10 + $0xce8] sm:$0xf] }
 0x16b   : > { %v6949_v1 = vld [vmem:[#allocation10 + $0xb14] sm:$0xf0]  ;;  %v6452_v15 = vld [vmem:[#allocation10 + $0xde8] sm:$0xf] }
 0x16c   : > { %3614 = vmatpush.bf16.msrb.mxu0 %v5781_v47  ;;  %3627 = vmatpush.bf16.msrb.mxu1 %v5909_v48  ;;  %v6889_v47 = vld [vmem:[#allocation10 + $0x934] sm:$0xf0]  ;;  %v5972_v48 = vld [vmem:[#allocation10 + $0xa28] sm:$0xf] }
 0x16d   : > { %3640 = vmatpush.bf16.msrb.mxu2 %v6037_v49  ;;  %v6921_v49 = vld [vmem:[#allocation10 + $0xa34] sm:$0xf0]  ;;  %v5845_v56 = vor.u32 %v6889_v47, %v5844_v34  ;;  %v6308_v33 = vld [vmem:[#allocation10 + $0xcc8] sm:$0xf]  ;;  %v4902_v34 = vld [vmem:[#allocation10 + $0x1d8] sm:$0xf0] }
 0x16e   : > { %3653 = vmatpush.bf16.msrb.mxu3 %v6165_v54  ;;  %v5700_v54 = vld [vmem:[#allocation10 + $0x808] sm:$0xf]  ;;  %v5973_v57 = vor.u32 %v6921_v49, %v5972_v48  ;;  %v7009_v6 = vld [vmem:[#allocation10 + $0xcf4] sm:$0xf0] }
 0x16f   : > { %v5701_v7 = vor.u32 %v6853_v55, %v5700_v54  ;;  %v7041_v8 = vld [vmem:[#allocation10 + $0xdf4] sm:$0xf0]  ;;  %v6325_v26 = vor.u32 %v7009_v6, %v6324_v5  ;;  %v6292_v48 = vld [vmem:[#allocation10 + $0xca8] sm:$0xf]  ;;  %v6615_v54 = vld [vmem:[#allocation10 + $0xac] sm:$0xf] }
 0x170   : > { %3615 = vmatpush.bf16.msrb.mxu0 %v5765_v60  ;;  %3628 = vmatpush.bf16.msrb.mxu1 %v5893_v31  ;;  %v5956_v60 = vld [vmem:[#allocation10 + $0xa08] sm:$0xf]  ;;  %v6453_v29 = vor.u32 %v7041_v8, %v6452_v15  ;;  %v7005_v36 = vld [vmem:[#allocation10 + $0xcd4] sm:$0xf0]  ;;  %v4758_v55 = vld [vmem:[#allocation10 + $0xb8] sm:$0xf0] }
 0x171   : > { %3641 = vmatpush.bf16.msrb.mxu2 %v6021_v13  ;;  %v3389_v31 = vpop.f32.mrf.mxu2  ;;  %v6101_v13 = vor.u32 %v6953_v51, %v6100_v50  ;;  %v5957_v2 = vor.u32 %v6917_v61, %v5956_v60  ;;  %v6309_v45 = vor.u32 %v7005_v36, %v6308_v33  ;;  %v7001_v49 = vld [vmem:[#allocation10 + $0xcb4] sm:$0xf0]  ;;  %v6420_v50 = vld [vmem:[#allocation10 + $0xda8] sm:$0xf]  ;;  %v4905_v51 = vor.u32 %v6651_v23, %v4902_v34  ;;  %v4742_v5 = vld [vmem:[#allocation10 + $0x98] sm:$0xf0] }
 0x172   : > { %3654 = vmatpush.bf16.msrb.mxu3 %v6149_v4  ;;  %v3402_v4 = vpop.f32.mrf.mxu3  ;;  %v4761_v60 = vor.u32 %v6615_v54, %v4758_v55  ;;  %v6276_v31 = vld [vmem:[#allocation10 + $0xc88] sm:$0xf]  ;;  %v6643_v15 = vld [vmem:[#allocation10 + $0x18c] sm:$0xf]  ;;  %v6993_v14 = vld [vmem:[#allocation10 + $0xc74] sm:$0xf0] }
 0x173   : > { %v6404_v61 = vld [vmem:[#allocation10 + $0xd88] sm:$0xf]  ;;  %v6611_v4 = vld [vmem:[#allocation10 + $0x8c] sm:$0xf]  ;;  %v4854_v36 = vld [vmem:[#allocation10 + $0x178] sm:$0xf0] }
 0x174   : > { %3616 = vmatpush.bf16.msrb.mxu0 %v5749_v9  ;;  %3629 = vmatpush.bf16.msrb.mxu1 %v5877_v11  ;;  %v6623_v9 = vld [vmem:[#allocation10 + $0xec] sm:$0xf]  ;;  %v4790_v11 = vld [vmem:[#allocation10 + $0xf8] sm:$0xf0]  ;;  %v6388_v21 = vld [vmem:[#allocation10 + $0xd68] sm:$0xf] }
 0x175   : > { %3642 = vmatpush.bf16.msrb.mxu2 %v6005_v19  ;;  %v5829_v19 = vor.u32 %v6885_v59, %v5828_v58  ;;  %v4793_v52 = vor.u32 %v6623_v9, %v4790_v11  ;;  %v6293_v58 = vor.u32 %v7001_v49, %v6292_v48  ;;  %v6639_v33 = vld [vmem:[#allocation10 + $0x16c] sm:$0xf]  ;;  %v6989_v23 = vld [vmem:[#allocation10 + $0xc54] sm:$0xf0]  ;;  %v6372_v34 = vld [vmem:[#allocation10 + $0xd48] sm:$0xf] }
 0x176   : > { %3655 = vmatpush.bf16.msrb.mxu3 %v6133_v27  ;;  %v6085_v27 = vor.u32 %v6949_v1, %v6084_v63  ;;  %v7029_v1 = vld [vmem:[#allocation10 + $0xd94] sm:$0xf0]  ;;  %v6603_v48 = vld [vmem:[#allocation10 + $0x4c] sm:$0xf]  ;;  %v4710_v49 = vld [vmem:[#allocation10 + $0x58] sm:$0xf0] }
 0x177   : > { %v6405_v11 = vor.u32 %v7029_v1, %v6404_v61  ;;  %v6599_v61 = vld [vmem:[#allocation10 + $0x2c] sm:$0xf] }
 0x178   : > { %3617 = vmatpush.bf16.msrb.mxu0 %v5733_v37  ;;  %3630 = vmatpush.bf16.msrb.mxu1 %v5861_v42  ;;  %v6436_v37 = vld [vmem:[#allocation10 + $0xdc8] sm:$0xf]  ;;  %v7037_v42 = vld [vmem:[#allocation10 + $0xdd4] sm:$0xf0]  ;;  %v6631_v1 = vld [vmem:[#allocation10 + $0x12c] sm:$0xf] }
 0x179   : > { %3643 = vmatpush.bf16.msrb.mxu2 %v5989_v43  ;;  %v6619_v43 = vld [vmem:[#allocation10 + $0xcc] sm:$0xf] }
 0x17a   : > { %3656 = vmatpush.bf16.msrb.mxu3 %v6117_v46  ;;  %v6437_v46 = vor.u32 %v7037_v42, %v6436_v37  ;;  %v4777_v47 = vor.u32 %v6619_v43, %v4774_v44  ;;  %v6244_v44 = vld [vmem:[#allocation10 + $0xc48] sm:$0xf] }
 0x17c   : > { %3618 = vmatpush.bf16.msrb.mxu0 %v5717_v53  ;;  %3631 = vmatpush.bf16.msrb.mxu1 %v5845_v56  ;;  %v7033_v53 = vld [vmem:[#allocation10 + $0xdb4] sm:$0xf0]  ;;  %v6647_v56 = vld [vmem:[#allocation10 + $0x1ac] sm:$0xf] }
 0x17d   : > { %3644 = vmatpush.bf16.msrb.mxu2 %v5973_v57  ;;  %v4886_v57 = vld [vmem:[#allocation10 + $0x1b8] sm:$0xf0]  ;;  %v6421_v59 = vor.u32 %v7033_v53, %v6420_v50 }
 0x17e   : > { %3657 = vmatpush.bf16.msrb.mxu3 %v6101_v13  ;;  %v6997_v13 = vld [vmem:[#allocation10 + $0xc94] sm:$0xf0]  ;;  %v4889_v63 = vor.u32 %v6647_v56, %v4886_v57  ;;  %v4838_v53 = vld [vmem:[#allocation10 + $0x158] sm:$0xf0]  ;;  %v4713_v57 = vor.u32 %v6603_v48, %v4710_v49 }
 0x17f   : > { %v6277_v8 = vor.u32 %v6997_v13, %v6276_v31  ;;  %v7017_v13 = vld [vmem:[#allocation10 + $0xd34] sm:$0xf0]  ;;  %v5430_v48 = vld [vmem:[#allocation10 + $0x5f8] sm:$0xf0] }
 0x180   : > { %3619 = vmatpush.bf16.msrb.mxu0 %v5701_v7  ;;  %3632 = vmatpush.bf16.msrb.mxu1 %v5829_v19  ;;  %v7741_v6 = vpop.f32.mrf.mxu0  ;;  %v4870_v7 = vld [vmem:[#allocation10 + $0x198] sm:$0xf0]  ;;  %v7743_v9 = vpop.f32.mrf.mxu1  ;;  %v4745_v19 = vor.u32 %v6611_v4, %v4742_v5 }
 0x181   : > { %3645 = vmatpush.bf16.msrb.mxu2 %v5957_v2  ;;  %v6260_v2 = vld [vmem:[#allocation10 + $0xc68] sm:$0xf]  ;;  %v4822_v4 = vld [vmem:[#allocation10 + $0x138] sm:$0xf0] }
 0x182   : > { %3658 = vmatpush.bf16.msrb.mxu3 %v6085_v27  ;;  %v4873_v27 = vor.u32 %v6643_v15, %v4870_v7  ;;  %v6261_v37 = vor.u32 %v6993_v14, %v6260_v2  ;;  %v6212_v15 = vld [vmem:[#allocation10 + $0xc08] sm:$0xf]  ;;  %v6981_v7 = vld [vmem:[#allocation10 + $0xc14] sm:$0xf0]  ;;  %v6595_v14 = vld [vmem:[#allocation10 + $0xc] sm:$0xf] }
 0x183   : > { %3620 = vmatmul.bf16.vlgmr.msrb.gmra.mxu0 %v7651_v20  ;;  %3633 = vmatmul.bf16.vlgmr.msrb.gmra.mxu1 %v7655_v25  ;;  %v7013_v2 = vld [vmem:[#allocation10 + $0xd14] sm:$0xf0] }
 0x184   : > { %3664 = vmatpush.bf16.msra.mxu0 %v6325_v26  ;;  %3677 = vmatpush.bf16.msra.mxu1 %v6453_v29  ;;  %v7025_v26 = vld [vmem:[#allocation10 + $0xd74] sm:$0xf0]  ;;  %v6607_v29 = vld [vmem:[#allocation10 + $0x6c] sm:$0xf] }
 0x185   : > { %3690 = vmatpush.bf16.msra.mxu2 %v4793_v52  ;;  %3659 = vmatmul.bf16.vlgmr.msrb.gmra.mxu3 %v7657_v28  ;;  %v4726_v52 = vld [vmem:[#allocation10 + $0x78] sm:$0xf0]  ;;  %v6389_v42 = vor.u32 %v7025_v26, %v6388_v21  ;;  %v4825_v21 = vor.u32 %v6631_v1, %v4822_v4  ;;  %v6627_v26 = vld [vmem:[#allocation10 + $0x10c] sm:$0xf] }
 0x186   : > { %3703 = vmatpush.bf16.msra.mxu3 %v4921_v40  ;;  %3646 = vmatmul.bf16.vlgmr.msrb.gmra.mxu2 %v7653_v24  ;;  %v3362_v40 = vadd.f32 %v7729_v62, %v7723_v30  ;;  %v4729_v43 = vor.u32 %v6607_v29, %v4726_v52  ;;  %v6245_v30 = vor.u32 %v6989_v23, %v6244_v44  ;;  %v4806_v29 = vld [vmem:[#allocation10 + $0x118] sm:$0xf0]  ;;  %v6679_v1 = vld [vmem:[#allocation10 + $0x2ac] sm:$0xf] }
 0x187   : > { %v5302_v44 = vld [vmem:[#allocation10 + $0x4f8] sm:$0xf0]  ;;  %v4809_v49 = vor.u32 %v6627_v26, %v4806_v29  ;;  %v6707_v29 = vld [vmem:[#allocation10 + $0x38c] sm:$0xf] }
 0x188   : > { %3665 = vmatpush.bf16.msra.mxu0 %v6309_v45  ;;  %3678 = vmatpush.bf16.msra.mxu1 %v6437_v46  ;;  %v4857_v45 = vor.u32 %v6639_v33, %v4854_v36  ;;  %v7749_v50 = vpop.f32.mrf.mxu3  ;;  %v3415_v54 = vpop.f32.mrf.mxu0  ;;  %v3375_v55 = vadd.f32 %v7731_v3, %v3362_v40  ;;  %v6687_v33 = vld [vmem:[#allocation10 + $0x2ec] sm:$0xf]  ;;  %v5046_v36 = vld [vmem:[#allocation10 + $0x2f8] sm:$0xf0] }
 0x189   : > { %3691 = vmatpush.bf16.msra.mxu2 %v4777_v47  ;;  %v7747_v46 = vpop.f32.mrf.mxu2  ;;  %v7021_v47 = vld [vmem:[#allocation10 + $0xd54] sm:$0xf0]  ;;  %v3428_v62 = vpop.f32.mrf.mxu1  ;;  %v5014_v4 = vld [vmem:[#allocation10 + $0x2b8] sm:$0xf0] }
 0x18a   : > { %3704 = vmatpush.bf16.msra.mxu3 %v4905_v51  ;;  %v6635_v51 = vld [vmem:[#allocation10 + $0x14c] sm:$0xf]  ;;  %v6373_v56 = vor.u32 %v7021_v47, %v6372_v34  ;;  %v3388_v3 = vadd.f32 %v7733_v22, %v3375_v55  ;;  %v5174_v22 = vld [vmem:[#allocation10 + $0x3f8] sm:$0xf0] }
 0x18b   : > { %v4841_v31 = vor.u32 %v6635_v51, %v4838_v53  ;;  %v6783_v47 = vld [vmem:[#allocation10 + $0x5ec] sm:$0xf]  ;;  %v5049_v51 = vor.u32 %v6687_v33, %v5046_v36  ;;  %v5030_v55 = vld [vmem:[#allocation10 + $0x2d8] sm:$0xf0] }
 0x18c   : > { %3666 = vmatpush.bf16.msra.mxu0 %v6293_v58  ;;  %3679 = vmatpush.bf16.msra.mxu1 %v6421_v59  ;;  %v6228_v58 = vld [vmem:[#allocation10 + $0xc28] sm:$0xf]  ;;  %v6985_v59 = vld [vmem:[#allocation10 + $0xc34] sm:$0xf0]  ;;  %v3401_v23 = vadd.f32 %v7735_v32, %v3388_v3  ;;  %v6683_v62 = vld [vmem:[#allocation10 + $0x2cc] sm:$0xf] }
 0x18d   : > { %3692 = vmatpush.bf16.msra.mxu2 %v4761_v60  ;;  %v6356_v60 = vld [vmem:[#allocation10 + $0xd28] sm:$0xf]  ;;  %v6229_v5 = vor.u32 %v6985_v59, %v6228_v58  ;;  %v5158_v58 = vld [vmem:[#allocation10 + $0x3d8] sm:$0xf0]  ;;  %v6747_v32 = vld [vmem:[#allocation10 + $0x4cc] sm:$0xf] }
 0x18e   : > { %3705 = vmatpush.bf16.msra.mxu3 %v4889_v63  ;;  %v4694_v63 = vld [vmem:[#allocation10 + $0x38] sm:$0xf0]  ;;  %v3414_v53 = vadd.f32 %v7741_v6, %v3401_v23  ;;  %v6743_v3 = vld [vmem:[#allocation10 + $0x4ac] sm:$0xf] }
 0x18f   : > { %v5286_v59 = vld [vmem:[#allocation10 + $0x4d8] sm:$0xf0]  ;;  %v6739_v33 = vld [vmem:[#allocation10 + $0x48c] sm:$0xf] }
 0x190   : > { %3667 = vmatpush.bf16.msra.mxu0 %v6277_v8  ;;  %3680 = vmatpush.bf16.msra.mxu1 %v6405_v11  ;;  %v6357_v8 = vor.u32 %v7017_v13, %v6356_v60  ;;  %v4697_v11 = vor.u32 %v6599_v61, %v4694_v63  ;;  %v3454_v40 = vpop.f32.mrf.mxu3  ;;  %v6779_v60 = vld [vmem:[#allocation10 + $0x5cc] sm:$0xf]  ;;  %v5033_v13 = vor.u32 %v6683_v62, %v5030_v55  ;;  %v4998_v26 = vld [vmem:[#allocation10 + $0x298] sm:$0xf0] }
 0x191   : > { %3693 = vmatpush.bf16.msra.mxu2 %v4745_v19  ;;  %v6340_v19 = vld [vmem:[#allocation10 + $0xd08] sm:$0xf]  ;;  %v3441_v52 = vpop.f32.mrf.mxu2  ;;  %v3427_v61 = vadd.f32 %v7743_v9, %v3414_v53  ;;  %v5289_v63 = vor.u32 %v6747_v32, %v5286_v59  ;;  %v5398_v9 = vld [vmem:[#allocation10 + $0x5b8] sm:$0xf0]  ;;  %v6699_v32 = vld [vmem:[#allocation10 + $0x34c] sm:$0xf] }
 0x192   : > { %3706 = vmatpush.bf16.msra.mxu3 %v4873_v27  ;;  %v4678_v27 = vld [vmem:[#allocation10 + $0x18] sm:$0xf0]  ;;  %v6341_v34 = vor.u32 %v7013_v2, %v6340_v19  ;;  %v6775_v19 = vld [vmem:[#allocation10 + $0x5ac] sm:$0xf]  ;;  %v5017_v2 = vor.u32 %v6679_v1, %v5014_v4 }
 0x193   : > { %v5401_v52 = vor.u32 %v6775_v19, %v5398_v9  ;;  %v5254_v36 = vld [vmem:[#allocation10 + $0x498] sm:$0xf0]  ;;  %v6763_v1 = vld [vmem:[#allocation10 + $0x54c] sm:$0xf] }
 0x194   : > { %3668 = vmatpush.bf16.msra.mxu0 %v6261_v37  ;;  %3681 = vmatpush.bf16.msra.mxu1 %v6389_v42  ;;  %v6719_v37 = vld [vmem:[#allocation10 + $0x3ec] sm:$0xf]  ;;  %v6213_v42 = vor.u32 %v6981_v7, %v6212_v15  ;;  %v5142_v7 = vld [vmem:[#allocation10 + $0x3b8] sm:$0xf0]  ;;  %v5257_v23 = vor.u32 %v6739_v33, %v5254_v36 }
 0x195   : > { %3694 = vmatpush.bf16.msra.mxu2 %v4729_v43  ;;  %v6751_v43 = vld [vmem:[#allocation10 + $0x4ec] sm:$0xf]  ;;  %v5177_v54 = vor.u32 %v6719_v37, %v5174_v22  ;;  %v5238_v53 = vld [vmem:[#allocation10 + $0x478] sm:$0xf0] }
 0x196   : > { %3707 = vmatpush.bf16.msra.mxu3 %v4857_v45  ;;  %v4681_v45 = vor.u32 %v6595_v14, %v4678_v27  ;;  %v6675_v27 = vld [vmem:[#allocation10 + $0x28c] sm:$0xf]  ;;  %v5350_v4 = vld [vmem:[#allocation10 + $0x558] sm:$0xf0] }
 0x197   : > { %v5001_v22 = vor.u32 %v6675_v27, %v4998_v26  ;;  %v5078_v27 = vld [vmem:[#allocation10 + $0x338] sm:$0xf0]  ;;  %v5353_v26 = vor.u32 %v6763_v1, %v5350_v4  ;;  %v6843_v4 = vld [vmem:[#allocation10 + $0x7cc] sm:$0xf] }
 0x198   : > { %3669 = vmatpush.bf16.msra.mxu0 %v6245_v30  ;;  %3682 = vmatpush.bf16.msra.mxu1 %v6373_v56  ;;  %v5305_v30 = vor.u32 %v6751_v43, %v5302_v44  ;;  %v6715_v56 = vld [vmem:[#allocation10 + $0x3cc] sm:$0xf]  ;;  %v5542_v1 = vld [vmem:[#allocation10 + $0x6d8] sm:$0xf0] }
 0x199   : > { %3695 = vmatpush.bf16.msra.mxu2 %v4713_v57  ;;  %v5433_v57 = vor.u32 %v6783_v47, %v5430_v48  ;;  %v5161_v6 = vor.u32 %v6715_v56, %v5158_v58  ;;  %v6703_v47 = vld [vmem:[#allocation10 + $0x36c] sm:$0xf]  ;;  %v4966_v58 = vld [vmem:[#allocation10 + $0x258] sm:$0xf0] }
 0x19a   : > { %3708 = vmatpush.bf16.msra.mxu3 %v4841_v31  ;;  %v5414_v31 = vld [vmem:[#allocation10 + $0x5d8] sm:$0xf0] }
 0x19b   : > { %v5417_v15 = vor.u32 %v6779_v60, %v5414_v31  ;;  %v5094_v31 = vld [vmem:[#allocation10 + $0x358] sm:$0xf0] }
 0x19c   : > { %3670 = vmatpush.bf16.msra.mxu0 %v6229_v5  ;;  %3683 = vmatpush.bf16.msra.mxu1 %v6357_v8  ;;  %v6711_v5 = vld [vmem:[#allocation10 + $0x3ac] sm:$0xf]  ;;  %v5270_v8 = vld [vmem:[#allocation10 + $0x4b8] sm:$0xf0]  ;;  %v5097_v9 = vor.u32 %v6699_v32, %v5094_v31 }
 0x19d   : > { %3696 = vmatpush.bf16.msra.mxu2 %v4697_v11  ;;  %v3440_v11 = vadd.f32 %v7747_v46, %v3427_v61  ;;  %v5145_v14 = vor.u32 %v6711_v5, %v5142_v7  ;;  %v5126_v46 = vld [vmem:[#allocation10 + $0x398] sm:$0xf0]  ;;  %v3896_v7 = vld [vmem:[#allocation3 + $0x18] sm:$0xff] }
 0x19e   : > { %3709 = vmatpush.bf16.msra.mxu3 %v4825_v21  ;;  %v5273_v21 = vor.u32 %v6743_v3, %v5270_v8  ;;  %v5129_v44 = vor.u32 %v6707_v29, %v5126_v46  ;;  %v5222_v61 = vld [vmem:[#allocation10 + $0x458] sm:$0xf0]  ;;  %v6663_v8 = vld [vmem:[#allocation10 + $0x22c] sm:$0xf] }
 0x19f   : > { %v3453_v37 = vadd.f32 %v7749_v50, %v3440_v11  ;;  %v6767_v50 = vld [vmem:[#allocation10 + $0x56c] sm:$0xf] }
 0x1a0   : > { %3671 = vmatpush.bf16.msra.mxu0 %v6213_v42  ;;  %3684 = vmatpush.bf16.msra.mxu1 %v6341_v34  ;;  %v3465_v40 = vpop.f32.mrf.mxu0  ;;  %v5382_v42 = vld [vmem:[#allocation10 + $0x598] sm:$0xf0]  ;;  %v6671_v34 = vld [vmem:[#allocation10 + $0x26c] sm:$0xf] }
 0x1a1   : > { %3697 = vmatpush.bf16.msra.mxu2 %v4681_v45  ;;  %v3466_v43 = vadd.f32 %v3465_v40, %v3453_v37  ;;  %v4982_v45 = vld [vmem:[#allocation10 + $0x278] sm:$0xf0]  ;;  %v6727_v29 = vld [vmem:[#allocation10 + $0x42c] sm:$0xf] }
 0x1a2   : > { %3710 = vmatpush.bf16.msra.mxu3 %v4809_v49  ;;  %v5110_v49 = vld [vmem:[#allocation10 + $0x378] sm:$0xf0]  ;;  %v6759_v46 = vld [vmem:[#allocation10 + $0x52c] sm:$0xf] }
 0x1a3   : > { %3672 = vmatmul.bf16.vlgmr.msra.gmra.mxu0 %v7663_v12  ;;  %3685 = vmatmul.bf16.vlgmr.msra.gmra.mxu1 %v7665_v16  ;;  %v5113_v55 = vor.u32 %v6703_v47, %v5110_v49  ;;  %v5334_v37 = vld [vmem:[#allocation10 + $0x538] sm:$0xf0]  ;;  %v6659_v40 = vld [vmem:[#allocation10 + $0x20c] sm:$0xf] }
 0x1a4   : > { %3716 = vmatpush.bf16.msrb.mxu0 %v5049_v51  ;;  %3729 = vmatpush.bf16.msrb.mxu1 %v5177_v54  ;;  %v6735_v51 = vld [vmem:[#allocation10 + $0x46c] sm:$0xf]  ;;  %v5366_v54 = vld [vmem:[#allocation10 + $0x578] sm:$0xf0]  ;;  %v5337_v47 = vor.u32 %v6759_v46, %v5334_v37 }
 0x1a5   : > { %3742 = vmatpush.bf16.msrb.mxu2 %v5305_v30  ;;  %3711 = vmatmul.bf16.vlgmr.msra.gmra.mxu3 %v7634_v18  ;;  %v3478_v18 = vpop.f32.mrf.mxu1  ;;  %v4985_v30 = vor.u32 %v6671_v34, %v4982_v45  ;;  %v5241_v56 = vor.u32 %v6735_v51, %v5238_v53  ;;  %v5369_v59 = vor.u32 %v6767_v50, %v5366_v54  ;;  %v6723_v34 = vld [vmem:[#allocation10 + $0x40c] sm:$0xf]  ;;  %v5190_v45 = vld [vmem:[#allocation10 + $0x418] sm:$0xf0] }
 0x1a6   : > { %3755 = vmatpush.bf16.msrb.mxu3 %v5433_v57  ;;  %3698 = vmatmul.bf16.vlgmr.msra.gmra.mxu2 %v7630_v10  ;;  %v6771_v10 = vld [vmem:[#allocation10 + $0x58c] sm:$0xf]  ;;  %v3479_v62 = vadd.f32 %v3478_v18, %v3466_v43  ;;  %v5062_v18 = vld [vmem:[#allocation10 + $0x318] sm:$0xf0]  ;;  %v5193_v32 = vor.u32 %v6723_v34, %v5190_v45 }
 0x1a7   : > { %v5385_v48 = vor.u32 %v6771_v10, %v5382_v42  ;;  %v6667_v57 = vld [vmem:[#allocation10 + $0x24c] sm:$0xf]  ;;  %v4934_v42 = vld [vmem:[#allocation10 + $0x218] sm:$0xf0] }
 0x1a8   : > { %3717 = vmatpush.bf16.msrb.mxu0 %v5033_v13  ;;  %3730 = vmatpush.bf16.msrb.mxu1 %v5161_v6  ;;  %v6731_v13 = vld [vmem:[#allocation10 + $0x44c] sm:$0xf]  ;;  %v3467_v5 = vpop.f32.mrf.mxu0  ;;  %v4969_v3 = vor.u32 %v6667_v57, %v4966_v58  ;;  %v5318_v49 = vld [vmem:[#allocation10 + $0x518] sm:$0xf0] }
 0x1a9   : > { %3743 = vmatpush.bf16.msrb.mxu2 %v5289_v63  ;;  %v3491_v60 = vpop.f32.mrf.mxu2  ;;  %v3504_v63 = vpop.f32.mrf.mxu3  ;;  %v6815_v51 = vld [vmem:[#allocation10 + $0x6ec] sm:$0xf]  ;;  %v5558_v50 = vld [vmem:[#allocation10 + $0x6f8] sm:$0xf0] }
 0x1aa   : > { %3756 = vmatpush.bf16.msrb.mxu3 %v5417_v15  ;;  %v3492_v6 = vadd.f32 %v3491_v60, %v3479_v62  ;;  %v3880_v15 = vld [vmem:[#allocation2] sm:$0xff]  ;;  %v6847_v54 = vld [vmem:[#allocation10 + $0x7ec] sm:$0xf]  ;;  %v4937_v62 = vor.u32 %v6659_v40, %v4934_v42 }
 0x1ab   : > { %v5814_v57 = vld [vmem:[#allocation10 + $0x8f8] sm:$0xf0]  ;;  %v6803_v42 = vld [vmem:[#allocation10 + $0x68c] sm:$0xf] }
 0x1ac   : > { %3718 = vmatpush.bf16.msrb.mxu0 %v5017_v2  ;;  %3731 = vmatpush.bf16.msrb.mxu1 %v5145_v14  ;;  %v3505_v19 = vadd.f32 %v3504_v63, %v3492_v6  ;;  %v5225_v2 = vor.u32 %v6731_v13, %v5222_v61  ;;  %v4950_v14 = vld [vmem:[#allocation10 + $0x238] sm:$0xf0]  ;;  %v5561_v13 = vor.u32 %v6815_v51, %v5558_v50  ;;  %v6811_v63 = vld [vmem:[#allocation10 + $0x6cc] sm:$0xf] }
 0x1ad   : > { %3744 = vmatpush.bf16.msrb.mxu2 %v5273_v21  ;;  %v3480_v11 = vpop.f32.mrf.mxu1  ;;  %v6695_v21 = vld [vmem:[#allocation10 + $0x32c] sm:$0xf]  ;;  %v4953_v10 = vor.u32 %v6663_v8, %v4950_v14  ;;  %v5942_v60 = vld [vmem:[#allocation10 + $0x9f8] sm:$0xf0] }
 0x1ae   : > { %3757 = vmatpush.bf16.msrb.mxu3 %v5401_v52  ;;  %v5206_v52 = vld [vmem:[#allocation10 + $0x438] sm:$0xf0]  ;;  %3876 = vst [vmem:[#allocation6 + $0x8] sm:$0xff] %v3505_v19  ;;  %v3888_v33 = vadd.f32 %v3880_v15, %v3505_v19  ;;  %v3900_v36 = vmul.f32 %v3505_v19, %v3505_v19  ;;  %v6907_v8 = vld [vmem:[#allocation10 + $0x9cc] sm:$0xf]  ;;  %v5545_v19 = vor.u32 %v6811_v63, %v5542_v1 }
 0x1af   : > { %v5670_v15 = vld [vmem:[#allocation10 + $0x7d8] sm:$0xf0]  ;;  %v6807_v14 = vld [vmem:[#allocation10 + $0x6ac] sm:$0xf] }
 0x1b0   : > { %3719 = vmatpush.bf16.msrb.mxu0 %v5001_v22  ;;  %3732 = vmatpush.bf16.msrb.mxu1 %v5129_v44  ;;  %v6691_v22 = vld [vmem:[#allocation10 + $0x30c] sm:$0xf]  ;;  %3892 = vst [vmem:[#allocation2] sm:$0xff] %v3888_v33  ;;  %v3908_v43 = vadd.f32 %v3900_v36, %v3896_v7  ;;  %v5081_v44 = vor.u32 %v6695_v21, %v5078_v27  ;;  %v5926_v11 = vld [vmem:[#allocation10 + $0x9d8] sm:$0xf0] }
 0x1b1   : > { %3745 = vmatpush.bf16.msrb.mxu2 %v5257_v23  ;;  %v5209_v23 = vor.u32 %v6727_v29, %v5206_v52  ;;  %v3493_v53 = vpop.f32.mrf.mxu2  ;;  %v5065_v58 = vor.u32 %v6691_v22, %v5062_v18  ;;  %v6875_v7 = vld [vmem:[#allocation10 + $0x8cc] sm:$0xf]  ;;  %v5526_v21 = vld [vmem:[#allocation10 + $0x6b8] sm:$0xf0] }
 0x1b2   : > { %3758 = vmatpush.bf16.msrb.mxu3 %v5385_v48  ;;  %v6755_v48 = vld [vmem:[#allocation10 + $0x50c] sm:$0xf]  ;;  %3912 = vst [vmem:[#allocation3 + $0x18] sm:$0xff] %v3908_v43  ;;  %v5654_v29 = vld [vmem:[#allocation10 + $0x7b8] sm:$0xf0]  ;;  %v5529_v37 = vor.u32 %v6807_v14, %v5526_v21 }
 0x1b3   : > { %v5321_v31 = vor.u32 %v6755_v48, %v5318_v49  ;;  %v6839_v27 = vld [vmem:[#allocation10 + $0x7ac] sm:$0xf]  ;;  %v5782_v46 = vld [vmem:[#allocation10 + $0x8b8] sm:$0xf0] }
 0x1b4   : > { %3720 = vmatpush.bf16.msrb.mxu0 %v4985_v30  ;;  %3733 = vmatpush.bf16.msrb.mxu1 %v5113_v55  ;;  %v3506_v30 = vpop.f32.mrf.mxu3  ;;  %v5686_v55 = vld [vmem:[#allocation10 + $0x7f8] sm:$0xf0]  ;;  %v6871_v52 = vld [vmem:[#allocation10 + $0x8ac] sm:$0xf]  ;;  %v5657_v40 = vor.u32 %v6839_v27, %v5654_v29 }
 0x1b5   : > { %3746 = vmatpush.bf16.msrb.mxu2 %v5241_v56  ;;  %v6879_v56 = vld [vmem:[#allocation10 + $0x8ec] sm:$0xf]  ;;  %v5689_v61 = vor.u32 %v6847_v54, %v5686_v55  ;;  %v5910_v36 = vld [vmem:[#allocation10 + $0x9b8] sm:$0xf0] }
 0x1b6   : > { %3759 = vmatpush.bf16.msrb.mxu3 %v5369_v59  ;;  %v6911_v59 = vld [vmem:[#allocation10 + $0x9ec] sm:$0xf]  ;;  %v5817_v6 = vor.u32 %v6879_v56, %v5814_v57  ;;  %v5510_v22 = vld [vmem:[#allocation10 + $0x698] sm:$0xf0] }
 0x1b7   : > { %v5945_v5 = vor.u32 %v6911_v59, %v5942_v60  ;;  %v6903_v33 = vld [vmem:[#allocation10 + $0x9ac] sm:$0xf]  ;;  %v5638_v43 = vld [vmem:[#allocation10 + $0x798] sm:$0xf0]  ;;  %v5513_v34 = vor.u32 %v6803_v42, %v5510_v22 }
 0x1b8   : > { %3721 = vmatpush.bf16.msrb.mxu0 %v4969_v3  ;;  %3734 = vmatpush.bf16.msrb.mxu1 %v5097_v9  ;;  %v5798_v3 = vld [vmem:[#allocation10 + $0x8d8] sm:$0xf0]  ;;  %v5673_v9 = vor.u32 %v6843_v4, %v5670_v15  ;;  %v5913_v18 = vor.u32 %v6903_v33, %v5910_v36  ;;  %v6799_v48 = vld [vmem:[#allocation10 + $0x66c] sm:$0xf] }
 0x1b9   : > { %3747 = vmatpush.bf16.msrb.mxu2 %v5225_v2  ;;  %v5801_v2 = vor.u32 %v6875_v7, %v5798_v3  ;;  %v5494_v49 = vld [vmem:[#allocation10 + $0x678] sm:$0xf0]  ;;  %v6831_v51 = vld [vmem:[#allocation10 + $0x76c] sm:$0xf] }
 0x1ba   : > { %3760 = vmatpush.bf16.msrb.mxu3 %v5353_v26  ;;  %v5929_v26 = vor.u32 %v6907_v8, %v5926_v11  ;;  %v5622_v54 = vld [vmem:[#allocation10 + $0x778] sm:$0xf0]  ;;  %v6863_v30 = vld [vmem:[#allocation10 + $0x86c] sm:$0xf] }
 0x1bb   : > { %v6895_v56 = vld [vmem:[#allocation10 + $0x96c] sm:$0xf]  ;;  %v5878_v57 = vld [vmem:[#allocation10 + $0x978] sm:$0xf0] }
 0x1bc   : > { %3722 = vmatpush.bf16.msrb.mxu0 %v4953_v10  ;;  %3735 = vmatpush.bf16.msrb.mxu1 %v5081_v44  ;;  %v5785_v10 = vor.u32 %v6871_v52, %v5782_v46  ;;  %v6867_v44 = vld [vmem:[#allocation10 + $0x88c] sm:$0xf]  ;;  %v5606_v63 = vld [vmem:[#allocation10 + $0x758] sm:$0xf0] }
 0x1bd   : > { %3748 = vmatpush.bf16.msrb.mxu2 %v5209_v23  ;;  %v6899_v23 = vld [vmem:[#allocation10 + $0x98c] sm:$0xf]  ;;  %v5734_v4 = vld [vmem:[#allocation10 + $0x858] sm:$0xf0] }
 0x1be   : > { %3761 = vmatpush.bf16.msrb.mxu3 %v5337_v47  ;;  %v6795_v60 = vld [vmem:[#allocation10 + $0x64c] sm:$0xf]  ;;  %v5862_v3 = vld [vmem:[#allocation10 + $0x958] sm:$0xf0] }
 0x1bf   : > { %v6859_v1 = vld [vmem:[#allocation10 + $0x84c] sm:$0xf]  ;;  %v5462_v21 = vld [vmem:[#allocation10 + $0x638] sm:$0xf0] }
 0x1c0   : > { %3723 = vmatpush.bf16.msrb.mxu0 %v4937_v62  ;;  %3736 = vmatpush.bf16.msrb.mxu1 %v5065_v58  ;;  %v3517_v45 = vpop.f32.mrf.mxu0  ;;  %v3530_v53 = vpop.f32.mrf.mxu1  ;;  %v5750_v62 = vld [vmem:[#allocation10 + $0x878] sm:$0xf0]  ;;  %v5497_v58 = vor.u32 %v6799_v48, %v5494_v49  ;;  %v6891_v7 = vld [vmem:[#allocation10 + $0x94c] sm:$0xf] }
 0x1c1   : > { %3749 = vmatpush.bf16.msrb.mxu2 %v5193_v32  ;;  %v3531_v55 = vadd.f32 %v3530_v53, %v3517_v45  ;;  %v5625_v32 = vor.u32 %v6831_v51, %v5622_v54  ;;  %v5753_v59 = vor.u32 %v6863_v30, %v5750_v62  ;;  %v6791_v14 = vld [vmem:[#allocation10 + $0x62c] sm:$0xf]  ;;  %v5865_v29 = vor.u32 %v6891_v7, %v5862_v3  ;;  %v5590_v52 = vld [vmem:[#allocation10 + $0x738] sm:$0xf0] }
 0x1c2   : > { %3762 = vmatpush.bf16.msrb.mxu3 %v5321_v31  ;;  %v5478_v31 = vld [vmem:[#allocation10 + $0x658] sm:$0xf0]  ;;  %v6823_v27 = vld [vmem:[#allocation10 + $0x72c] sm:$0xf] }
 0x1c3   : > { %3724 = vmatmul.bf16.vlgmr.msrb.gmra.mxu0 %v7627_v0  ;;  %3737 = vmatmul.bf16.vlgmr.msrb.gmra.mxu1 %v7632_v17  ;;  %v5766_v0 = vld [vmem:[#allocation10 + $0x898] sm:$0xf0]  ;;  %v5481_v8 = vor.u32 %v6795_v60, %v5478_v31  ;;  %v6855_v46 = vld [vmem:[#allocation10 + $0x82c] sm:$0xf]  ;;  %v5593_v22 = vor.u32 %v6823_v27, %v5590_v52 }
 0x1c4   : > { %3768 = vmatpush.bf16.msra.mxu0 %v5561_v13  ;;  %3781 = vmatpush.bf16.msra.mxu1 %v5689_v61  ;;  %v5769_v47 = vor.u32 %v6867_v44, %v5766_v0  ;;  %v6827_v13 = vld [vmem:[#allocation10 + $0x74c] sm:$0xf]  ;;  %v5718_v33 = vld [vmem:[#allocation10 + $0x838] sm:$0xf0] }
 0x1c5   : > { %3794 = vmatpush.bf16.msra.mxu2 %v5817_v6  ;;  %3763 = vmatmul.bf16.vlgmr.msrb.gmra.mxu3 %v7645_v41  ;;  %v5894_v41 = vld [vmem:[#allocation10 + $0x998] sm:$0xf0]  ;;  %v5881_v6 = vor.u32 %v6895_v56, %v5878_v57  ;;  %v6887_v36 = vld [vmem:[#allocation10 + $0x92c] sm:$0xf] }
 0x1c6   : > { %3807 = vmatpush.bf16.msra.mxu3 %v5945_v5  ;;  %3750 = vmatmul.bf16.vlgmr.msrb.gmra.mxu2 %v7641_v38  ;;  %v6835_v38 = vld [vmem:[#allocation10 + $0x78c] sm:$0xf]  ;;  %v5897_v50 = vor.u32 %v6899_v23, %v5894_v41  ;;  %v5446_v42 = vld [vmem:[#allocation10 + $0x618] sm:$0xf0] }
 0x1c7   : > { %v5641_v17 = vor.u32 %v6835_v38, %v5638_v43  ;;  %v5721_v38 = vor.u32 %v6855_v46, %v5718_v33  ;;  %v5574_v43 = vld [vmem:[#allocation10 + $0x718] sm:$0xf0]  ;;  %v6851_v44 = vld [vmem:[#allocation10 + $0x80c] sm:$0xf] }
 0x1c8   : > { %3769 = vmatpush.bf16.msra.mxu0 %v5545_v19  ;;  %3782 = vmatpush.bf16.msra.mxu1 %v5673_v9  ;;  %v3556_v15 = vpop.f32.mrf.mxu3  ;;  %v3519_v19 = vpop.f32.mrf.mxu0  ;;  %v5609_v9 = vor.u32 %v6827_v13, %v5606_v63  ;;  %v5702_v41 = vld [vmem:[#allocation10 + $0x818] sm:$0xf0]  ;;  %v6975_v49 = vld [vmem:[#allocation10 + $0xbec] sm:$0xf] }
 0x1c9   : > { %3795 = vmatpush.bf16.msra.mxu2 %v5801_v2  ;;  %v3543_v61 = vpop.f32.mrf.mxu2  ;;  %v5737_v2 = vor.u32 %v6859_v1, %v5734_v4  ;;  %v5830_v45 = vld [vmem:[#allocation10 + $0x918] sm:$0xf0]  ;;  %v5705_v62 = vor.u32 %v6851_v44, %v5702_v41  ;;  %v6939_v60 = vld [vmem:[#allocation10 + $0xacc] sm:$0xf] }
 0x1ca   : > { %3808 = vmatpush.bf16.msra.mxu3 %v5929_v26  ;;  %v3544_v5 = vadd.f32 %v3543_v61, %v3531_v55  ;;  %v3532_v26 = vpop.f32.mrf.mxu1  ;;  %v6070_v48 = vld [vmem:[#allocation10 + $0xaf8] sm:$0xf0]  ;;  %v7039_v55 = vld [vmem:[#allocation10 + $0xdec] sm:$0xf] }
 0x1cb   : > { %v6198_v53 = vld [vmem:[#allocation10 + $0xbf8] sm:$0xf0]  ;;  %v6971_v13 = vld [vmem:[#allocation10 + $0xbcc] sm:$0xf] }
 0x1cc   : > { %3770 = vmatpush.bf16.msra.mxu0 %v5529_v37  ;;  %3783 = vmatpush.bf16.msra.mxu1 %v5657_v40  ;;  %v7766_v11 = vadd.f32 %v3556_v15, %v3544_v5  ;;  %v5846_v37 = vld [vmem:[#allocation10 + $0x938] sm:$0xf0]  ;;  %v5465_v40 = vor.u32 %v6791_v14, %v5462_v21  ;;  %v7003_v63 = vld [vmem:[#allocation10 + $0xccc] sm:$0xf] }
 0x1cd   : > { %3796 = vmatpush.bf16.msra.mxu2 %v5785_v10  ;;  %v6787_v10 = vld [vmem:[#allocation10 + $0x60c] sm:$0xf]  ;;  %v5849_v23 = vor.u32 %v6887_v36, %v5846_v37  ;;  %v6326_v54 = vld [vmem:[#allocation10 + $0xcf8] sm:$0xf0] }
 0x1ce   : > { %3809 = vmatpush.bf16.msra.mxu3 %v5913_v18  ;;  %v6819_v18 = vld [vmem:[#allocation10 + $0x70c] sm:$0xf]  ;;  %v5449_v51 = vor.u32 %v6787_v10, %v5446_v42  ;;  %v6454_v56 = vld [vmem:[#allocation10 + $0xdf8] sm:$0xf0] }
 0x1cf   : > { %v5577_v30 = vor.u32 %v6819_v18, %v5574_v43  ;;  %v6054_v31 = vld [vmem:[#allocation10 + $0xad8] sm:$0xf0]  ;;  %v6457_v61 = vor.u32 %v7039_v55, %v6454_v56  ;;  %v7035_v4 = vld [vmem:[#allocation10 + $0xdcc] sm:$0xf] }
 0x1d0   : > { %3771 = vmatpush.bf16.msra.mxu0 %v5513_v34  ;;  %3784 = vmatpush.bf16.msra.mxu1 %v5641_v17  ;;  %v6883_v34 = vld [vmem:[#allocation10 + $0x90c] sm:$0xf]  ;;  %v3558_v17 = vpop.f32.mrf.mxu3  ;;  %v6310_v1 = vld [vmem:[#allocation10 + $0xcd8] sm:$0xf0]  ;;  %v6057_v15 = vor.u32 %v6939_v60, %v6054_v31 }
 0x1d1   : > { %3797 = vmatpush.bf16.msra.mxu2 %v5769_v47  ;;  %v3545_v0 = vpop.f32.mrf.mxu2  ;;  %v6943_v47 = vld [vmem:[#allocation10 + $0xaec] sm:$0xf]  ;;  %v5833_v57 = vor.u32 %v6883_v34, %v5830_v45  ;;  %v6438_v5 = vld [vmem:[#allocation10 + $0xdd8] sm:$0xf0]  ;;  %v6313_v3 = vor.u32 %v7003_v63, %v6310_v1 }
 0x1d2   : > { %3810 = vmatpush.bf16.msra.mxu3 %v5897_v50  ;;  %v7007_v50 = vld [vmem:[#allocation10 + $0xcec] sm:$0xf]  ;;  %v6038_v19 = vld [vmem:[#allocation10 + $0xab8] sm:$0xf0] }
 0x1d3   : > { %v6166_v14 = vld [vmem:[#allocation10 + $0xbb8] sm:$0xf0]  ;;  %v6999_v21 = vld [vmem:[#allocation10 + $0xcac] sm:$0xf] }
 0x1d4   : > { %3772 = vmatpush.bf16.msra.mxu0 %v5497_v58  ;;  %3785 = vmatpush.bf16.msra.mxu1 %v5625_v32  ;;  %v6073_v58 = vor.u32 %v6943_v47, %v6070_v48  ;;  %v6201_v32 = vor.u32 %v6975_v49, %v6198_v53  ;;  %v6294_v27 = vld [vmem:[#allocation10 + $0xcb8] sm:$0xf0]  ;;  %v7031_v26 = vld [vmem:[#allocation10 + $0xdac] sm:$0xf] }
 0x1d5   : > { %3798 = vmatpush.bf16.msra.mxu2 %v5753_v59  ;;  %v6329_v59 = vor.u32 %v7007_v50, %v6326_v54  ;;  %v6297_v33 = vor.u32 %v6999_v21, %v6294_v27  ;;  %v6931_v36 = vld [vmem:[#allocation10 + $0xa8c] sm:$0xf]  ;;  %v6150_v10 = vld [vmem:[#allocation10 + $0xb98] sm:$0xf0] }
 0x1d6   : > { %3811 = vmatpush.bf16.msra.mxu3 %v5881_v6  ;;  %v6182_v6 = vld [vmem:[#allocation10 + $0xbd8] sm:$0xf0]  ;;  %v6963_v37 = vld [vmem:[#allocation10 + $0xb8c] sm:$0xf] }
 0x1d7   : > { %v6185_v7 = vor.u32 %v6971_v13, %v6182_v6  ;;  %v6995_v42 = vld [vmem:[#allocation10 + $0xc8c] sm:$0xf]  ;;  %v6006_v0 = vld [vmem:[#allocation10 + $0xa78] sm:$0xf0] }
 0x1d8   : > { %3773 = vmatpush.bf16.msra.mxu0 %v5481_v8  ;;  %3786 = vmatpush.bf16.msra.mxu1 %v5609_v9  ;;  %v6935_v8 = vld [vmem:[#allocation10 + $0xaac] sm:$0xf]  ;;  %v6134_v45 = vld [vmem:[#allocation10 + $0xb78] sm:$0xf0] }
 0x1d9   : > { %3799 = vmatpush.bf16.msra.mxu2 %v5737_v2  ;;  %v6967_v9 = vld [vmem:[#allocation10 + $0xbac] sm:$0xf]  ;;  %v6441_v2 = vor.u32 %v7035_v4, %v6438_v5  ;;  %v6041_v52 = vor.u32 %v6935_v8, %v6038_v19  ;;  %v6262_v47 = vld [vmem:[#allocation10 + $0xc78] sm:$0xf0] }
 0x1da   : > { %3812 = vmatpush.bf16.msra.mxu3 %v5865_v29  ;;  %v6422_v29 = vld [vmem:[#allocation10 + $0xdb8] sm:$0xf0]  ;;  %v6169_v46 = vor.u32 %v6967_v9, %v6166_v14  ;;  %v6927_v44 = vld [vmem:[#allocation10 + $0xa6c] sm:$0xf] }
 0x1db   : > { %v6991_v17 = vld [vmem:[#allocation10 + $0xc6c] sm:$0xf]  ;;  %v6390_v49 = vld [vmem:[#allocation10 + $0xd78] sm:$0xf0] }
 0x1dc   : > { %3774 = vmatpush.bf16.msra.mxu0 %v5465_v40  ;;  %3787 = vmatpush.bf16.msra.mxu1 %v5593_v22  ;;  %v6425_v40 = vor.u32 %v7031_v26, %v6422_v29  ;;  %v7027_v22 = vld [vmem:[#allocation10 + $0xd8c] sm:$0xf]  ;;  %v6265_v50 = vor.u32 %v6991_v17, %v6262_v47  ;;  %v6374_v31 = vld [vmem:[#allocation10 + $0xd58] sm:$0xf0] }
 0x1dd   : > { %3800 = vmatpush.bf16.msra.mxu2 %v5721_v38  ;;  %v7023_v48 = vld [vmem:[#allocation10 + $0xd6c] sm:$0xf]  ;;  %v5974_v4 = vld [vmem:[#allocation10 + $0xa38] sm:$0xf0] }
 0x1de   : > { %3813 = vmatpush.bf16.msra.mxu3 %v5849_v23  ;;  %v6959_v23 = vld [vmem:[#allocation10 + $0xb6c] sm:$0xf]  ;;  %v6393_v56 = vor.u32 %v7023_v48, %v6390_v49  ;;  %v6230_v19 = vld [vmem:[#allocation10 + $0xc38] sm:$0xf0] }
 0x1df   : > { %v6137_v53 = vor.u32 %v6959_v23, %v6134_v45  ;;  %v6923_v54 = vld [vmem:[#allocation10 + $0xa4c] sm:$0xf]  ;;  %v5958_v29 = vld [vmem:[#allocation10 + $0xa18] sm:$0xf0] }
 0x1e0   : > { %3775 = vmatpush.bf16.msra.mxu0 %v5449_v51  ;;  %3788 = vmatpush.bf16.msra.mxu1 %v5577_v30  ;;  %v7772_v18 = vpop.f32.mrf.mxu0  ;;  %v7774_v41 = vpop.f32.mrf.mxu1  ;;  %v6009_v51 = vor.u32 %v6927_v44, %v6006_v0  ;;  %v5990_v30 = vld [vmem:[#allocation10 + $0xa58] sm:$0xf0]  ;;  %v7019_v60 = vld [vmem:[#allocation10 + $0xd4c] sm:$0xf] }
 0x1e1   : > { %3801 = vmatpush.bf16.msra.mxu2 %v5705_v62  ;;  %v6955_v62 = vld [vmem:[#allocation10 + $0xb4c] sm:$0xf]  ;;  %v5993_v13 = vor.u32 %v6923_v54, %v5990_v30  ;;  %v3570_v44 = vadd.f32 %v7772_v18, %v7766_v11  ;;  %v3881_v11 = vld [vmem:[#allocation2 + $0x18] sm:$0xff]  ;;  %v3897_v30 = vld [vmem:[#allocation3 + $0x8] sm:$0xff] }
 0x1e2   : > { %3814 = vmatpush.bf16.msra.mxu3 %v5833_v57  ;;  %v6118_v57 = vld [vmem:[#allocation10 + $0xb58] sm:$0xf0]  ;;  %v6919_v1 = vld [vmem:[#allocation10 + $0xa2c] sm:$0xf] }
 0x1e3   : > { %3776 = vmatmul.bf16.vlgmr.msra.gmra.mxu0 %v7639_v35  ;;  %3789 = vmatmul.bf16.vlgmr.msra.gmra.mxu1 %v7643_v39  ;;  %v6022_v35 = vld [vmem:[#allocation10 + $0xa98] sm:$0xf0]  ;;  %v6121_v6 = vor.u32 %v6955_v62, %v6118_v57  ;;  %v6951_v5 = vld [vmem:[#allocation10 + $0xb2c] sm:$0xf]  ;;  %v5977_v14 = vor.u32 %v6919_v1, %v5974_v4  ;;  %v3583_v45 = vadd.f32 %v7774_v41, %v3570_v44 }
 0x1e4   : > { %3820 = vmatpush.bf16.msrb.mxu0 %v6073_v58  ;;  %3833 = vmatpush.bf16.msrb.mxu1 %v6201_v32  ;;  %v6406_v39 = vld [vmem:[#allocation10 + $0xd98] sm:$0xf0]  ;;  %v6025_v38 = vor.u32 %v6931_v36, %v6022_v35  ;;  %v6987_v58 = vld [vmem:[#allocation10 + $0xc4c] sm:$0xf] }
 0x1e5   : > { %3846 = vmatpush.bf16.msrb.mxu2 %v6329_v59  ;;  %3815 = vmatmul.bf16.vlgmr.msra.gmra.mxu3 %v7655_v25  ;;  %v6153_v25 = vor.u32 %v6963_v37, %v6150_v10  ;;  %v6409_v34 = vor.u32 %v7027_v22, %v6406_v39  ;;  %v6246_v32 = vld [vmem:[#allocation10 + $0xc58] sm:$0xf0]  ;;  %v6983_v8 = vld [vmem:[#allocation10 + $0xc2c] sm:$0xf] }
 0x1e6   : > { %3859 = vmatpush.bf16.msrb.mxu3 %v6457_v61  ;;  %3802 = vmatmul.bf16.vlgmr.msra.gmra.mxu2 %v7651_v20  ;;  %v6278_v20 = vld [vmem:[#allocation10 + $0xc98] sm:$0xf0]  ;;  %v6249_v63 = vor.u32 %v6987_v58, %v6246_v32  ;;  %v7015_v9 = vld [vmem:[#allocation10 + $0xd2c] sm:$0xf]  ;;  %v6233_v27 = vor.u32 %v6983_v8, %v6230_v19 }
 0x1e7   : > { %v6281_v43 = vor.u32 %v6995_v42, %v6278_v20  ;;  %v6915_v26 = vld [vmem:[#allocation10 + $0xa0c] sm:$0xf]  ;;  %v6086_v36 = vld [vmem:[#allocation10 + $0xb18] sm:$0xf0] }
 0x1e8   : > { %3821 = vmatpush.bf16.msrb.mxu0 %v6057_v15  ;;  %3834 = vmatpush.bf16.msrb.mxu1 %v6185_v7  ;;  %v7778_v59 = vpop.f32.mrf.mxu3  ;;  %v3571_v61 = vpop.f32.mrf.mxu0  ;;  %v6377_v7 = vor.u32 %v7019_v60, %v6374_v31  ;;  %v6979_v35 = vld [vmem:[#allocation10 + $0xc0c] sm:$0xf]  ;;  %v6214_v37 = vld [vmem:[#allocation10 + $0xc18] sm:$0xf0]  ;;  %v5961_v20 = vor.u32 %v6915_v26, %v5958_v29 }
 0x1e9   : > { %3847 = vmatpush.bf16.msrb.mxu2 %v6313_v3  ;;  %v7776_v55 = vpop.f32.mrf.mxu2  ;;  %v3584_v15 = vpop.f32.mrf.mxu1  ;;  %v6102_v3 = vld [vmem:[#allocation10 + $0xb38] sm:$0xf0]  ;;  %v7011_v10 = vld [vmem:[#allocation10 + $0xd0c] sm:$0xf]  ;;  %v6217_v39 = vor.u32 %v6979_v35, %v6214_v37 }
 0x1ea   : > { %3860 = vmatpush.bf16.msrb.mxu3 %v6441_v2  ;;  %v6358_v2 = vld [vmem:[#allocation10 + $0xd38] sm:$0xf0]  ;;  %v6105_v21 = vor.u32 %v6951_v5, %v6102_v3  ;;  %v3596_v47 = vadd.f32 %v7776_v55, %v3583_v45 }
 0x1eb   : > { %v6342_v42 = vld [vmem:[#allocation10 + $0xd18] sm:$0xf0] }
 0x1ec   : > { %3822 = vmatpush.bf16.msrb.mxu0 %v6041_v52  ;;  %3835 = vmatpush.bf16.msrb.mxu1 %v6169_v46  ;;  %v6947_v52 = vld [vmem:[#allocation10 + $0xb0c] sm:$0xf] }
 0x1ed   : > { %3848 = vmatpush.bf16.msrb.mxu2 %v6297_v33  ;;  %v6361_v33 = vor.u32 %v7015_v9, %v6358_v2  ;;  %v6089_v22 = vor.u32 %v6947_v52, %v6086_v36 }
 0x1ee   : > { %3861 = vmatpush.bf16.msrb.mxu3 %v6425_v40 }
 0x1f0   : > { %3823 = vmatpush.bf16.msrb.mxu0 %v6025_v38  ;;  %3836 = vmatpush.bf16.msrb.mxu1 %v6153_v25  ;;  %v3610_v40 = vpop.f32.mrf.mxu3  ;;  %v6345_v38 = vor.u32 %v7011_v10, %v6342_v42 }
 0x1f1   : > { %3849 = vmatpush.bf16.msrb.mxu2 %v6281_v43  ;;  %v3597_v46 = vpop.f32.mrf.mxu2 }
 0x1f2   : > { %3862 = vmatpush.bf16.msrb.mxu3 %v6409_v34 }
 0x1f4   : > { %3824 = vmatpush.bf16.msrb.mxu0 %v6009_v51  ;;  %3837 = vmatpush.bf16.msrb.mxu1 %v6137_v53 }
 0x1f5   : > { %3850 = vmatpush.bf16.msrb.mxu2 %v6265_v50 }
 0x1f6   : > { %3863 = vmatpush.bf16.msrb.mxu3 %v6393_v56 }
 0x1f8   : > { %3825 = vmatpush.bf16.msrb.mxu0 %v5993_v13  ;;  %3838 = vmatpush.bf16.msrb.mxu1 %v6121_v6 }
 0x1f9   : > { %3851 = vmatpush.bf16.msrb.mxu2 %v6249_v63 }
 0x1fa   : > { %3864 = vmatpush.bf16.msrb.mxu3 %v6377_v7 }
 0x1fc   : > { %3826 = vmatpush.bf16.msrb.mxu0 %v5977_v14  ;;  %3839 = vmatpush.bf16.msrb.mxu1 %v6105_v21 }
 0x1fd   : > { %3852 = vmatpush.bf16.msrb.mxu2 %v6233_v27 }
 0x1fe   : > { %3865 = vmatpush.bf16.msrb.mxu3 %v6361_v33 }
 0x200   : > { %3827 = vmatpush.bf16.msrb.mxu0 %v5961_v20  ;;  %3840 = vmatpush.bf16.msrb.mxu1 %v6089_v22  ;;  %v3621_v25 = vpop.f32.mrf.mxu0  ;;  %v3634_v43 = vpop.f32.mrf.mxu1 }
 0x201   : > { %3853 = vmatpush.bf16.msrb.mxu2 %v6217_v39 }
 0x202   : > { %3866 = vmatpush.bf16.msrb.mxu3 %v6345_v38 }
 0x203   : > { %3828 = vmatmul.bf16.vlgmr.msrb.gmra.mxu0 %v7653_v24  ;;  %3841 = vmatmul.bf16.vlgmr.msrb.gmra.mxu1 %v7657_v28  ;;  %v3609_v28 = vadd.f32 %v7778_v59, %v3596_v47 }
 0x204   : > { %3854 = vmatmul.bf16.vlgmr.msrb.gmra.mxu2 %v7663_v12 }
 0x205   : > { %3867 = vmatmul.bf16.vlgmr.msrb.gmra.mxu3 %v7665_v16  ;;  %v3622_v12 = vadd.f32 %v3621_v25, %v3609_v28  ;;  %v3882_v25 = vld [vmem:[#allocation2 + $0x8] sm:$0xff] }
 0x207   : > { %v3635_v49 = vadd.f32 %v3634_v43, %v3622_v12 }
 0x208   : > { %v3660_v23 = vpop.f32.mrf.mxu3  ;;  %v3623_v34 = vpop.f32.mrf.mxu0 }
 0x209   : > { %v3647_v0 = vpop.f32.mrf.mxu2  ;;  %v3636_v17 = vpop.f32.mrf.mxu1 }
 0x20a   : > { %v3648_v16 = vadd.f32 %v3647_v0, %v3635_v49  ;;  %v3898_v0 = vld [vmem:[#allocation3 + $0x10] sm:$0xff] }
 0x20c   : > { %v3661_v51 = vadd.f32 %v3660_v23, %v3648_v16 }
 0x210   : > { %v3662_v48 = vpop.f32.mrf.mxu3 }
 0x211   : > { %v3649_v24 = vpop.f32.mrf.mxu2 }
 0x220   : > { %v3673_v53 = vpop.f32.mrf.mxu0  ;;  %v3686_v54 = vpop.f32.mrf.mxu1 }
 0x221   : > { %v3674_v50 = vadd.f32 %v3673_v53, %v3661_v51 }
 0x223   : > { %v3687_v18 = vadd.f32 %v3686_v54, %v3674_v50 }
 0x225   : > { %3877 = vst [vmem:[#allocation6 + $0x10] sm:$0xff] %v3687_v18  ;;  %v3889_v62 = vadd.f32 %v3881_v11, %v3687_v18  ;;  %v3901_v41 = vmul.f32 %v3687_v18, %v3687_v18 }
 0x227   : > { %3893 = vst [vmem:[#allocation2 + $0x18] sm:$0xff] %v3889_v62  ;;  %v3909_v56 = vadd.f32 %v3901_v41, %v3897_v30 }
 0x228   : > { %v3712_v57 = vpop.f32.mrf.mxu3  ;;  %v3675_v58 = vpop.f32.mrf.mxu0 }
 0x229   : > { %v3699_v55 = vpop.f32.mrf.mxu2  ;;  %3913 = vst [vmem:[#allocation3 + $0x8] sm:$0xff] %v3909_v56  ;;  %v3688_v59 = vpop.f32.mrf.mxu1 }
 0x22a   : > { %v3713_v32 = vadd.f32 %v3712_v57, %v3699_v55 }
 0x230   : > { %v3714_v31 = vpop.f32.mrf.mxu3 }
 0x231   : > { %v3701_v60 = vpop.f32.mrf.mxu2 }
 0x240   : > { %v3725_v13 = vpop.f32.mrf.mxu0  ;;  %v3738_v61 = vpop.f32.mrf.mxu1 }
 0x241   : > { %v3726_v8 = vadd.f32 %v3725_v13, %v3713_v32 }
 0x243   : > { %v3739_v14 = vadd.f32 %v3738_v61, %v3726_v8 }
 0x248   : > { %v3764_v63 = vpop.f32.mrf.mxu3  ;;  %v3727_v1 = vpop.f32.mrf.mxu0 }
 0x249   : > { %v3751_v6 = vpop.f32.mrf.mxu2  ;;  %v3740_v4 = vpop.f32.mrf.mxu1 }
 0x24a   : > { %v3752_v27 = vadd.f32 %v3751_v6, %v3739_v14 }
 0x24c   : > { %v3765_v52 = vadd.f32 %v3764_v63, %v3752_v27 }
 0x250   : > { %v3766_v15 = vpop.f32.mrf.mxu3 }
 0x251   : > { %v3753_v5 = vpop.f32.mrf.mxu2 }
 0x260   : > { %v3777_v7 = vpop.f32.mrf.mxu0  ;;  %v3790_v3 = vpop.f32.mrf.mxu1 }
 0x261   : > { %v3778_v46 = vadd.f32 %v3777_v7, %v3765_v52 }
 0x263   : > { %v3791_v33 = vadd.f32 %v3790_v3, %v3778_v46 }
 0x268   : > { %v3816_v9 = vpop.f32.mrf.mxu3  ;;  %v3779_v2 = vpop.f32.mrf.mxu0 }
 0x269   : > { %v3803_v19 = vpop.f32.mrf.mxu2  ;;  %v3792_v21 = vpop.f32.mrf.mxu1 }
 0x26a   : > { %v3804_v36 = vadd.f32 %v3803_v19, %v3791_v33 }
 0x26c   : > { %v3817_v35 = vadd.f32 %v3816_v9, %v3804_v36 }
 0x270   : > { %v3818_v29 = vpop.f32.mrf.mxu3 }
 0x271   : > { %v3805_v26 = vpop.f32.mrf.mxu2 }
 0x280   : > { %v3829_v37 = vpop.f32.mrf.mxu0  ;;  %v3842_v40 = vpop.f32.mrf.mxu1 }
 0x281   : > { %v3830_v10 = vadd.f32 %v3829_v37, %v3817_v35 }
 0x283   : > { %v3843_v42 = vadd.f32 %v3842_v40, %v3830_v10 }
 0x287   : > { %v3855_v20 = vpop.f32.mrf.mxu2 }
 0x288   : > { %v3856_v22 = vadd.f32 %v3855_v20, %v3843_v42  ;;  %v3868_v39 = vpop.f32.mrf.mxu3  ;;  %v3831_v38 = vpop.f32.mrf.mxu0 }
 0x289   : > { %v3844_v43 = vpop.f32.mrf.mxu1 }
 0x28a   : > { %v3869_v44 = vadd.f32 %v3868_v39, %v3856_v22 }
 0x28c   : > { %3878 = vst [vmem:[#allocation6 + $0x18] sm:$0xff] %v3869_v44  ;;  %v3890_v23 = vadd.f32 %v3882_v25, %v3869_v44  ;;  %v3902_v34 = vmul.f32 %v3869_v44, %v3869_v44 }
 0x28e   : > { %3894 = vst [vmem:[#allocation2 + $0x8] sm:$0xff] %v3890_v23  ;;  %v3910_v45 = vadd.f32 %v3902_v34, %v3898_v0 }
 0x28f   : > { %v3857_v17 = vpop.f32.mrf.mxu2 }
 0x290   : > { %3914 = vst [vmem:[#allocation3 + $0x10] sm:$0xff] %v3910_v45  ;;  %v3870_v47 = vpop.f32.mrf.mxu3 }
 0x291 PF: > { %3916 = sbr.rel (!%p411_p11) target bundleno = 719 (0x2cf), region = 80  ;;  %v3917_v24 = vld [vmem:[#allocation2 + $0x10] sm:$0xff] (%p411_p11)  ;;  %v3918_v48 = vld [vmem:[#allocation2] sm:$0xff] (%p411_p11)  ;;  %v3919_v28 = vld [vmem:[#allocation2 + $0x18] sm:$0xff] (%p411_p11)  ;;  %vm4045_vm12 = vcmask (%p411_p11), 1040384   ;;  %vm4047_vm13 = vcmask (%p411_p11), 1042434  }
 0x292   : > { %v3921_v49 = vrot.slane (%p411_p11), %v3917_v24, 4  ;;  %v3927_v16 = vrot.slane (%p411_p11), %v3918_v48, 4  ;;  %v3933_v51 = vrot.slane (%p411_p11), %v3919_v28, 4  ;;  %v3945_v53 = vld [vmem:[#allocation3] sm:$0xff] (%p411_p11)  ;;  %v3946_v50 = vld [vmem:[#allocation3 + $0x18] sm:$0xff] (%p411_p11)  ;;  %v3947_v11 = vld [vmem:[#allocation3 + $0x8] sm:$0xff] (%p411_p11) }
 0x293   : > { %v3949_v30 = vrot.slane (%p411_p11), %v3945_v53, 4  ;;  %v3955_v62 = vrot.slane (%p411_p11), %v3946_v50, 4  ;;  %v3961_v57 = vrot.slane (%p411_p11), %v3947_v11, 4  ;;  %vm4049_vm14 = vcmask (%p411_p11), 1041408  }
 0x294   : > { %v3922_v41 = vadd.f32 (%p411_p11), %v3921_v49, %v3917_v24  ;;  %v3928_v56 = vadd.f32 (%p411_p11), %v3927_v16, %v3918_v48  ;;  %v3934_v55 = vadd.f32 (%p411_p11), %v3933_v51, %v3919_v28 }
 0x295   : > { %v3920_v12 = vld [vmem:[#allocation2 + $0x8] sm:$0xff] (%p411_p11)  ;;  %v3950_v32 = vadd.f32 (%p411_p11), %v3949_v30, %v3945_v53  ;;  %v3956_v59 = vadd.f32 (%p411_p11), %v3955_v62, %v3946_v50  ;;  %v3962_v6 = vadd.f32 (%p411_p11), %v3961_v57, %v3947_v11 }
 0x296   : > { %v3939_v54 = vrot.slane %v3920_v12, 4  ;;  %v3923_v31 = vrot.slane %v3922_v41, 2  ;;  %v3929_v13 = vrot.slane %v3928_v56, 2  ;;  %v3935_v61 = vrot.slane %v3934_v55, 2 }
 0x297   : > { %v3948_v18 = vld [vmem:[#allocation3 + $0x10] sm:$0xff]  ;;  %v3951_v1 = vrot.slane %v3950_v32, 2  ;;  %v3957_v4 = vrot.slane %v3956_v59, 2  ;;  %v3963_v8 = vrot.slane %v3962_v6, 2 }
 0x298   : > { %v3940_v58 = vadd.f32 %v3939_v54, %v3920_v12  ;;  %v3967_v60 = vrot.slane %v3948_v18, 4  ;;  %v3924_v15 = vadd.f32 %v3923_v31, %v3922_v41  ;;  %v3930_v7 = vadd.f32 %v3929_v13, %v3928_v56 }
 0x299   : > { %v3936_v3 = vadd.f32 %v3935_v61, %v3934_v55  ;;  %v3952_v9 = vadd.f32 %v3951_v1, %v3950_v32  ;;  %v3958_v2 = vadd.f32 %v3957_v4, %v3956_v59  ;;  %v3964_v29 = vadd.f32 %v3963_v8, %v3962_v6 }
 0x29a   : > { %v3941_v63 = vrot.slane %v3940_v58, 2  ;;  %v3968_v5 = vadd.f32 %v3967_v60, %v3948_v18  ;;  %v3925_v21 = vrot.slane %v3924_v15, 1  ;;  %v3931_v27 = vrot.slane %v3930_v7, 1 }
 0x29b   : > { %v3937_v26 = vrot.slane %v3936_v3, 1  ;;  %v3953_v46 = vrot.slane %v3952_v9, 1  ;;  %v3959_v33 = vrot.slane %v3958_v2, 1  ;;  %v3965_v10 = vrot.slane %v3964_v29, 1 }
 0x29c   : > { %v3942_v19 = vadd.f32 %v3941_v63, %v3940_v58  ;;  %v3969_v14 = vrot.slane %v3968_v5, 2  ;;  %v3926_v35 = vadd.f32 %v3925_v21, %v3924_v15  ;;  %v3932_v37 = vadd.f32 %v3931_v27, %v3930_v7 }
 0x29d   : > { %v3938_v40 = vadd.f32 %v3937_v26, %v3936_v3  ;;  %v3954_v20 = vadd.f32 %v3953_v46, %v3952_v9  ;;  %v3960_v22 = vadd.f32 %v3959_v33, %v3958_v2  ;;  %v3966_v38 = vadd.f32 %v3965_v10, %v3964_v29 }
 0x29e   : > { %v3943_v52 = vrot.slane %v3942_v19, 1  ;;  %v3970_v36 = vadd.f32 %v3969_v14, %v3968_v5  ;;  %v7791_v25 = vmul.f32 0.125, %v3926_v35  ;;  %v7793_v43 = vmul.f32 0.125, %v3932_v37 }
 0x29f   : > { %v7795_v44 = vmul.f32 0.125, %v3938_v40  ;;  %v3977_v34 = vmul.f32 0.125, %v3954_v20  ;;  %v3978_v45 = vmul.f32 0.125, %v3960_v22  ;;  %v3979_v17 = vmul.f32 0.125, %v3966_v38 }
 0x2a0   : > { %v3944_v42 = vadd.f32 %v3943_v52, %v3942_v19  ;;  %v3971_v39 = vrot.slane %v3970_v36, 1  ;;  %v3981_v47 = vmul.f32 %v7791_v25, %v7791_v25  ;;  %v3982_v24 = vmul.f32 %v7793_v43, %v7793_v43 }
 0x2a1   : > { %v3983_v48 = vmul.f32 %v7795_v44, %v7795_v44  ;;  %v4053_v37 = vlaneseq }
 0x2a2   : > { %v3972_v0 = vadd.f32 %v3971_v39, %v3970_v36  ;;  %v7797_v23 = vmul.f32 0.125, %v3944_v42  ;;  %v3985_v49 = vsub.f32 %v3977_v34, %v3981_v47  ;;  %v3986_v16 = vsub.f32 %v3978_v45, %v3982_v24  ;;  %v3993_v42 = vld [vmem:[#allocation12] sm:$0xf] }
 0x2a3   : > { %v3987_v51 = vsub.f32 %v3979_v17, %v3983_v48  ;;  %vm7816_vm15 = vcmp.lt.s32.totalorder %v4053_v37, 512 }
 0x2a4   : > { %v3980_v28 = vmul.f32 0.125, %v3972_v0  ;;  %v3984_v12 = vmul.f32 %v7797_v23, %v7797_v23  ;;  %v3989_v50 = vmax.f32 %v3985_v49, 0.0  ;;  %v3990_v54 = vmax.f32 %v3986_v16, 0.0 }
 0x2a5   : > { %v3991_v11 = vmax.f32 %v3987_v51, 0.0  ;;  %v4058_v51 = vld [vmem:[#allocation13] sm:$0xf] }
 0x2a6   : > { %v3988_v53 = vsub.f32 %v3980_v28, %v3984_v12  ;;  %v3994_v30 = vadd.f32 0.001, %v3989_v50  ;;  %v3995_v62 = vadd.f32 0.001, %v3990_v54 }
 0x2a7   : > { %v3996_v41 = vadd.f32 0.001, %v3991_v11 }
 0x2a8   : > { %v3992_v18 = vmax.f32 %v3988_v53, 0.0  ;;  %7188 = vrsqrt.f32 %v3994_v30  ;;  %vm4004_vm0 = vweird.f32 %v3994_v30  ;;  %vm4014_vm2 = vweird.f32 %v3995_v62 }
 0x2a9   : > { %7190 = vrsqrt.f32 %v3995_v62  ;;  %vm4024_vm4 = vweird.f32 %v3996_v41 }
 0x2aa   : > { %v3997_v56 = vadd.f32 0.001, %v3992_v18  ;;  %7192 = vrsqrt.f32 %v3996_v41 }
 0x2ac   : > { %7194 = vrsqrt.f32 %v3997_v56  ;;  %vm4034_vm7 = vweird.f32 %v3997_v56 }
 0x2ae   : > { %v7189_v55 = vpop.eup %7188 }
 0x2af   : > { %v7191_v57 = vpop.eup %7190  ;;  %v3999_v58 = vmul.f32 %v7189_v55, %v3994_v30  ;;  %vm4005_vm1 = vweird.f32 %v7189_v55 }
 0x2b0   : > { %v7193_v32 = vpop.eup %7192  ;;  %v4009_v59 = vmul.f32 %v7191_v57, %v3995_v62  ;;  %vm4015_vm3 = vweird.f32 %v7191_v57  ;;  %vm7807_vm6 = vmor %vm4004_vm0, %vm4005_vm1 }
 0x2b1   : > { %v4000_v31 = vmul.f32 %v7189_v55, %v3999_v58  ;;  %v4019_v13 = vmul.f32 %v7193_v32, %v3996_v41  ;;  %vm4025_vm5 = vweird.f32 %v7193_v32  ;;  %vm4016_vm9 = vmor %vm4014_vm2, %vm4015_vm3 }
 0x2b2   : > { %v7195_v60 = vpop.eup %7194  ;;  %v4010_v61 = vmul.f32 %v7191_v57, %v4009_v59  ;;  %vm4026_vm10 = vmor %vm4024_vm4, %vm4025_vm5 }
 0x2b3   : > { %v4029_v6 = vmul.f32 %v7195_v60, %v3997_v56  ;;  %v4001_v63 = vmul.f32 0.5, %v4000_v31  ;;  %v4020_v1 = vmul.f32 %v7193_v32, %v4019_v13  ;;  %vm4035_vm8 = vweird.f32 %v7195_v60 }
 0x2b4   : > { %v4011_v4 = vmul.f32 0.5, %v4010_v61  ;;  %vm4036_vm11 = vmor %vm4034_vm7, %vm4035_vm8 }
 0x2b5   : > { %v4030_v5 = vmul.f32 %v7195_v60, %v4029_v6  ;;  %v4002_v15 = vsub.f32 1.5, %v4001_v63  ;;  %v4021_v7 = vmul.f32 0.5, %v4020_v1 }
 0x2b6   : > { %v4012_v8 = vsub.f32 1.5, %v4011_v4 }
 0x2b7   : > { %v4031_v19 = vmul.f32 0.5, %v4030_v5  ;;  %v4003_v9 = vmul.f32 %v7189_v55, %v4002_v15  ;;  %v4022_v2 = vsub.f32 1.5, %v4021_v7 }
 0x2b8   : > { %v4013_v14 = vmul.f32 %v7191_v57, %v4012_v8 }
 0x2b9   : > { %v4032_v21 = vsub.f32 1.5, %v4031_v19  ;;  %v4023_v27 = vmul.f32 %v7193_v32, %v4022_v2  ;;  %v4007_v26 = vsel %vm7807_vm6, %v7189_v55, %v4003_v9 }
 0x2ba   : > { %v4017_v29 = vsel %vm4016_vm9, %v7191_v57, %v4013_v14 }
 0x2bb   : > { %v4033_v52 = vmul.f32 %v7195_v60, %v4032_v21  ;;  %v4027_v46 = vsel %vm4026_vm10, %v7193_v32, %v4023_v27  ;;  %v4042_v33 = vrot.slane %v4017_v29, 7 }
 0x2bc   : > { %v4043_v35 = vrot.slane %v4027_v46, 6 }
 0x2bd   : > { %v4037_v36 = vsel %vm4036_vm11, %v7195_v60, %v4033_v52  ;;  %v4046_v10 = vsel %vm4045_vm12, %v4007_v26, %v4042_v33 }
 0x2be   : > { %v4044_v40 = vrot.slane %v4037_v36, 5 }
 0x2c0   : > { %v4048_v20 = vsel %vm4047_vm13, %v4043_v35, %v4044_v40 }
 0x2c1   : > { %v4050_v22 = vsel %vm4049_vm14, %v4046_v10, %v4048_v20 }
 0x2c2   : > { %v4052_v38 = vmul.f32 %v4050_v22, %v3993_v42 }
 0x2c4   : > { %4057 = vst.msk [vmem:[#allocation4] sm:$0xf] %vm7816_vm15, %v4052_v38  ;;  %v4060_v0 = vperm.slane %v4052_v38, 0  ;;  %v4061_v34 = vperm.slane %v4052_v38, 1  ;;  %v4062_v45 = vperm.slane %v4052_v38, 2  ;;  %v4063_v17 = vperm.slane %v4052_v38, 3 }
 0x2c6   : > { %v4068_v47 = vmul.f32 %v4060_v0, %v7791_v25  ;;  %v4069_v24 = vmul.f32 %v4061_v34, %v7793_v43  ;;  %v4070_v48 = vmul.f32 %v4062_v45, %v7795_v44  ;;  %v4071_v28 = vmul.f32 %v4063_v17, %v7797_v23 }
 0x2c8   : > { %v4076_v12 = vrot.slane %v4069_v24, 7  ;;  %v4077_v49 = vrot.slane %v4070_v48, 6  ;;  %v4078_v16 = vrot.slane %v4071_v28, 5 }
 0x2ca   : > { %v4079_v53 = vsel %vm4045_vm12, %v4068_v47, %v4076_v12  ;;  %v4080_v50 = vsel %vm4047_vm13, %v4077_v49, %v4078_v16 }
 0x2cb   : > { %v4081_v54 = vsel %vm4049_vm14, %v4079_v53, %v4080_v50 }
 0x2cc   : > { %v4083_v11 = vsub.f32 %v4058_v51, %v4081_v54 }
 0x2ce   : > { %4084 = vst.msk [vmem:[#allocation5] sm:$0xf] %vm7816_vm15, %v4083_v11 }
 0x2cf PF: > { %p6458_p13 = scmp.ne.s32.totalorder %s7471_s24, 1 }
 0x2d1   : > { %4088 = sbr.rel (%p6458_p13) target bundleno = 901 (0x385), region = 84 }
 0x2d6   : > { %v7049_v25 = vld [vmem:[#allocation15 + $0x38] sm:$0xff]  ;;  %v7048_v18 = vld [vmem:[#allocation15 + $0x30] sm:$0xff]  ;;  %v7047_v56 = vld [vmem:[#allocation15 + $0x28] sm:$0xff] }
 0x2d7   : > { %v7057_v43 = vld [vmem:[#allocation15 + $0x78] sm:$0xff]  ;;  %4392 = vmatpush.bf16.msra.mxu0 %v7049_v25  ;;  %v7056_v30 = vld [vmem:[#allocation15 + $0x70] sm:$0xff]  ;;  %v7055_v55 = vld [vmem:[#allocation15 + $0x68] sm:$0xff] }
 0x2d8   : > { %v7065_v44 = vld [vmem:[#allocation15 + $0xb8] sm:$0xff]  ;;  %4405 = vmatpush.bf16.msra.mxu1 %v7057_v43  ;;  %v7064_v62 = vld [vmem:[#allocation15 + $0xb0] sm:$0xff]  ;;  %v7063_v57 = vld [vmem:[#allocation15 + $0xa8] sm:$0xff] }
 0x2d9   : > { %v7073_v23 = vld [vmem:[#allocation15 + $0xf8] sm:$0xff]  ;;  %4418 = vmatpush.bf16.msra.mxu2 %v7065_v44  ;;  %v7072_v41 = vld [vmem:[#allocation15 + $0xf0] sm:$0xff]  ;;  %v7071_v58 = vld [vmem:[#allocation15 + $0xe8] sm:$0xff] }
 0x2da   : > { %4431 = vmatpush.bf16.msra.mxu3 %v7073_v23  ;;  %v7046_v32 = vld [vmem:[#allocation15 + $0x20] sm:$0xff]  ;;  %v4092_v13 = vld [vmem:[#allocation6] sm:$0xff]  ;;  %v4096_v61 = vld [vmem:[#allocation4] sm:$0xf] }
 0x2db   : > { %4393 = vmatpush.bf16.msra.mxu0 %v7048_v18  ;;  %v7054_v59 = vld [vmem:[#allocation15 + $0x60] sm:$0xff]  ;;  %v4110_v6 = vld [vmem:[#allocation5] sm:$0xf]  ;;  %v4098_v1 = vperm.slane %v4096_v61, 0  ;;  %v4099_v5 = vperm.slane %v4096_v61, 1  ;;  %v4094_v15 = vld [vmem:[#allocation6 + $0x10] sm:$0xff] }
 0x2dc   : > { %4406 = vmatpush.bf16.msra.mxu1 %v7056_v30  ;;  %v7062_v60 = vld [vmem:[#allocation15 + $0xa0] sm:$0xff]  ;;  %v4112_v4 = vperm.slane %v4110_v6, 0  ;;  %v4095_v7 = vld [vmem:[#allocation6 + $0x18] sm:$0xff]  ;;  %v4113_v3 = vperm.slane %v4110_v6, 1  ;;  %v4100_v8 = vperm.slane %v4096_v61, 2  ;;  %v4101_v19 = vperm.slane %v4096_v61, 3 }
 0x2dd   : > { %4419 = vmatpush.bf16.msra.mxu2 %v7064_v62  ;;  %v7070_v31 = vld [vmem:[#allocation15 + $0xe0] sm:$0xff]  ;;  %v7045_v9 = vld [vmem:[#allocation15 + $0x18] sm:$0xff]  ;;  %v4106_v14 = vmul.f32 %v4098_v1, %v4092_v13  ;;  %v4114_v27 = vperm.slane %v4110_v6, 2  ;;  %v4115_v33 = vperm.slane %v4110_v6, 3  ;;  %v7044_v37 = vld [vmem:[#allocation15 + $0x10] sm:$0xff] }
 0x2de   : > { %4432 = vmatpush.bf16.msra.mxu3 %v7072_v41  ;;  %v4093_v63 = vld [vmem:[#allocation6 + $0x8] sm:$0xff]  ;;  %v7053_v2 = vld [vmem:[#allocation15 + $0x58] sm:$0xff]  ;;  %v4108_v52 = vmul.f32 %v4100_v8, %v4094_v15  ;;  %v4109_v46 = vmul.f32 %v4101_v19, %v4095_v7  ;;  %v7052_v40 = vld [vmem:[#allocation15 + $0x50] sm:$0xff] }
 0x2df   : > { %4394 = vmatpush.bf16.msra.mxu0 %v7047_v56  ;;  %v4107_v21 = vmul.f32 %v4099_v5, %v4093_v63  ;;  %v7061_v26 = vld [vmem:[#allocation15 + $0x98] sm:$0xff]  ;;  %v4120_v36 = vadd.f32 %v4112_v4, %v4106_v14  ;;  %v7060_v42 = vld [vmem:[#allocation15 + $0x90] sm:$0xff]  ;;  %v7043_v39 = vld [vmem:[#allocation15 + $0x8] sm:$0xff] }
 0x2e0   : > { %4407 = vmatpush.bf16.msra.mxu1 %v7055_v55  ;;  %v7069_v29 = vld [vmem:[#allocation15 + $0xd8] sm:$0xff]  ;;  %v4122_v10 = vadd.f32 %v4114_v27, %v4108_v52  ;;  %v7068_v20 = vld [vmem:[#allocation15 + $0xd0] sm:$0xff]  ;;  %v4123_v22 = vadd.f32 %v4115_v33, %v4109_v46  ;;  %v7051_v38 = vld [vmem:[#allocation15 + $0x48] sm:$0xff] }
 0x2e1   : > { %4420 = vmatpush.bf16.msra.mxu2 %v7063_v57  ;;  %v4121_v35 = vadd.f32 %v4113_v3, %v4107_v21  ;;  %4124 = vst [vmem:[#allocation19] sm:$0xff] %v4120_v36  ;;  %v7059_v0 = vld [vmem:[#allocation15 + $0x88] sm:$0xff]  ;;  %v7042_v45 = vld [vmem:[#allocation15] sm:$0xff]  ;;  %v4128_v48 = vpack.c.bf16 %v4120_v36, %v4120_v36 }
 0x2e2   : > { %4433 = vmatpush.bf16.msra.mxu3 %v7071_v58  ;;  %4126 = vst [vmem:[#allocation19 + $0x10] sm:$0xff] %v4122_v10  ;;  %v7067_v34 = vld [vmem:[#allocation15 + $0xc8] sm:$0xff]  ;;  %v7050_v17 = vld [vmem:[#allocation15 + $0x40] sm:$0xff]  ;;  %v4130_v12 = vpack.c.bf16 %v4122_v10, %v4122_v10  ;;  %v4131_v49 = vpack.c.bf16 %v4123_v22, %v4123_v22 }
 0x2e3   : > { %4395 = vmatpush.bf16.msra.mxu0 %v7046_v32  ;;  %4125 = vst [vmem:[#allocation19 + $0x8] sm:$0xff] %v4121_v35  ;;  %v7058_v47 = vld [vmem:[#allocation15 + $0x80] sm:$0xff]  ;;  %v4129_v28 = vpack.c.bf16 %v4121_v35, %v4121_v35 }
 0x2e4   : > { %4408 = vmatpush.bf16.msra.mxu1 %v7054_v59  ;;  %4127 = vst [vmem:[#allocation19 + $0x18] sm:$0xff] %v4123_v22  ;;  %v7066_v24 = vld [vmem:[#allocation15 + $0xc0] sm:$0xff] }
 0x2e5   : > { %4421 = vmatpush.bf16.msra.mxu2 %v7062_v60  ;;  %v7196_v16 = vld [vmem:[#allocation16] ss:$0 sm:$0xff] }
 0x2e6   : > { %4434 = vmatpush.bf16.msra.mxu3 %v7070_v31 }
 0x2e7   : > { %4396 = vmatpush.bf16.msra.mxu0 %v7045_v9 }
 0x2e8   : > { %4409 = vmatpush.bf16.msra.mxu1 %v7053_v2 }
 0x2e9   : > { %4422 = vmatpush.bf16.msra.mxu2 %v7061_v26 }
 0x2ea   : > { %4435 = vmatpush.bf16.msra.mxu3 %v7069_v29 }
 0x2eb   : > { %4397 = vmatpush.bf16.msra.mxu0 %v7044_v37 }
 0x2ec   : > { %4410 = vmatpush.bf16.msra.mxu1 %v7052_v40 }
 0x2ed   : > { %4423 = vmatpush.bf16.msra.mxu2 %v7060_v42 }
 0x2ee   : > { %4436 = vmatpush.bf16.msra.mxu3 %v7068_v20 }
 0x2ef   : > { %4398 = vmatpush.bf16.msra.mxu0 %v7043_v39 }
 0x2f0   : > { %4411 = vmatpush.bf16.msra.mxu1 %v7051_v38 }
 0x2f1   : > { %4424 = vmatpush.bf16.msra.mxu2 %v7059_v0 }
 0x2f2   : > { %4437 = vmatpush.bf16.msra.mxu3 %v7067_v34 }
 0x2f3   : > { %4399 = vmatpush.bf16.msra.mxu0 %v7042_v45 }
 0x2f4   : > { %4412 = vmatpush.bf16.msra.mxu1 %v7050_v17 }
 0x2f5   : > { %4425 = vmatpush.bf16.msra.mxu2 %v7058_v47 }
 0x2f6   : > { %4438 = vmatpush.bf16.msra.mxu3 %v7066_v24  ;;  %4400 = vmatmul.bf16.vlgmr.msra.gmra.mxu0 %v4128_v48 }
 0x2f7   : > { %4413 = vmatmul.bf16.vlgmr.msra.gmra.mxu1 %v4129_v28 }
 0x2f8   : > { %4426 = vmatmul.bf16.vlgmr.msra.gmra.mxu2 %v4130_v12 }
 0x2f9   : > { %4439 = vmatmul.bf16.vlgmr.msra.gmra.mxu3 %v4131_v49 }
 0x373   : > { %v4401_v51 = vpop.f32.mrf.mxu0 }
 0x374   : > { %v4414_v53 = vpop.f32.mrf.mxu1  ;;  %v4402_v50 = vadd.f32 %v7196_v16, %v4401_v51 }
 0x376   : > { %v4415_v54 = vadd.f32 %v4414_v53, %v4402_v50 }
 0x37b   : > { %v4427_v11 = vpop.f32.mrf.mxu2  ;;  %v4403_v44 = vpop.f32.mrf.mxu0 }
 0x37c   : > { %v4440_v25 = vpop.f32.mrf.mxu3  ;;  %v4428_v43 = vadd.f32 %v4427_v11, %v4415_v54  ;;  %v4416_v23 = vpop.f32.mrf.mxu1 }
 0x37e   : > { %v4441_v18 = vadd.f32 %v4440_v25, %v4428_v43 }
 0x380   : > { %v4444_v30 = vmax.f32 %v4441_v18, 0.0 }
 0x382   : > { %4445 = vst [vmem:[#allocation18] sm:$0xff] %v4444_v30 }
 0x383   : > { %v4429_v62 = vpop.f32.mrf.mxu2 }
 0x384   : > { %v4442_v41 = vpop.f32.mrf.mxu3 }
 0x385 PF: > { %p7146_p0 = scmp.eq.s32.totalorder %s4647_s27, 1  ;;  %s4467_s8 = sshll.u32 %s7859_s6, 4  ;;  %s4468_s8 = int_to_ptr.hbm [resolvable:$true] %s4467_s8 }
 0x386   : > { %s7492_s14 = smov [#allocation18]   ;;  %s7493_s11 = smov [#allocation19]  }
 0x387   : > { %s4465_s15 = sshll.u32 %s7492_s14, 4  ;;  %s4481_s13 = sshll.u32 %s7493_s11, 4  ;;  %s4466_s15 = int_to_ptr.vmem [resolvable:$true] %s4465_s15  ;;  %s4482_s13 = int_to_ptr.vmem [resolvable:$true] %s4481_s13 }
 0x388   : > { %7099 = dma.vmem_to_hbm [thread:$0]  (%p7146_p0), %s4466_s15, 128, %s4468_s8, [#allocation9]  }
 0x389   : > { %s4483_s17 = sshll.u32 %s7860_s7, 4  ;;  %s4484_s17 = int_to_ptr.hbm [resolvable:$true] %s4483_s17 }
 0x38a   : > { %7101 = dma.vmem_to_hbm [thread:$0]  (%p7146_p0), %s4482_s13, 512, %s4484_s17, [#allocation20]  }
 0x38b PF: > { %s7868_s27 = sadd.s32 4294967294, %s7479_s26  }
 0x38c   : > { %p7149_p1 = scmp.eq.s32.totalorder %s7868_s27, 1 }
 0x38e   : > { %p7127_p2 = pnand %p7149_p1, %p4655_p7 }
 0x390   : > { %p7128_p3 = pneg %p7127_p2 }
 0x392   : > { %7462 = dma.done.wait (%p7128_p3), [#allocation9], 128  }
 0x393   : > { %7464 = vsyncadd (%p7128_p3), [#allocation9], 4294967168 }
 0x394   : > { %7466 = dma.done.wait (%p7128_p3), [#allocation20], 512  }
 0x395   : > { %7468 = vsyncadd (%p7128_p3), [#allocation20], 4294966784  ;;  %s30_s26 = sadd.s32 1, %s7479_s26   ;;  %s7869_s24 = smov %s7475_s25 }
 0x396   : > { %p27_p4 = scmp.ge.s32.totalorder %s30_s26, 4   ;;  %s7870_s25 = smov %s7872_s29 }
 0x398   :  { %29 = sbr.rel (!%p27_p4) target bundleno = 10 (0xa), region = 144 }
 0x39d   :  { %4512 = vsyncpa [#allocation8], 1 }
 0x39e   :  { %4514 = vsyncpa [#allocation8 + $0x1], 1 }
 0x39f   :  { %4515 = vsyncpa [#allocation11], 1 }
 0x3a0   :  { %4516 = vsyncpa [#allocation14], 1 }
 0x3a1   :  { %4517 = vsyncpa [#allocation17], 1 }
 0x3a2   :  { %4518 = vsyncpa [#allocation9], 1 }
 0x3a3   :  { %4520 = vsyncpa [#allocation9 + $0x1], 1 }
 0x3a4   :  { %4521 = vsyncpa [#allocation20], 1 }
 0x3a5   :  { %4523 = vsyncpa [#allocation20 + $0x1], 1 }

</bundles_post_ra>
